<compile_context>
chip_gen: v7x
topology: tpu7x:2x2x1
jax: 0.10.0
libtpu: 0.0.40
codegen_flags: <defaults>
</compile_context>

<pallas_src>
import numpy as np
import jax
import jax.numpy as jnp
from jax.experimental import pallas as pl
from jax.experimental.pallas import tpu as pltpu

LN_EPS = 1e-5  # nn.LayerNorm default eps


# ---------------------------------------------------------------------------
# Host-side (concrete) block-sparsity preprocessing -- done once per graph,
# reused by every layer (only the A values change per layer).
# ---------------------------------------------------------------------------
def build_block_structure(src, tgt, N_pad, tm, tk):
    src = np.asarray(src)
    tgt = np.asarray(tgt)
    n_rb = N_pad // tm
    n_kb = N_pad // tk
    rb = (tgt // tm).astype(np.int64)
    cb = (src // tk).astype(np.int64)
    key = rb * n_kb + cb
    uniq = np.unique(key)                      # sorted => row-major tile order
    if uniq.size == 0:
        uniq = np.zeros((1,), np.int64)
        slot_of_edge = np.zeros((0,), np.int32)
    else:
        slot_of_edge = np.searchsorted(uniq, key).astype(np.int32)
    uniq_rb = (uniq // n_kb).astype(np.int64)
    uniq_cb = (uniq % n_kb).astype(np.int32)
    counts = np.bincount(uniq_rb, minlength=n_rb).astype(np.int32)
    max_k = max(int(counts.max()), 1)
    kcols = np.zeros((n_rb, max_k), np.int32)
    aslots = np.zeros((n_rb, max_k), np.int32)
    off = np.concatenate([[0], np.cumsum(counts)]).astype(np.int64)
    for i in range(n_rb):
        c = int(counts[i])
        if c > 0:
            kcols[i, :c] = uniq_cb[off[i]:off[i + 1]]
            aslots[i, :c] = np.arange(off[i], off[i + 1], dtype=np.int32)
            # Pad with the last valid entry: consecutive identical block indices
            # let the Pallas pipeline skip the (already-resident) DMA.
            kcols[i, c:] = kcols[i, c - 1]
            aslots[i, c:] = aslots[i, c - 1]
    return dict(
        n_slots=int(uniq.size),
        max_k=max_k,
        slot_of_edge=jnp.asarray(slot_of_edge),
        row_in_tile=jnp.asarray((tgt % tm).astype(np.int32)),
        col_in_tile=jnp.asarray((src % tk).astype(np.int32)),
        kcols=jnp.asarray(kcols),
        aslots=jnp.asarray(aslots),
        nvalid=jnp.asarray(counts),
    )


def build_A_tiles(att, blk, tm, tk):
    """Scatter normalized edge attention into the compact nonzero tiles only.
    (The dense f32 N^2 build -> bf16 cast the review flagged no longer exists;
    this scatter is O(nonzero tiles), not O(N^2).)"""
    A = jnp.zeros((blk["n_slots"], tm, tk), jnp.float32)
    A = A.at[blk["slot_of_edge"], blk["row_in_tile"], blk["col_in_tile"]].add(att)
    return A.astype(jnp.bfloat16)


# ---------------------------------------------------------------------------
# Pallas kernels: one GCN_Layer (inference; dropout == identity)
#   aggr = A @ H ; lin = relu(aggr) @ W^T + b ; x = lin + H ; out = LN(x)
# Last layer additionally fuses global_mean_pool + output Linear.
# ---------------------------------------------------------------------------
def _gcn_epilogue(acc, hres, Wt_ref, b_ref, gamma_ref, beta_ref):
    """relu -> a_linear -> residual -> LayerNorm (non-MXU math stays f32)."""
    aggr = jnp.maximum(acc, 0.0)                                   # ReLU (VPU, f32)
    lin = jnp.dot(aggr.astype(jnp.bfloat16), Wt_ref[...],
                  preferred_element_type=jnp.float32) + b_ref[...]
    x = lin + hres                                                 # residual (f32)
    # Two-pass LayerNorm (subtract-mean variance) per review's precision note.
    mean = jnp.mean(x, axis=-1, keepdims=True)
    xc = x - mean
    var = jnp.mean(xc * xc, axis=-1, keepdims=True)
    xn = xc * jax.lax.rsqrt(var + LN_EPS)
    return xn * gamma_ref[...] + beta_ref[...]


def gcn_layer_kernel(kcols_ref, aslots_ref, nvalid_ref,
                     A_ref, Hk_ref, Hres_ref, Wt_ref, b_ref, gamma_ref, beta_ref,
                     out_ref, acc_ref):
    i = pl.program_id(0)
    k = pl.program_id(1)

    @pl.when(k == 0)
    def _init():
        acc_ref[...] = jnp.zeros_like(acc_ref)

    @pl.when(k < nvalid_ref[i])          # skip padded (all-zero) A tiles
    def _accum():
        acc_ref[...] += jnp.dot(A_ref[0], Hk_ref[...],
                                preferred_element_type=jnp.float32)

    @pl.when(k == pl.num_programs(1) - 1)
    def _finalize():
        out_ref[...] = _gcn_epilogue(acc_ref[...], Hres_ref[...],
                                     Wt_ref, b_ref, gamma_ref, beta_ref)


def gcn_layer_pool_kernel(kcols_ref, aslots_ref, nvalid_ref,
                          A_ref, Hk_ref, Hres_ref, Wt_ref, b_ref, gamma_ref,
                          beta_ref, P_ref, Wout_ref,
                          out_ref, proj_ref, acc_ref):
    """Last layer: fuses global_mean_pool + output Linear into the finalize.
    Each row block writes its own (G_pad, n_out_pad) partial so the row axis
    stays 'parallel' (v7x dual-TC safe); partials are summed in XLA glue."""
    i = pl.program_id(0)
    k = pl.program_id(1)

    @pl.when(k == 0)
    def _init():
        acc_ref[...] = jnp.zeros_like(acc_ref)

    @pl.when(k < nvalid_ref[i])
    def _accum():
        acc_ref[...] += jnp.dot(A_ref[0], Hk_ref[...],
                                preferred_element_type=jnp.float32)

    @pl.when(k == pl.num_programs(1) - 1)
    def _finalize():
        y = _gcn_epilogue(acc_ref[...], Hres_ref[...],
                          Wt_ref, b_ref, gamma_ref, beta_ref)
        out_ref[...] = y
        # Mean-pool partial for this row block, then the output Linear.
        # (G_pad rows only partially fill the MXU, but this runs once per row
        #  block in the epilogue -- negligible; see review note.)
        pooled = jnp.dot(P_ref[...], y.astype(jnp.bfloat16),
                         preferred_element_type=jnp.float32)
        proj_ref[0] = jnp.dot(pooled.astype(jnp.bfloat16), Wout_ref[...],
                              preferred_element_type=jnp.float32)


def gcn_layer(A_tiles, blk, H, Wt_bf16, b, gamma, beta, *, tm, tk,
              P_pad=None, Wout_t_pad=None):
    """One GCN layer over block-sparse A.  If P_pad/Wout_t_pad are given, also
    returns per-row-block (mean-pool @ W_out^T) partials (fused last layer)."""
    N_pad, n_hid = H.shape
    n_rb = N_pad // tm
    grid = (n_rb, blk["max_k"])

    H_bf = H.astype(jnp.bfloat16)   # bf16 copy only for the MXU reduction path

    in_specs = [
        # Compact nonzero A tiles, selected by the prefetched slot table.
        pl.BlockSpec((1, tm, tk), lambda i, k, kc, sl, nv: (sl[i, k], 0, 0)),
        # H rows for the reduction, selected by the prefetched column table.
        pl.BlockSpec((tk, n_hid), lambda i, k, kc, sl, nv: (kc[i, k], 0)),
        pl.BlockSpec((tm, n_hid), lambda i, k, kc, sl, nv: (i, 0)),     # residual (f32)
        pl.BlockSpec((n_hid, n_hid), lambda i, k, kc, sl, nv: (0, 0)),  # W^T (bf16)
        pl.BlockSpec((1, n_hid), lambda i, k, kc, sl, nv: (0, 0)),      # b
        pl.BlockSpec((1, n_hid), lambda i, k, kc, sl, nv: (0, 0)),      # gamma
        pl.BlockSpec((1, n_hid), lambda i, k, kc, sl, nv: (0, 0)),      # beta
    ]
    node_spec = pl.BlockSpec((tm, n_hid), lambda i, k, kc, sl, nv: (i, 0))
    node_shape = jax.ShapeDtypeStruct((N_pad, n_hid), jnp.float32)
    scratch = [pltpu.VMEM((tm, n_hid), jnp.float32)]
    cparams = pltpu.CompilerParams(
        dimension_semantics=("parallel", "arbitrary"))

    args = (blk["kcols"], blk["aslots"], blk["nvalid"],
            A_tiles, H_bf, H, Wt_bf16,
            b.reshape(1, n_hid), gamma.reshape(1, n_hid), beta.reshape(1, n_hid))

    if P_pad is None:
        return pl.pallas_call(
            gcn_layer_kernel,
            out_shape=node_shape,
            grid_spec=pltpu.PrefetchScalarGridSpec(
                num_scalar_prefetch=3, grid=grid,
                in_specs=in_specs, out_specs=node_spec,
                scratch_shapes=scratch),
            compiler_params=cparams,
        )(*args)

    G_pad = P_pad.shape[0]
    n_out_pad = Wout_t_pad.shape[1]
    in_specs = in_specs + [
        pl.BlockSpec((G_pad, tm), lambda i, k, kc, sl, nv: (0, i)),         # P tile
        pl.BlockSpec((n_hid, n_out_pad), lambda i, k, kc, sl, nv: (0, 0)),  # W_out^T
    ]
    node_out, proj_partial = pl.pallas_call(
        gcn_layer_pool_kernel,
        out_shape=(node_shape,
                   jax.ShapeDtypeStruct((n_rb, G_pad, n_out_pad), jnp.float32)),
        grid_spec=pltpu.PrefetchScalarGridSpec(
            num_scalar_prefetch=3, grid=grid,
            in_specs=in_specs,
            out_specs=[node_spec,
                       pl.BlockSpec((1, G_pad, n_out_pad),
                                    lambda i, k, kc, sl, nv: (i, 0, 0))],
            scratch_shapes=scratch),
        compiler_params=cparams,
    )(*args, P_pad.astype(jnp.bfloat16), Wout_t_pad)
    return node_out, proj_partial


# ---------------------------------------------------------------------------
# Full GNN forward (node_level=False)
# ---------------------------------------------------------------------------
def gnn_forward(node_attr, edge_index, batch_idx, adv_atts, params, num_graphs,
                *, tm=512, tk=512):
    # tm=tk=512: ~85% of HBM roofline per measured tile sweep (vs ~63% at 256);
    # tk is a multiple of 256 for the v6e/v7x MXU; double-buffered VMEM is
    # ~2.6 MiB, so a 1024 sweep (~8 MiB) is also safe on v7x (64 MiB VMEM).
    N = node_attr.shape[0]
    n_hid = params["emb_tables"][0].shape[1]
    n_out = params["W_out"].shape[0]

    # Pad the node count so every tile is full AND the row axis has >= 2 blocks
    # (v7x has 2 TensorCores; one row block would leave a TC idle).
    n_row_blocks = max(2, pl.cdiv(N, tm))
    N_pad = n_row_blocks * tm
    assert N_pad % tk == 0

    # AtomEncoder: sum of per-feature embeddings (gather = glue, plain JAX).
    node_rep = jnp.zeros((N, n_hid), jnp.float32)
    for f, table in enumerate(params["emb_tables"]):
        node_rep = node_rep + table[node_attr[:, f]]
    node_rep = jnp.pad(node_rep, ((0, N_pad - N), (0, 0)))

    src = edge_index[0]   # j (source)
    tgt = edge_index[1]   # i (target)

    # Block-sparsity pattern is layer-invariant: build once (host side).
    blk = build_block_structure(src, tgt, N_pad, tm, tk)

    # global_mean_pool matrix (padded rows/cols zero) + padded output projection.
    G_pad = max(8, ((num_graphs + 7) // 8) * 8)
    one_hot = (batch_idx[None, :] == jnp.arange(num_graphs)[:, None]).astype(jnp.float32)
    cnt = jnp.maximum(one_hot.sum(axis=1, keepdims=True), 1.0)
    P_pad = jnp.zeros((G_pad, N_pad), jnp.float32).at[:num_graphs, :N].set(one_hot / cnt)

    n_out_pad = max(128, ((n_out + 127) // 128) * 128)   # lane-dense fused output
    Wout_t_pad = (jnp.zeros((n_hid, n_out_pad), jnp.float32)
                  .at[:, :n_out].set(params["W_out"].T)).astype(jnp.bfloat16)

    n_layers = len(params["layers"])
    proj_partial = None
    for li, (layer_p, adv_att) in enumerate(zip(params["layers"], adv_atts)):
        # softmax(adv_att.log(), index=tgt) == adv_att / segment_sum(adv_att, tgt)
        seg_sum = jnp.zeros((N,), jnp.float32).at[tgt].add(adv_att)
        att = adv_att / jnp.maximum(seg_sum[tgt], 1e-12)   # guard isolated targets
        A_tiles = build_A_tiles(att, blk, tm, tk)
        Wt = layer_p["W"].T.astype(jnp.bfloat16)
        if li < n_layers - 1:
            node_rep = gcn_layer(A_tiles, blk, node_rep, Wt,
                                 layer_p["b"], layer_p["gamma"], layer_p["beta"],
                                 tm=tm, tk=tk)
        else:
            # Last layer: mean pool + output Linear fused into the finalize.
            node_rep, proj_partial = gcn_layer(
                A_tiles, blk, node_rep, Wt,
                layer_p["b"], layer_p["gamma"], layer_p["beta"],
                tm=tm, tk=tk, P_pad=P_pad, Wout_t_pad=Wout_t_pad)

    # Tiny cross-row-block reduction + bias (O(G * n_out)) stays in XLA glue.
    graph_out = (proj_partial.sum(axis=0)[:num_graphs, :n_out]
                 + params["b_out"][None, :])
    return graph_out


# ---------------------------------------------------------------------------
# Pure-JAX f32 reference (for a loose numerical check).
# ---------------------------------------------------------------------------
def gnn_reference(node_attr, edge_index, batch_idx, adv_atts, params, num_graphs):
    N = node_attr.shape[0]
    n_hid = params["emb_tables"][0].shape[1]
    node_rep = jnp.zeros((N, n_hid), jnp.float32)
    for f, table in enumerate(params["emb_tables"]):
        node_rep = node_rep + table[node_attr[:, f]]
    src, tgt = edge_index[0], edge_index[1]
    for layer_p, adv_att in zip(params["layers"], adv_atts):
        seg = jnp.zeros((N,), jnp.float32).at[tgt].add(adv_att)
        att = adv_att / jnp.maximum(seg[tgt], 1e-12)
        A = jnp.zeros((N, N), jnp.float32).at[tgt, src].add(att)
        aggr = A @ node_rep
        lin = jnp.maximum(aggr, 0.0) @ layer_p["W"].T + layer_p["b"]
        x = lin + node_rep
        mean = jnp.mean(x, axis=-1, keepdims=True)
        var = jnp.mean((x - mean) ** 2, axis=-1, keepdims=True)
        node_rep = ((x - mean) * jax.lax.rsqrt(var + LN_EPS)
                    * layer_p["gamma"] + layer_p["beta"])
    one_hot = (batch_idx[None, :] == jnp.arange(num_graphs)[:, None]).astype(jnp.float32)
    pooled = (one_hot / jnp.maximum(one_hot.sum(1, keepdims=True), 1.0)) @ node_rep
    return pooled @ params["W_out"].T + params["b_out"]


if __name__ == "__main__":
    # Small, deterministic synthetic problem.
    N = 64          # nodes
    n_hid = 128
    n_out = 16
    n_layers = 2
    n_feat = 3      # categorical node-attribute columns (AtomEncoder)
    vocab = 10
    E_rand = 192    # random edges (plus N self-loops so every target is covered)
    num_graphs = 2

    key = jax.random.PRNGKey(0)
    keys = jax.random.split(key, 16)

    node_attr = jax.random.randint(keys[0], (N, n_feat), 0, vocab)

    rand_src = jax.random.randint(keys[1], (E_rand,), 0, N)
    rand_tgt = jax.random.randint(keys[2], (E_rand,), 0, N)
    loop = jnp.arange(N)
    edge_index = jnp.stack(
        [jnp.concatenate([rand_src, loop]), jnp.concatenate([rand_tgt, loop])], axis=0
    )
    E = edge_index.shape[1]

    batch_idx = (jnp.arange(N) >= N // 2).astype(jnp.int32)  # 2 graphs

    adv_atts = [
        jax.random.uniform(keys[3 + l], (E,), minval=0.5, maxval=1.5)
        for l in range(n_layers)
    ]

    emb_tables = [
        0.1 * jax.random.normal(keys[6 + f], (vocab, n_hid), jnp.float32)
        for f in range(n_feat)
    ]

    layers = []
    for l in range(n_layers):
        layers.append(
            dict(
                W=0.05 * jax.random.normal(keys[10 + l], (n_hid, n_hid), jnp.float32),
                b=jnp.zeros((n_hid,), jnp.float32),
                gamma=jnp.ones((n_hid,), jnp.float32),   # LayerNorm default init
                beta=jnp.zeros((n_hid,), jnp.float32),
            )
        )

    params = dict(
        emb_tables=emb_tables,
        layers=layers,
        W_out=0.05 * jax.random.normal(keys[14], (n_out, n_hid), jnp.float32),
        b_out=jnp.zeros((n_out,), jnp.float32),
    )

    out = gnn_forward(node_attr, edge_index, batch_idx, adv_atts, params, num_graphs)
    out = jax.block_until_ready(out)
    assert out.shape == (num_graphs, n_out)
    assert bool(jnp.all(jnp.isfinite(out)))

    # Loose check vs pure-JAX f32 reference (bf16 MXU operands -> ~1e-2 abs err).
    ref = gnn_reference(node_attr, edge_index, batch_idx, adv_atts, params, num_graphs)
    max_err = float(jnp.max(jnp.abs(out - ref)))
    assert max_err < 0.1, f"max_err={max_err}"

    print("KERNEL_OK")
</pallas_src>

<mosaic_0001>
module attributes {stable_mosaic.version = 11 : i64} {
  func.func @gcn_layer_kernel(%arg0: i32, %arg1: i32, %arg2: memref<2x1xi32, #tpu.memory_space<smem>>, %arg3: memref<2x1xi32, #tpu.memory_space<smem>>, %arg4: memref<2xi32, #tpu.memory_space<smem>>, %arg5: memref<1x512x512xbf16, #tpu.memory_space<vmem>>, %arg6: memref<512x128xbf16, #tpu.memory_space<vmem>>, %arg7: memref<512x128xf32, #tpu.memory_space<vmem>>, %arg8: memref<128x128xbf16, #tpu.memory_space<vmem>>, %arg9: memref<1x128xf32, #tpu.memory_space<vmem>>, %arg10: memref<1x128xf32, #tpu.memory_space<vmem>>, %arg11: memref<1x128xf32, #tpu.memory_space<vmem>>, %arg12: memref<512x128xf32, #tpu.memory_space<vmem>>, %arg13: memref<512x128xf32, #tpu.memory_space<vmem>>) attributes {dimension_semantics = [#tpu.dimension_semantics<parallel>, #tpu.dimension_semantics<arbitrary>], iteration_bounds = array<i64: 2, 1>, scalar_prefetch = 3 : i64, scratch_operands = 1 : i64, tpu.core_type = #tpu.core_type<tc>, window_params = [{transform_indices = @transform_0, window_bounds = array<i64: 1, 512, 512>}, {transform_indices = @transform_1, window_bounds = array<i64: 512, 128>}, {transform_indices = @transform_2, window_bounds = array<i64: 512, 128>}, {pipeline_mode = #tpu.pipeline_mode<synchronous>, transform_indices = @transform_3, window_bounds = array<i64: 128, 128>}, {pipeline_mode = #tpu.pipeline_mode<synchronous>, transform_indices = @transform_4, window_bounds = array<i64: 1, 128>}, {pipeline_mode = #tpu.pipeline_mode<synchronous>, transform_indices = @transform_5, window_bounds = array<i64: 1, 128>}, {pipeline_mode = #tpu.pipeline_mode<synchronous>, transform_indices = @transform_6, window_bounds = array<i64: 1, 128>}, {transform_indices = @transform_7, window_bounds = array<i64: 512, 128>}]} {
    %c0_i32 = arith.constant 0 : i32
    %0 = arith.cmpi eq, %arg1, %c0_i32 : i32
    %1 = arith.extui %0 : i1 to i32
    %c0_i32_0 = arith.constant 0 : i32
    %2 = arith.cmpi ne, %1, %c0_i32_0 : i32
    scf.if %2 {
      %cst = arith.constant 0.000000e+00 : f32
      %11 = vector.broadcast %cst : f32 to vector<512x128xf32>
      %c0 = arith.constant 0 : index
      %c0_4 = arith.constant 0 : index
      %12 = vector.load %arg13[%c0, %c0_4] : memref<512x128xf32, #tpu.memory_space<vmem>>, vector<512x128xf32>
      tpu.vector_store %arg13[%c0, %c0_4], %11 {strides = array<i32>} : memref<512x128xf32, #tpu.memory_space<vmem>>, vector<512x128xf32>,
    } else {
    }
    %3 = arith.index_cast %arg0 : i32 to index
    %4 = memref.load %arg4[%3] : memref<2xi32, #tpu.memory_space<smem>>
    %5 = arith.cmpi slt, %arg1, %4 : i32
    %6 = arith.extui %5 : i1 to i32
    %c0_i32_1 = arith.constant 0 : i32
    %7 = arith.cmpi ne, %6, %c0_i32_1 : i32
    scf.if %7 {
      %c0 = arith.constant 0 : index
      %c0_4 = arith.constant 0 : index
      %11 = vector.load %arg13[%c0, %c0_4] : memref<512x128xf32, #tpu.memory_space<vmem>>, vector<512x128xf32>
      %c0_5 = arith.constant 0 : index
      %c0_6 = arith.constant 0 : index
      %c0_7 = arith.constant 0 : index
      %12 = vector.load %arg5[%c0_5, %c0_6, %c0_7] : memref<1x512x512xbf16, #tpu.memory_space<vmem>>, vector<1x512x512xbf16>
      %13 = vector.shape_cast %12 : vector<1x512x512xbf16> to vector<512x512xbf16>
      %c0_8 = arith.constant 0 : index
      %c0_9 = arith.constant 0 : index
      %14 = vector.load %arg6[%c0_8, %c0_9] : memref<512x128xbf16, #tpu.memory_space<vmem>>, vector<512x128xbf16>
      %cst = arith.constant dense<0.000000e+00> : vector<512x128xf32>
      %15 = tpu.matmul %13, %14, %cst {dimension_numbers = #tpu.dot_dimension_numbers<[1], [0], [0], [1], [0, 0, 1, 1], [], []>} : vector<512x512xbf16>, vector<512x128xbf16>, vector<512x128xf32> -> vector<512x128xf32>
      %16 = arith.addf %11, %15 : vector<512x128xf32>
      %c0_10 = arith.constant 0 : index
      %c0_11 = arith.constant 0 : index
      %17 = vector.load %arg13[%c0_10, %c0_11] : memref<512x128xf32, #tpu.memory_space<vmem>>, vector<512x128xf32>
      tpu.vector_store %arg13[%c0_10, %c0_11], %16 {strides = array<i32>} : memref<512x128xf32, #tpu.memory_space<vmem>>, vector<512x128xf32>,
    } else {
    }
    %c0_i32_2 = arith.constant 0 : i32
    %8 = arith.cmpi eq, %arg1, %c0_i32_2 : i32
    %9 = arith.extui %8 : i1 to i32
    %c0_i32_3 = arith.constant 0 : i32
    %10 = arith.cmpi ne, %9, %c0_i32_3 : i32
    scf.if %10 {
      %c0 = arith.constant 0 : index
      %c0_4 = arith.constant 0 : index
      %11 = vector.load %arg13[%c0, %c0_4] : memref<512x128xf32, #tpu.memory_space<vmem>>, vector<512x128xf32>
      %c0_5 = arith.constant 0 : index
      %c0_6 = arith.constant 0 : index
      %12 = vector.load %arg7[%c0_5, %c0_6] : memref<512x128xf32, #tpu.memory_space<vmem>>, vector<512x128xf32>
      %cst = arith.constant 0.000000e+00 : f32
      %13 = vector.broadcast %cst : f32 to vector<512x128xf32>
      %14 = arith.maximumf %11, %13 : vector<512x128xf32>
      %15 = arith.truncf %14 : vector<512x128xf32> to vector<512x128xbf16>
      %c0_7 = arith.constant 0 : index
      %c0_8 = arith.constant 0 : index
      %16 = vector.load %arg8[%c0_7, %c0_8] : memref<128x128xbf16, #tpu.memory_space<vmem>>, vector<128x128xbf16>
      %cst_9 = arith.constant dense<0.000000e+00> : vector<512x128xf32>
      %17 = tpu.matmul %15, %16, %cst_9 {dimension_numbers = #tpu.dot_dimension_numbers<[1], [0], [0], [1], [0, 0, 1, 1], [], []>} : vector<512x128xbf16>, vector<128x128xbf16>, vector<512x128xf32> -> vector<512x128xf32>
      %c0_10 = arith.constant 0 : index
      %c0_11 = arith.constant 0 : index
      %18 = vector.load %arg9[%c0_10, %c0_11] : memref<1x128xf32, #tpu.memory_space<vmem>>, vector<1x128xf32>
      %19 = vector.broadcast %18 : vector<1x128xf32> to vector<512x128xf32>
      %20 = arith.addf %17, %19 : vector<512x128xf32>
      %21 = arith.addf %20, %12 : vector<512x128xf32>
      %cst_12 = arith.constant dense<0.000000e+00> : vector<512xf32>
      %22 = vector.multi_reduction <add>, %21, %cst_12 [1] : vector<512x128xf32> to vector<512xf32>
      %23 = vector.shape_cast %22 : vector<512xf32> to vector<512x1xf32>
      %cst_13 = arith.constant 1.280000e+02 : f32
      %24 = vector.broadcast %cst_13 : f32 to vector<512x1xf32>
      %25 = arith.divf %23, %24 : vector<512x1xf32>
      %26 = vector.broadcast %25 : vector<512x1xf32> to vector<512x128xf32>
      %27 = arith.subf %21, %26 : vector<512x128xf32>
      %28 = arith.mulf %27, %27 : vector<512x128xf32>
      %cst_14 = arith.constant dense<0.000000e+00> : vector<512xf32>
      %29 = vector.multi_reduction <add>, %28, %cst_14 [1] : vector<512x128xf32> to vector<512xf32>
      %30 = vector.shape_cast %29 : vector<512xf32> to vector<512x1xf32>
      %cst_15 = arith.constant 1.280000e+02 : f32
      %31 = vector.broadcast %cst_15 : f32 to vector<512x1xf32>
      %32 = arith.divf %30, %31 : vector<512x1xf32>
      %cst_16 = arith.constant 9.99999974E-6 : f32
      %33 = vector.broadcast %cst_16 : f32 to vector<512x1xf32>
      %34 = arith.addf %32, %33 : vector<512x1xf32>
      %35 = math.rsqrt %34 : vector<512x1xf32>
      %36 = vector.broadcast %35 : vector<512x1xf32> to vector<512x128xf32>
      %37 = arith.mulf %27, %36 : vector<512x128xf32>
      %c0_17 = arith.constant 0 : index
      %c0_18 = arith.constant 0 : index
      %38 = vector.load %arg10[%c0_17, %c0_18] : memref<1x128xf32, #tpu.memory_space<vmem>>, vector<1x128xf32>
      %39 = vector.broadcast %38 : vector<1x128xf32> to vector<512x128xf32>
      %40 = arith.mulf %37, %39 : vector<512x128xf32>
      %c0_19 = arith.constant 0 : index
      %c0_20 = arith.constant 0 : index
      %41 = vector.load %arg11[%c0_19, %c0_20] : memref<1x128xf32, #tpu.memory_space<vmem>>, vector<1x128xf32>
      %42 = vector.broadcast %41 : vector<1x128xf32> to vector<512x128xf32>
      %43 = arith.addf %40, %42 : vector<512x128xf32>
      %c0_21 = arith.constant 0 : index
      %c0_22 = arith.constant 0 : index
      %44 = vector.load %arg12[%c0_21, %c0_22] : memref<512x128xf32, #tpu.memory_space<vmem>>, vector<512x128xf32>
      tpu.vector_store %arg12[%c0_21, %c0_22], %43 {strides = array<i32>} : memref<512x128xf32, #tpu.memory_space<vmem>>, vector<512x128xf32>,
    } else {
    }
    return
  }
  func.func @transform_0(%arg0: i32, %arg1: i32, %arg2: memref<2x1xi32, #tpu.memory_space<smem>>, %arg3: memref<2x1xi32, #tpu.memory_space<smem>>, %arg4: memref<2xi32, #tpu.memory_space<smem>>) -> (i32, i32, i32) {
    %0 = arith.index_cast %arg0 : i32 to index
    %1 = arith.index_cast %arg1 : i32 to index
    %2 = memref.load %arg3[%0, %1] : memref<2x1xi32, #tpu.memory_space<smem>>
    %c0_i32 = arith.constant 0 : i32
    %c0_i32_0 = arith.constant 0 : i32
    %c0_i32_1 = arith.constant 0 : i32
    return %2, %c0_i32, %c0_i32_0 : i32, i32, i32
  }
  func.func @transform_1(%arg0: i32, %arg1: i32, %arg2: memref<2x1xi32, #tpu.memory_space<smem>>, %arg3: memref<2x1xi32, #tpu.memory_space<smem>>, %arg4: memref<2xi32, #tpu.memory_space<smem>>) -> (i32, i32) {
    %0 = arith.index_cast %arg0 : i32 to index
    %1 = arith.index_cast %arg1 : i32 to index
    %2 = memref.load %arg2[%0, %1] : memref<2x1xi32, #tpu.memory_space<smem>>
    %c0_i32 = arith.constant 0 : i32
    %c0_i32_0 = arith.constant 0 : i32
    return %2, %c0_i32 : i32, i32
  }
  func.func @transform_2(%arg0: i32, %arg1: i32, %arg2: memref<2x1xi32, #tpu.memory_space<smem>>, %arg3: memref<2x1xi32, #tpu.memory_space<smem>>, %arg4: memref<2xi32, #tpu.memory_space<smem>>) -> (i32, i32) {
    %c0_i32 = arith.constant 0 : i32
    %c0_i32_0 = arith.constant 0 : i32
    return %arg0, %c0_i32 : i32, i32
  }
  func.func @transform_3(%arg0: i32, %arg1: i32, %arg2: memref<2x1xi32, #tpu.memory_space<smem>>, %arg3: memref<2x1xi32, #tpu.memory_space<smem>>, %arg4: memref<2xi32, #tpu.memory_space<smem>>) -> (i32, i32) {
    %c0_i32 = arith.constant 0 : i32
    %c0_i32_0 = arith.constant 0 : i32
    %c0_i32_1 = arith.constant 0 : i32
    return %c0_i32, %c0_i32_0 : i32, i32
  }
  func.func @transform_4(%arg0: i32, %arg1: i32, %arg2: memref<2x1xi32, #tpu.memory_space<smem>>, %arg3: memref<2x1xi32, #tpu.memory_space<smem>>, %arg4: memref<2xi32, #tpu.memory_space<smem>>) -> (i32, i32) {
    %c0_i32 = arith.constant 0 : i32
    %c0_i32_0 = arith.constant 0 : i32
    %c0_i32_1 = arith.constant 0 : i32
    return %c0_i32, %c0_i32_0 : i32, i32
  }
  func.func @transform_5(%arg0: i32, %arg1: i32, %arg2: memref<2x1xi32, #tpu.memory_space<smem>>, %arg3: memref<2x1xi32, #tpu.memory_space<smem>>, %arg4: memref<2xi32, #tpu.memory_space<smem>>) -> (i32, i32) {
    %c0_i32 = arith.constant 0 : i32
    %c0_i32_0 = arith.constant 0 : i32
    %c0_i32_1 = arith.constant 0 : i32
    return %c0_i32, %c0_i32_0 : i32, i32
  }
  func.func @transform_6(%arg0: i32, %arg1: i32, %arg2: memref<2x1xi32, #tpu.memory_space<smem>>, %arg3: memref<2x1xi32, #tpu.memory_space<smem>>, %arg4: memref<2xi32, #tpu.memory_space<smem>>) -> (i32, i32) {
    %c0_i32 = arith.constant 0 : i32
    %c0_i32_0 = arith.constant 0 : i32
    %c0_i32_1 = arith.constant 0 : i32
    return %c0_i32, %c0_i32_0 : i32, i32
  }
  func.func @transform_7(%arg0: i32, %arg1: i32, %arg2: memref<2x1xi32, #tpu.memory_space<smem>>, %arg3: memref<2x1xi32, #tpu.memory_space<smem>>, %arg4: memref<2xi32, #tpu.memory_space<smem>>) -> (i32, i32) {
    %c0_i32 = arith.constant 0 : i32
    %c0_i32_0 = arith.constant 0 : i32
    return %arg0, %c0_i32 : i32, i32
  }
}

</mosaic_0001>

<bundles_post_ra>
// kernel: tpu_custom_call.1
= control target key start
LH: loop header
LB: loop body
LE: loop exit
PB: predicated region body
PF: predicated region fallthrough
CT: control target
= control target key end

     0   :  { %s7082_s0 = inlined_call_operand.vmem [shape: s32[2,1], index: 0, kind: input, shape index: {}]   ;;  %s7083_s3 = inlined_call_operand.hbm [shape: bf16[1,512,512], index: 3, kind: input, shape index: {}]   ;;  %s7084_s4 = inlined_call_operand.hbm [shape: bf16[1024,128], index: 4, kind: input, shape index: {}]   ;;  %s7085_s5 = inlined_call_operand.hbm [shape: f32[1024,128], index: 5, kind: input, shape index: {}]   ;;  %s7086_s6 = inlined_call_operand.hbm [shape: bf16[128,128], index: 6, kind: input, shape index: {}]   ;;  %s7087_s7 = inlined_call_operand.vmem [shape: f32[1,128], index: 7, kind: input, shape index: {}]   ;;  %s7088_s8 = inlined_call_operand.vmem [shape: f32[1,128], index: 8, kind: input, shape index: {}]   ;;  %s7089_s9 = inlined_call_operand.vmem [shape: f32[1,128], index: 9, kind: input, shape index: {}]   ;;  %s7090_s10 = inlined_call_operand.hbm [shape: f32[1024,128], index: 10, kind: output, shape index: {}]   ;;  %s7091_s1 = inlined_call_operand.vmem [shape: s32[2,1], index: 1, kind: input, shape index: {}]   ;;  %s7092_s2 = inlined_call_operand.vmem [shape: s32[2], index: 2, kind: input, shape index: {}]  }
   0x1   :  { %7140 = sst [smem:[#allocation47_spill]] %s7083_s3  ;;  %s15_s15 = sshll.u32 %s7082_s0, 4  ;;  %s16_s15 = int_to_ptr.vmem [resolvable:$true] %s15_s15 }
   0x2   :  { %7141 = sst [smem:[#allocation48_spill]] %s7084_s4  ;;  %s19_s18 = sshll.u32 %s7091_s1, 4  ;;  %s20_s18 = int_to_ptr.vmem [resolvable:$true] %s19_s18 }
   0x3   :  { %7142 = sst [smem:[#allocation49_spill]] %s7085_s5  ;;  %s4921_s19 = scalar_lea.vmem %s16_s15, 32 }
   0x4   :  { %7143 = sst [smem:[#allocation50_spill]] %s7086_s6  ;;  %p4922_p0 = scmp.ne.s32.totalorder %s16_s15, %s4921_s19 }
   0x5   :  { %7144 = sst [smem:[#allocation51_spill]] %s7087_s7  ;;  %p4926_p1 = scmp.lt.s32.totalorder %s16_s15, %s16_s15 }
   0x6   :  { %7145 = sst [smem:[#allocation52_spill]] %s7088_s8  ;;  %p4927_p2 = scmp.lt.s32.totalorder %s4921_s19, %s4921_s19 }
   0x7   :  { %7146 = sst [smem:[#allocation53_spill]] %s7089_s9 }
   0x8   :  { %7147 = sst [smem:[#allocation54_spill]] %s7090_s10  ;;  %p4928_p3 = por %p4927_p2, %p4926_p1 }
   0xa   :  { %p4929_p4 = pnand %p4928_p3, %p4922_p0 }
   0xc   :  { %4932 = shalt.err (!%p4929_p4)  }
   0xd   :  { %s5221_s20 = smov [#allocation4]   ;;  %s4933_s21 = scalar_lea.vmem %s20_s18, 32 }
   0xe   :  { %18 = dma.vmem_to_smem %s16_s15, 32, %s5221_s20, [#allocation3] }
   0xf   :  { %p4934_p5 = scmp.ne.s32.totalorder %s20_s18, %s4933_s21  ;;  %p4938_p6 = scmp.lt.s32.totalorder %s20_s18, %s20_s18 }
  0x10   :  { %p4939_p7 = scmp.lt.s32.totalorder %s4933_s21, %s4933_s21 }
  0x12   :  { %p4940_p8 = por %p4939_p7, %p4938_p6 }
  0x14   :  { %p4941_p9 = pnand %p4940_p8, %p4934_p5 }
  0x16   :  { %4944 = shalt.err (!%p4941_p9)  }
  0x17   :  { %s5222_s0 = smov [#allocation5]   ;;  %s23_s23 = sshll.u32 %s7092_s2, 4  ;;  %s24_s23 = int_to_ptr.vmem [resolvable:$true] %s23_s23 }
  0x18   :  { %22 = dma.vmem_to_smem %s20_s18, 32, %s5222_s0, [#allocation3] }
  0x19   :  { %s4945_s24 = scalar_lea.vmem %s24_s23, 16  ;;  %p4950_p11 = scmp.lt.s32.totalorder %s24_s23, %s24_s23 }
  0x1a   :  { %p4946_p10 = scmp.ne.s32.totalorder %s24_s23, %s4945_s24  ;;  %p4951_p12 = scmp.lt.s32.totalorder %s4945_s24, %s4945_s24 }
  0x1c   :  { %p4952_p13 = por %p4951_p12, %p4950_p11 }
  0x1e   :  { %p4953_p0 = pnand %p4952_p13, %p4946_p10 }
  0x20   :  { %4956 = shalt.err (!%p4953_p0)  }
  0x21   :  { %s5223_s25 = smov [#allocation6]  }
  0x22   :  { %26 = dma.vmem_to_smem %s24_s23, 16, %s5223_s25, [#allocation3] }
  0x23   :  { %5151 = dma.done.wait [#allocation3], 80 }
  0x24   :  { %5152 = vsyncadd [#allocation3], 4294967216 }
  0x25   :  { %28 = sfence }
  0x26   :  { %29 = vsyncpa [#allocation8], 0 }
  0x27   :  { %31 = vsyncpa [#allocation8 + $0x1], 0 }
  0x28   :  { %32 = vsyncpa [#allocation11], 0 }
  0x29   :  { %34 = vsyncpa [#allocation11 + $0x1], 0 }
  0x2a   :  { %35 = vsyncpa [#allocation14], 0 }
  0x2b   :  { %36 = vsyncpa [#allocation9], 0 }
  0x2c   :  { %38 = vsyncpa [#allocation9 + $0x1], 0  ;;  %s5303_s2 = smov 0   ;;  %s5305_s26 = smov 0  }
  0x2d   :  { %s5307_s27 = smov 0   ;;  %s5309_s28 = smov 0  }
  0x2e   :  { %s5311_s29 = smov 0   ;;  %s5313_s30 = smov 0  }
  0x2f   :  { %s5315_s11 = smov 0   ;;  %s5317_s12 = smov 0  }
  0x30   :  { %s5319_s13 = smov 0   ;;  %s5321_s14 = smov 0  }
  0x31   :  { %s5323_s15 = smov 0   ;;  %s5325_s16 = smov 0  }
  0x32 LB: > { %7148 = sst [smem:[#allocation26_spill]] %s5211_s14  ;;  %s56_s17 = sadd.s32 1, %s5215_s15  ;;  %s5219_s16 = sphi %s5325_s16, %s44_s16   ;;  %s5215_s15 = sphi %s5323_s15, %s7274_s15   ;;  %s5211_s14 = sphi %s5321_s14, %s7273_s14   ;;  %s5207_s13 = sphi %s5319_s13, %s7272_s13   ;;  %s5203_s12 = sphi %s5317_s12, %s7271_s12   ;;  %s5199_s11 = sphi %s5315_s11, %s7270_s11   ;;  %s5195_s30 = sphi %s5313_s30, %s7269_s30   ;;  %s5191_s29 = sphi %s5311_s29, %s7268_s29   ;;  %s5187_s28 = sphi %s5309_s28, %s7267_s28   ;;  %s5183_s27 = sphi %s5307_s27, %s7266_s27   ;;  %s5179_s26 = sphi %s5305_s26, %s7265_s26   ;;  %s5175_s2 = sphi %s5303_s2, %s7264_s2  }
  0x33   : > { %s5365_s18 = sshll.u32 %s5215_s15, 7  ;;  %p58_p1 = scmp.ge.s32.totalorder %s56_s17, 2 }
  0x34   : > { %s5368_s19 = sld [smem:[#allocation5 + %s5365_s18]]  ;;  %p7100_p2 = scmp.eq.s32.totalorder %s5219_s16, 0 }
  0x35   : > { %s109_s20 = sld [smem:[#allocation4 + %s5365_s18]]  ;;  %s7276_s17 = smov (%p58_p1, %s56_s17), 0 }
  0x36   : > { %s121_s21 = sadd.s32 1, %s5195_s30  ;;  %p128_p3 = scmp.ne.s32.totalorder %s5195_s30, %s5191_s29 }
  0x37   : > { %s7093_s0 = sshll.u32 %s7276_s17, 7  ;;  %p134_p4 = scmp.ne.s32.totalorder %s5191_s29, %s5187_s28 }
  0x38   : > { %s117_s1 = sld [smem:[#allocation4 + %s7093_s0]]  ;;  %p5384_p5 = por %p128_p3, %p7100_p2 }
  0x39   : > { %p7099_p7 = scmp.lt.s32.totalorder %s5219_s16, 2  ;;  %s345_s23 = sand.u32 1, %s5219_s16  }
  0x3a   : > { %s347_s24 = sand.u32 1, %s5195_s30   ;;  %s5415_s3 = sadd.s32 4294967295, %s5219_s16  }
  0x3b   : > { %s4076_s25 = sshll.u32 %s347_s24, 8  ;;  %p5396_p8 = pnand %p7099_p7, %p5384_p5 }
  0x3c   : > { %s349_s9 = scalar_lea.vmem [#allocation10], %s4076_s25  ;;  %p4069_p10 = scmp.ge.s32.totalorder %s5219_s16, 1 }
  0x3d   : > { %s364_s8 = sshll.u32 %s349_s9, 4  ;;  %p7101_p11 = scmp.eq.s32.totalorder %s5415_s3, 0  ;;  %s5400_s8 = int_to_ptr.vmem [resolvable:$true] %s364_s8 }
  0x3e   : > { %s118_s10 = ssub.s32 %s109_s20, %s117_s1  ;;  %p281_p13 = scmp.lt.s32.totalorder %s5219_s16, 3 }
  0x3f   : > { %p119_p9 = scmp.eq.s32.totalorder %s118_s10, 0  ;;  %p5426_p0 = por %p134_p4, %p7101_p11 }
  0x40   : > { %s4412_s7 = scalar_select %p5384_p5, [#allocation4], [#allocation17] }
  0x41   : > { %s5405_s14 = scalar_select %p119_p9, %s5195_s30, %s121_s21  }
  0x42   : > { %s4413_s24 = scalar_select %p5384_p5, %s5365_s18, 0 }
  0x43   : > { %s7278_s7 = smov (!%p7099_p7, %s4412_s7), [#allocation19]  ;;  %p5430_p1 = pnand %p4069_p10, %p281_p13 }
  0x44   : > { %s7280_s24 = smov (!%p7099_p7, %s4413_s24), 0  ;;  %s7153_s4 = sld [smem:[#allocation48_spill]] }
  0x45   : > { %s357_s5 = sld [smem:[%s7278_s7 + %s7280_s24]]  ;;  %s5224_s7 = smov [#allocation13]  }
  0x46   : > { %s7151_s9 = scalar_select %p5426_p0, 1, 0 }
  0x47   : > { %s7152_s10 = scalar_select %p5430_p1, 1, 0 }
  0x48   : > { %s293_s20 = sshll.u32 %s5224_s7, 4  ;;  %s5443_s28 = scalar_lea.sflag [#allocation11], %s345_s23  ;;  %s5434_s20 = int_to_ptr.vmem [resolvable:$true] %s293_s20 }
  0x49   : > { %p4959_p5 = pneg %p5396_p8 }
  0x4b   : > { %s4268_s21 = sshll.u32 %s357_s5, 12 }
  0x4c   : > { %s5439_s25 = scalar_lea.hbm %s7153_s4, %s4268_s21  ;;  %s4962_s21 = scalar_lea.hbm %s7153_s4, 8192 }
  0x4d   : > { %s4957_s24 = scalar_lea.hbm %s5439_s25, 4096  ;;  %p4963_p13 = scmp.lt.u32.totalorder %s5439_s25, %s7153_s4 }
  0x4e   : > { %p4958_p4 = scmp.ne.s32.totalorder %s5439_s25, %s4957_s24  ;;  %p4964_p6 = scmp.lt.u32.totalorder %s4962_s21, %s4957_s24 }
  0x4f   : > { %p4966_p7 = scmp.lt.u32.totalorder %s4957_s24, %s5439_s25 }
  0x50   : > { %p4960_p9 = pnand %p4959_p5, %p4958_p4  ;;  %p4965_p12 = por %p4964_p6, %p4963_p13 }
  0x52   : > { %p4961_p10 = pneg %p4960_p9  ;;  %p4967_p2 = por %p4966_p7, %p4965_p12 }
  0x54   : > { %p4968_p3 = pnand %p4967_p2, %p4961_p10 }
  0x56   : > { %4971 = shalt.err (!%p4968_p3)
}
  0x57   : > { %s4972_s23 = scalar_lea.vmem %s5400_s8, 4096  ;;  %s5225_s5 = smov [#allocation10]  }
  0x58   : > { %p4973_p4 = scmp.ne.s32.totalorder %s5400_s8, %s4972_s23  ;;  %s4977_s7 = sshll.u32 %s5225_s5, 4  ;;  %s4978_s7 = int_to_ptr.vmem [resolvable:$false] %s4977_s7 }
  0x59   : > { %s4979_s1 = scalar_lea.vmem %s4978_s7, 8192  ;;  %p4980_p0 = scmp.lt.s32.totalorder %s5400_s8, %s4978_s7 }
  0x5a   : > { %p4975_p9 = pnand %p4973_p4, %p4959_p5  ;;  %p4981_p6 = scmp.lt.s32.totalorder %s4979_s1, %s4972_s23 }
  0x5c   : > { %p4976_p11 = pneg %p4975_p9  ;;  %p4982_p13 = por %p4981_p6, %p4980_p0 }
  0x5e   : > { %p4983_p7 = pnand %p4982_p13, %p4976_p11 }
  0x60   : > { %4986 = shalt.err (!%p4983_p7)
}
  0x61   : > { %s5226_s24 = smov 64   ;;  %s5227_s21 = smov 4  }
  0x62   : > { %4437 = dma.hbm_to_vmem [thread:$0]  (!%p5396_p8), %s5439_s25, 4096, %s5400_s8, %s5443_s28, %s5226_s24, %s5226_s24, %s5227_s21  }
  0x63   : > { %p7154_p2 = scmp.eq.s32.totalorder %s5415_s3, 0  ;;  %p7155_p12 = pneg %p5430_p1 }
  0x64   : > { %s7157_s6 = sld [smem:[#allocation50_spill]] }
  0x65   : > { %p5476_p3 = pnand %p7155_p12, %p7154_p2 }
  0x67   : > { %p4989_p0 = pneg %p5476_p3 }
  0x6a   : > { %s4987_s7 = scalar_lea.hbm %s7157_s6, 1024 }
  0x6b   : > { %p4988_p11 = scmp.ne.s32.totalorder %s7157_s6, %s4987_s7  ;;  %p4994_p10 = scmp.lt.u32.totalorder %s4987_s7, %s7157_s6 }
  0x6d   : > { %p4990_p5 = pnand %p4989_p0, %p4988_p11 }
  0x6f   : > { %p4991_p8 = pneg %p4990_p5 }
  0x71   : > { %p4996_p4 = pnand %p4994_p10, %p4991_p8 }
  0x73   : > { %4999 = shalt.err (!%p4996_p4)
}
  0x74   : > { %s5000_s25 = scalar_lea.vmem %s5434_s20, 1024  ;;  %p5008_p7 = scmp.lt.s32.totalorder %s5434_s20, %s5434_s20 }
  0x75   : > { %p5001_p9 = scmp.ne.s32.totalorder %s5434_s20, %s5000_s25  ;;  %p5009_p2 = scmp.lt.s32.totalorder %s5000_s25, %s5000_s25 }
  0x77   : > { %p5003_p6 = pnand %p5001_p9, %p4989_p0  ;;  %p5010_p12 = por %p5009_p2, %p5008_p7 }
  0x79   : > { %p5004_p13 = pneg %p5003_p6 }
  0x7b   : > { %p5011_p1 = pnand %p5010_p12, %p5004_p13 }
  0x7d   : > { %5014 = shalt.err (!%p5011_p1)
}
  0x7e   : > { %4426 = dma.hbm_to_vmem [thread:$0]  (!%p5476_p3), %s7157_s6, 1024, %s5434_s20, [#allocation14], %s5226_s24, %s5226_s24, %s5227_s21  }
  0x7f   : > { %s7158_s5 = sshll.u32 %s7276_s17, 7  ;;  %s79_s22 = sadd.s32 1, %s5207_s13 }
  0x80   : > { %s75_s7 = sld [smem:[#allocation5 + %s7158_s5]]  ;;  %p86_p1 = scmp.ne.s32.totalorder %s5207_s13, %s5203_s12 }
  0x81   : > { %p92_p11 = scmp.ne.s32.totalorder %s5203_s12, %s5199_s11  ;;  %s316_s1 = sand.u32 1, %s5207_s13  }
  0x82   : > { %p7159_p0 = scmp.eq.s32.totalorder %s5219_s16, 0  ;;  %p7161_p8 = scmp.eq.s32.totalorder %s5415_s3, 0 }
  0x83   : > { %s4072_s24 = sshll.u32 %s316_s1, 10  ;;  %p7163_p10 = scmp.lt.s32.totalorder %s5219_s16, 2 }
  0x84   : > { %p5511_p5 = por %p7159_p0, %p86_p1  ;;  %p5517_p3 = por %p7161_p8, %p92_p11 }
  0x85   : > { %s320_s0 = scalar_lea.vmem [#allocation7], %s4072_s24  ;;  %p7166_p6 = pmov %p7163_p10 }
  0x86   : > { %s7162_s20 = scalar_select %p5517_p3, 1, 0 }
  0x87   : > { %p5525_p4 = pnand %p7163_p10, %p5511_p5  ;;  %s76_s21 = ssub.s32 %s5368_s19, %s75_s7 }
  0x88   : > { %s335_s25 = sshll.u32 %s320_s0, 4  ;;  %p77_p9 = scmp.eq.s32.totalorder %s76_s21, 0  ;;  %s5530_s25 = int_to_ptr.vmem [resolvable:$true] %s335_s25 }
  0x89   : > { %s4409_s4 = scalar_select %p5511_p5, [#allocation5], [#allocation16] }
  0x8a   : > { %s5535_s23 = scalar_select %p77_p9, %s5207_s13, %s79_s22  }
  0x8b   : > { %s7282_s18 = smov (!%p5511_p5, %s5365_s18), 0  ;;  %s7284_s4 = smov (!%p7166_p6, %s4409_s4), [#allocation18] }
  0x8c   : > { %7165 = sst [smem:[#allocation27_spill]] %s5535_s23  ;;  %p7167_p13 = pmov %p7166_p6 }
  0x8d   : > { %s144_s7 = ssub.s32 %s5215_s15, %s7276_s17  ;;  %s147_s24 = sadd.s32 1, %s5183_s27 }
  0x8e   : > { %s7286_s18 = smov (!%p7167_p13, %s7282_s18), 0  ;;  %p5548_p7 = scmp.eq.s32.totalorder %s144_s7, 0 }
  0x8f   : > { %s328_s19 = sld [smem:[%s7284_s4 + %s7286_s18]]  ;;  %p7104_p2 = scmp.ne.s32.totalorder %s5183_s27, %s5179_s26 }
  0x90   : > { %s7169_s6 = sld [smem:[#allocation47_spill]]  ;;  %p7170_p1 = pmov %p7159_p0 }
  0x91   : > { %s5570_s4 = scalar_lea.sflag [#allocation8], %s316_s1  ;;  %p5017_p5 = pneg %p5525_p4 }
  0x92   : > { %p5566_p11 = por %p7104_p2, %p7170_p1 }
  0x94   : > { %s7171_s18 = scalar_select %p5566_p11, 1, 0 }
  0x95   : > { %s4267_s0 = sshll.u32 %s328_s19, 14 }
  0x96   : > { %s5559_s23 = scalar_lea.hbm %s7169_s6, %s4267_s0  ;;  %s5020_s22 = scalar_lea.hbm %s7169_s6, 16384 }
  0x97   : > { %s5015_s7 = scalar_lea.hbm %s5559_s23, 16384  ;;  %p5021_p9 = scmp.lt.u32.totalorder %s5559_s23, %s7169_s6 }
  0x98   : > { %p5016_p0 = scmp.ne.s32.totalorder %s5559_s23, %s5015_s7  ;;  %p5022_p6 = scmp.lt.u32.totalorder %s5020_s22, %s5015_s7 }
  0x99   : > { %p5024_p1 = scmp.lt.u32.totalorder %s5015_s7, %s5559_s23 }
  0x9a   : > { %p5018_p8 = pnand %p5017_p5, %p5016_p0  ;;  %p5023_p13 = por %p5022_p6, %p5021_p9 }
  0x9c   : > { %p5019_p10 = pneg %p5018_p8  ;;  %p5025_p2 = por %p5024_p1, %p5023_p13 }
  0x9e   : > { %p5026_p12 = pnand %p5025_p2, %p5019_p10 }
  0xa0   : > { %5029 = shalt.err (!%p5026_p12)
}
  0xa1   : > { %s5030_s1 = scalar_lea.vmem %s5530_s25, 16384  ;;  %s5228_s19 = smov [#allocation7]  }
  0xa2   : > { %p5031_p0 = scmp.ne.s32.totalorder %s5530_s25, %s5030_s1  ;;  %s5035_s0 = sshll.u32 %s5228_s19, 4  ;;  %s5036_s0 = int_to_ptr.vmem [resolvable:$false] %s5035_s0 }
  0xa3   : > { %s5037_s5 = scalar_lea.vmem %s5036_s0, 32768  ;;  %p5038_p11 = scmp.lt.s32.totalorder %s5530_s25, %s5036_s0 }
  0xa4   : > { %p5033_p8 = pnand %p5031_p0, %p5017_p5  ;;  %p5039_p9 = scmp.lt.s32.totalorder %s5037_s5, %s5030_s1 }
  0xa6   : > { %p5034_p3 = pneg %p5033_p8  ;;  %p5040_p6 = por %p5039_p9, %p5038_p11 }
  0xa8   : > { %p5041_p13 = pnand %p5040_p6, %p5034_p3 }
  0xaa   : > { %5044 = shalt.err (!%p5041_p13)
}
  0xab   : > { %s5229_s7 = smov 256   ;;  %s5230_s22 = smov 16  }
  0xac   : > { %4432 = dma.hbm_to_vmem [thread:$0]  (!%p5525_p4), %s5559_s23, 16384, %s5530_s25, %s5570_s4, %s5229_s7, %s5229_s7, %s5230_s22  }
  0xad   : > { %s5603_s8 = scalar_select %p5548_p7, %s5183_s27, %s147_s24  }
  0xae   : > { %p7172_p3 = scmp.eq.s32.totalorder %s5415_s3, 0  ;;  %p7173_p2 = scmp.ne.s32.totalorder %s5179_s26, %s5175_s2 }
  0xaf   : > { %p7175_p11 = scmp.ne.s32.totalorder %s5183_s27, %s5179_s26  ;;  %p7176_p5 = scmp.eq.s32.totalorder %s5415_s3, 1 }
  0xb0   : > { %p5610_p12 = por %p7173_p2, %p7172_p3  ;;  %s7178_s0 = sadd.s32 4294967294, %s5219_s16  }
  0xb1   : > { %p5619_p10 = por %p7176_p5, %p7175_p11  ;;  %p274_p1 = scmp.eq.s32.totalorder %s7178_s0, 1 }
  0xb2   : > { %s376_s11 = sand.u32 1, %s5183_s27   ;;  %s4269_s23 = sshll.u32 %s5215_s15, 13 }
  0xb3   : > { %s7177_s19 = scalar_select %p5619_p10, 1, 0 }
  0xb4   : > { %s4080_s25 = sshll.u32 %s376_s11, 9  ;;  %p7179_p4 = pmov %p7173_p2 }
  0xb5   : > { %s7181_s5 = sld [smem:[#allocation49_spill]]  ;;  %s378_s22 = scalar_lea.vmem [#allocation12], %s4080_s25 }
  0xb6   : > { %p5630_p7 = por %p274_p1, %p7179_p4  ;;  %s385_s6 = sshll.u32 %s378_s22, 4  ;;  %s5639_s6 = int_to_ptr.vmem [resolvable:$true] %s385_s6 }
  0xb7   : > { %p7182_p0 = scmp.ne.s32.totalorder %s7171_s18, 0  ;;  %p7183_p8 = scmp.lt.s32.totalorder %s5219_s16, 2 }
  0xb8   : > { %s7180_s24 = scalar_select %p5630_p7, 1, 0 }
  0xb9   : > { %p5645_p9 = pnand %p7183_p8, %p7182_p0 }
  0xbb   : > { %s5637_s7 = scalar_lea.hbm %s7181_s5, %s4269_s23  ;;  %p5047_p13 = pneg %p5645_p9 }
  0xbc   : > { %s5045_s11 = scalar_lea.hbm %s5637_s7, 8192  ;;  %s5050_s21 = scalar_lea.hbm %s7181_s5, 16384 }
  0xbd   : > { %p5046_p6 = scmp.ne.s32.totalorder %s5637_s7, %s5045_s11  ;;  %p5051_p11 = scmp.lt.u32.totalorder %s5637_s7, %s7181_s5 }
  0xbe   : > { %p5052_p5 = scmp.lt.u32.totalorder %s5050_s21, %s5045_s11  ;;  %p5054_p4 = scmp.lt.u32.totalorder %s5045_s11, %s5637_s7 }
  0xbf   : > { %p5048_p3 = pnand %p5047_p13, %p5046_p6 }
  0xc0   : > { %p5053_p1 = por %p5052_p5, %p5051_p11 }
  0xc1   : > { %p5049_p2 = pneg %p5048_p3 }
  0xc2   : > { %p5055_p0 = por %p5054_p4, %p5053_p1 }
  0xc4   : > { %p5056_p8 = pnand %p5055_p0, %p5049_p2 }
  0xc6   : > { %5059 = shalt.err (!%p5056_p8)
}
  0xc7   : > { %s5060_s22 = scalar_lea.vmem %s5639_s6, 8192  ;;  %s5231_s25 = smov [#allocation12]  }
  0xc8   : > { %p5061_p6 = scmp.ne.s32.totalorder %s5639_s6, %s5060_s22  ;;  %s5065_s23 = sshll.u32 %s5231_s25, 4  ;;  %s5066_s23 = int_to_ptr.vmem [resolvable:$false] %s5065_s23 }
  0xc9   : > { %s5067_s18 = scalar_lea.vmem %s5066_s23, 16384  ;;  %p5068_p10 = scmp.lt.s32.totalorder %s5639_s6, %s5066_s23 }
  0xca   : > { %p5063_p3 = pnand %p5061_p6, %p5047_p13  ;;  %p5069_p11 = scmp.lt.s32.totalorder %s5067_s18, %s5060_s22 }
  0xcc   : > { %p5064_p7 = pneg %p5063_p3  ;;  %p5070_p5 = por %p5069_p11, %p5068_p10 }
  0xce   : > { %p5071_p1 = pnand %p5070_p5, %p5064_p7 }
  0xd0   : > { %5074 = shalt.err (!%p5071_p1)
}
  0xd1   : > { %s5232_s11 = smov 128   ;;  %s5233_s21 = smov 8  }
  0xd2   : > { %4440 = dma.hbm_to_vmem [thread:$0]  (!%p5645_p9), %s5637_s7, 8192, %s5639_s6, %s5443_s28, %s5232_s11, %s5232_s11, %s5233_s21  }
  0xd3   : > { %p7185_p13 = scmp.ne.s32.totalorder %s7152_s10, 0 }
  0xd5   : > { %397 = sbr.rel (%p7185_p13) target bundleno = 1485 (0x5cd), region = 48 }
  0xdc   : > { %s399_s4 = sand.u32 1, %s5203_s12   ;;  %p7186_p10 = scmp.ne.s32.totalorder %s7162_s20, 0 }
  0xdd   : > { %s4084_s25 = sshll.u32 %s399_s4, 10  ;;  %s400_s23 = scalar_lea.sflag [#allocation8], %s399_s4 }
  0xde   : > { %s5678_s22 = scalar_lea.vmem [#allocation7], %s4084_s25 }
  0xdf   : > { %5154 = dma.done.wait (%p7186_p10), %s400_s23, 16384  }
  0xe0   : > { %5156 = vsyncadd (%p7186_p10), %s400_s23, 4294950912  ;;  %s408_s0 = sand.u32 1, %s5415_s3   ;;  %s410_s6 = sand.u32 1, %s5191_s29  }
  0xe1   : > { %s4085_s28 = sshll.u32 %s410_s6, 8  ;;  %s409_s10 = scalar_lea.sflag [#allocation11], %s408_s0 }
  0xe2   : > { %s5686_s7 = scalar_lea.vmem [#allocation10], %s4085_s28  ;;  %p7187_p7 = scmp.ne.s32.totalorder %s7151_s9, 0 }
  0xe4   : > { %5158 = dma.done.wait (%p7187_p7), %s409_s10, 4096  }
  0xe5   : > { %5160 = vsyncadd (%p7187_p7), %s409_s10, 4294963200  ;;  %s419_s18 = sand.u32 1, %s5179_s26  }
  0xe6   : > { %s5695_s20 = sshll.u32 %s419_s18, 9 }
  0xe7   : > { %s5698_s11 = scalar_lea.vmem [#allocation12], %s5695_s20 }
  0xe8   : > { %5162 = dma.done.wait (%p5610_p12), %s409_s10, 8192  }
  0xe9   : > { %5164 = vsyncadd (%p5610_p12), %s409_s10, 4294959104  ;;  %p7188_p9 = scmp.eq.s32.totalorder %s5415_s3, 0 }
  0xeb   : > { %5166 = dma.done.wait (%p7188_p9), [#allocation14], 1024   ;;  %p7189_p2 = pmov %p7188_p9 }
  0xec   : > { %s7190_s9 = sld [smem:[#allocation26_spill]]  ;;  %v5234_v0 = vmov 0.0   ;;  %s5776_s3 = scalar_lea.vmem [#allocation15], %s5695_s20 }
  0xed   : > { %5168 = vsyncadd (%p7189_p2), [#allocation14], 4294966272  ;;  %490 = vst [vmem:[#allocation2] sm:$0xff] %v5234_v0 }
  0xee   : > { %491 = vst [vmem:[#allocation2 + $0x8] sm:$0xff] %v5234_v0  ;;  %492 = vst [vmem:[#allocation2 + $0x10] sm:$0xff] %v5234_v0 }
  0xef   : > { %493 = vst [vmem:[#allocation2 + $0x18] sm:$0xff] %v5234_v0  ;;  %494 = vst [vmem:[#allocation2 + $0x20] sm:$0xff] %v5234_v0 }
  0xf0   : > { %495 = vst [vmem:[#allocation2 + $0x28] sm:$0xff] %v5234_v0  ;;  %496 = vst [vmem:[#allocation2 + $0x30] sm:$0xff] %v5234_v0 }
  0xf1   : > { %497 = vst [vmem:[#allocation2 + $0x38] sm:$0xff] %v5234_v0  ;;  %498 = vst [vmem:[#allocation2 + $0x40] sm:$0xff] %v5234_v0 }
  0xf2   : > { %s5709_s21 = sld [smem:[#allocation6 + %s7190_s9]]  ;;  %499 = vst [vmem:[#allocation2 + $0x48] sm:$0xff] %v5234_v0  ;;  %500 = vst [vmem:[#allocation2 + $0x50] sm:$0xff] %v5234_v0 }
  0xf3   : > { %501 = vst [vmem:[#allocation2 + $0x58] sm:$0xff] %v5234_v0  ;;  %502 = vst [vmem:[#allocation2 + $0x60] sm:$0xff] %v5234_v0 }
  0xf4   : > { %503 = vst [vmem:[#allocation2 + $0x68] sm:$0xff] %v5234_v0  ;;  %504 = vst [vmem:[#allocation2 + $0x70] sm:$0xff] %v5234_v0 }
  0xf5   : > { %505 = vst [vmem:[#allocation2 + $0x78] sm:$0xff] %v5234_v0  ;;  %506 = vst [vmem:[#allocation2 + $0x80] sm:$0xff] %v5234_v0 }
  0xf6   : > { %507 = vst [vmem:[#allocation2 + $0x88] sm:$0xff] %v5234_v0  ;;  %508 = vst [vmem:[#allocation2 + $0x90] sm:$0xff] %v5234_v0 }
  0xf7   : > { %509 = vst [vmem:[#allocation2 + $0x98] sm:$0xff] %v5234_v0  ;;  %510 = vst [vmem:[#allocation2 + $0xa0] sm:$0xff] %v5234_v0 }
  0xf8   : > { %511 = vst [vmem:[#allocation2 + $0xa8] sm:$0xff] %v5234_v0  ;;  %512 = vst [vmem:[#allocation2 + $0xb0] sm:$0xff] %v5234_v0  ;;  %p4090_p12 = scmp.le.s32.totalorder %s5709_s21, 0 }
  0xf9   : > { %513 = vst [vmem:[#allocation2 + $0xb8] sm:$0xff] %v5234_v0  ;;  %514 = vst [vmem:[#allocation2 + $0xc0] sm:$0xff] %v5234_v0  ;;  %v4559_v1 = vld [vmem:[%s5686_s7] sm:$0xff] (!%p4090_p12)   ;;  %v5235_v2 = vmov (!%p4090_p12), 0   ;;  %v4561_v4 = vld [vmem:[%s5686_s7 + $0x8] sm:$0xff] (!%p4090_p12)  }
  0xfa   : > { %515 = vst [vmem:[#allocation2 + $0xc8] sm:$0xff] %v5234_v0  ;;  %516 = vst [vmem:[#allocation2 + $0xd0] sm:$0xff] %v5234_v0  ;;  %1647 = vmatprep.subr.bf16.mxu0 (!%p4090_p12), %v5235_v2  ;;  %1936 = vmatprep.subr.bf16.mxu1 (!%p4090_p12), %v5235_v2  ;;  %v4560_v3 = vld [vmem:[%s5686_s7 + $0x80] sm:$0xff] (!%p4090_p12)   ;;  %v4562_v5 = vld [vmem:[%s5686_s7 + $0x88] sm:$0xff] (!%p4090_p12)  }
  0xfb   : > { %517 = vst [vmem:[#allocation2 + $0xd8] sm:$0xff] %v5234_v0  ;;  %518 = vst [vmem:[#allocation2 + $0xe0] sm:$0xff] %v5234_v0  ;;  %1648 = vmatpush1.bf16.msra.mxu0 (!%p4090_p12), %v4559_v1  ;;  %1937 = vmatpush1.bf16.msra.mxu1 (!%p4090_p12), %v4560_v3  ;;  %v4563_v6 = vld [vmem:[%s5686_s7 + $0x10] sm:$0xff] (!%p4090_p12)   ;;  %v4565_v8 = vld [vmem:[%s5686_s7 + $0x18] sm:$0xff] (!%p4090_p12)  }
  0xfc   : > { %519 = vst [vmem:[#allocation2 + $0xe8] sm:$0xff] %v5234_v0  ;;  %520 = vst [vmem:[#allocation2 + $0xf0] sm:$0xff] %v5234_v0  ;;  %1649 = vmatprep.subr.bf16.mxu0 (!%p4090_p12), %v5235_v2  ;;  %1938 = vmatprep.subr.bf16.mxu1 (!%p4090_p12), %v5235_v2  ;;  %v4564_v7 = vld [vmem:[%s5686_s7 + $0x90] sm:$0xff] (!%p4090_p12)   ;;  %v4566_v9 = vld [vmem:[%s5686_s7 + $0x98] sm:$0xff] (!%p4090_p12)  }
  0xfd   : > { %521 = vst [vmem:[#allocation2 + $0xf8] sm:$0xff] %v5234_v0  ;;  %522 = vst [vmem:[#allocation2 + $0x100] sm:$0xff] %v5234_v0  ;;  %v4567_v10 = vld [vmem:[%s5686_s7 + $0x20] sm:$0xff] (!%p4090_p12)   ;;  %v4569_v12 = vld [vmem:[%s5686_s7 + $0x28] sm:$0xff] (!%p4090_p12)  }
  0xfe   : > { %523 = vst [vmem:[#allocation2 + $0x108] sm:$0xff] %v5234_v0  ;;  %524 = vst [vmem:[#allocation2 + $0x110] sm:$0xff] %v5234_v0  ;;  %v4568_v11 = vld [vmem:[%s5686_s7 + $0xa0] sm:$0xff] (!%p4090_p12)   ;;  %v4570_v13 = vld [vmem:[%s5686_s7 + $0xa8] sm:$0xff] (!%p4090_p12)  }
  0xff   : > { %525 = vst [vmem:[#allocation2 + $0x118] sm:$0xff] %v5234_v0  ;;  %526 = vst [vmem:[#allocation2 + $0x120] sm:$0xff] %v5234_v0  ;;  %1650 = vmatpush1.bf16.msra.mxu0 (!%p4090_p12), %v4561_v4  ;;  %1939 = vmatpush1.bf16.msra.mxu1 (!%p4090_p12), %v4562_v5  ;;  %v4571_v14 = vld [vmem:[%s5686_s7 + $0x30] sm:$0xff] (!%p4090_p12)   ;;  %v4573_v16 = vld [vmem:[%s5686_s7 + $0x38] sm:$0xff] (!%p4090_p12)  }
 0x100   : > { %527 = vst [vmem:[#allocation2 + $0x128] sm:$0xff] %v5234_v0  ;;  %528 = vst [vmem:[#allocation2 + $0x130] sm:$0xff] %v5234_v0  ;;  %1651 = vmatprep.subr.bf16.mxu0 (!%p4090_p12), %v5235_v2  ;;  %1940 = vmatprep.subr.bf16.mxu1 (!%p4090_p12), %v5235_v2  ;;  %v4572_v15 = vld [vmem:[%s5686_s7 + $0xb0] sm:$0xff] (!%p4090_p12)   ;;  %v4574_v17 = vld [vmem:[%s5686_s7 + $0xb8] sm:$0xff] (!%p4090_p12)  }
 0x101   : > { %529 = vst [vmem:[#allocation2 + $0x138] sm:$0xff] %v5234_v0  ;;  %530 = vst [vmem:[#allocation2 + $0x140] sm:$0xff] %v5234_v0  ;;  %v4575_v18 = vld [vmem:[%s5686_s7 + $0x40] sm:$0xff] (!%p4090_p12)   ;;  %v4577_v21 = vld [vmem:[%s5686_s7 + $0x48] sm:$0xff] (!%p4090_p12)  }
 0x102   : > { %531 = vst [vmem:[#allocation2 + $0x148] sm:$0xff] %v5234_v0  ;;  %532 = vst [vmem:[#allocation2 + $0x150] sm:$0xff] %v5234_v0  ;;  %v4576_v19 = vld [vmem:[%s5686_s7 + $0xc0] sm:$0xff] (!%p4090_p12)   ;;  %v4596_v22 = vld [vmem:[%s5678_s22 + $0xc] ss:$16 sps:$4 sm:$0xff] (!%p4090_p12)  }
 0x103   : > { %533 = vst [vmem:[#allocation2 + $0x158] sm:$0xff] %v5234_v0  ;;  %534 = vst [vmem:[#allocation2 + $0x160] sm:$0xff] %v5234_v0  ;;  %1652 = vmatpush1.bf16.msra.mxu0 (!%p4090_p12), %v4563_v6  ;;  %1941 = vmatpush1.bf16.msra.mxu1 (!%p4090_p12), %v4564_v7  ;;  %v4593_v20 = vld [vmem:[%s5678_s22 + $0x4] ss:$16 sps:$4 sm:$0xff] (!%p4090_p12)   ;;  %v4578_v23 = vld [vmem:[%s5686_s7 + $0xc8] sm:$0xff] (!%p4090_p12)  }
 0x104   : > { %535 = vst [vmem:[#allocation2 + $0x168] sm:$0xff] %v5234_v0  ;;  %536 = vst [vmem:[#allocation2 + $0x170] sm:$0xff] %v5234_v0  ;;  %1653 = vmatprep.subr.bf16.mxu0 (!%p4090_p12), %v5235_v2  ;;  %1942 = vmatprep.subr.bf16.mxu1 (!%p4090_p12), %v5235_v2  ;;  %v4579_v24 = vld [vmem:[%s5686_s7 + $0x50] sm:$0xff] (!%p4090_p12)   ;;  %v4581_v26 = vld [vmem:[%s5686_s7 + $0x58] sm:$0xff] (!%p4090_p12)  }
 0x105   : > { %537 = vst [vmem:[#allocation2 + $0x178] sm:$0xff] %v5234_v0  ;;  %538 = vst [vmem:[#allocation2 + $0x180] sm:$0xff] %v5234_v0  ;;  %1679 = vmatprep.mubr.bf16.mxu0 (!%p4090_p12), %v4593_v20  ;;  %1968 = vmatprep.mubr.bf16.mxu1 (!%p4090_p12), %v4596_v22  ;;  %v4580_v25 = vld [vmem:[%s5686_s7 + $0xd0] sm:$0xff] (!%p4090_p12)   ;;  %v4582_v27 = vld [vmem:[%s5686_s7 + $0xd8] sm:$0xff] (!%p4090_p12)  }
 0x106   : > { %539 = vst [vmem:[#allocation2 + $0x188] sm:$0xff] %v5234_v0  ;;  %540 = vst [vmem:[#allocation2 + $0x190] sm:$0xff] %v5234_v0  ;;  %v4583_v28 = vld [vmem:[%s5686_s7 + $0x60] sm:$0xff] (!%p4090_p12)   ;;  %v4585_v30 = vld [vmem:[%s5686_s7 + $0x68] sm:$0xff] (!%p4090_p12)  }
 0x107   : > { %541 = vst [vmem:[#allocation2 + $0x198] sm:$0xff] %v5234_v0  ;;  %542 = vst [vmem:[#allocation2 + $0x1a0] sm:$0xff] %v5234_v0  ;;  %558 = sbr.rel (%p4090_p12) target bundleno = 781 (0x30d), region = 72  ;;  %1654 = vmatpush1.bf16.msra.mxu0 (!%p4090_p12), %v4565_v8  ;;  %1943 = vmatpush1.bf16.msra.mxu1 (!%p4090_p12), %v4566_v9  ;;  %v4584_v29 = vld [vmem:[%s5686_s7 + $0xe0] sm:$0xff] (!%p4090_p12)   ;;  %v4586_v31 = vld [vmem:[%s5686_s7 + $0xe8] sm:$0xff] (!%p4090_p12)  }
 0x108   : > { %543 = vst [vmem:[#allocation2 + $0x1a8] sm:$0xff] %v5234_v0  ;;  %544 = vst [vmem:[#allocation2 + $0x1b0] sm:$0xff] %v5234_v0  ;;  %1655 = vmatprep.subr.bf16.mxu0 (!%p4090_p12), %v5235_v2  ;;  %1944 = vmatprep.subr.bf16.mxu1 (!%p4090_p12), %v5235_v2  ;;  %v4587_v32 = vld [vmem:[%s5686_s7 + $0x70] sm:$0xff] (!%p4090_p12)   ;;  %v4589_v34 = vld [vmem:[%s5686_s7 + $0x78] sm:$0xff] (!%p4090_p12)  }
 0x109   : > { %545 = vst [vmem:[#allocation2 + $0x1b8] sm:$0xff] %v5234_v0  ;;  %546 = vst [vmem:[#allocation2 + $0x1c0] sm:$0xff] %v5234_v0  ;;  %v4588_v33 = vld [vmem:[%s5686_s7 + $0xf0] sm:$0xff] (!%p4090_p12)   ;;  %v4590_v35 = vld [vmem:[%s5686_s7 + $0xf8] sm:$0xff] (!%p4090_p12)  }
 0x10a   : > { %547 = vst [vmem:[#allocation2 + $0x1c8] sm:$0xff] %v5234_v0  ;;  %548 = vst [vmem:[#allocation2 + $0x1d0] sm:$0xff] %v5234_v0  ;;  %v4591_v36 = vld [vmem:[%s5678_s22] ss:$16 sps:$4 sm:$0xff] (!%p4090_p12)   ;;  %v4594_v37 = vld [vmem:[%s5678_s22 + $0x8] ss:$16 sps:$4 sm:$0xff] (!%p4090_p12)  }
 0x10b   : > { %549 = vst [vmem:[#allocation2 + $0x1d8] sm:$0xff] %v5234_v0  ;;  %550 = vst [vmem:[#allocation2 + $0x1e0] sm:$0xff] %v5234_v0  ;;  %1656 = vmatpush1.bf16.msra.mxu0 (!%p4090_p12), %v4567_v10  ;;  %1945 = vmatpush1.bf16.msra.mxu1 (!%p4090_p12), %v4568_v11  ;;  %v4597_v38 = vld [vmem:[%s5678_s22 + $0x24] ss:$16 sps:$4 sm:$0xff] (!%p4090_p12)   ;;  %v4599_v39 = vld [vmem:[%s5678_s22 + $0x2c] ss:$16 sps:$4 sm:$0xff] (!%p4090_p12)  }
 0x10c   : > { %551 = vst [vmem:[#allocation2 + $0x1e8] sm:$0xff] %v5234_v0  ;;  %552 = vst [vmem:[#allocation2 + $0x1f0] sm:$0xff] %v5234_v0  ;;  %1657 = vmatprep.subr.bf16.mxu0 (!%p4090_p12), %v5235_v2  ;;  %1946 = vmatprep.subr.bf16.mxu1 (!%p4090_p12), %v5235_v2  ;;  %v4601_v40 = vld [vmem:[%s5678_s22 + $0x20] ss:$16 sps:$4 sm:$0xff] (!%p4090_p12)   ;;  %v4602_v41 = vld [vmem:[%s5678_s22 + $0x28] ss:$16 sps:$4 sm:$0xff] (!%p4090_p12)  }
 0x10d   : > { %553 = vst [vmem:[#allocation2 + $0x1f8] sm:$0xff] %v5234_v0  ;;  %v4603_v42 = vld [vmem:[%s5678_s22 + $0x44] ss:$16 sps:$4 sm:$0xff] (!%p4090_p12)   ;;  %v4605_v43 = vld [vmem:[%s5678_s22 + $0x4c] ss:$16 sps:$4 sm:$0xff] (!%p4090_p12)  }
 0x10e   : > { %v4607_v44 = vld [vmem:[%s5678_s22 + $0x40] ss:$16 sps:$4 sm:$0xff]   ;;  %v4608_v45 = vld [vmem:[%s5678_s22 + $0x48] ss:$16 sps:$4 sm:$0xff]   ;;  %v4609_v46 = vld [vmem:[%s5678_s22 + $0x64] ss:$16 sps:$4 sm:$0xff]  }
 0x10f   : > { %1658 = vmatpush1.bf16.msra.mxu0 %v4569_v12  ;;  %1947 = vmatpush1.bf16.msra.mxu1 %v4570_v13  ;;  %v4611_v47 = vld [vmem:[%s5678_s22 + $0x6c] ss:$16 sps:$4 sm:$0xff]   ;;  %v4613_v48 = vld [vmem:[%s5678_s22 + $0x60] ss:$16 sps:$4 sm:$0xff]   ;;  %v4614_v49 = vld [vmem:[%s5678_s22 + $0x68] ss:$16 sps:$4 sm:$0xff]  }
 0x110   : > { %1659 = vmatprep.subr.bf16.mxu0 %v5235_v2  ;;  %1948 = vmatprep.subr.bf16.mxu1 %v5235_v2  ;;  %v4615_v50 = vld [vmem:[%s5678_s22 + $0x84] ss:$16 sps:$4 sm:$0xff]   ;;  %v4617_v51 = vld [vmem:[%s5678_s22 + $0x8c] ss:$16 sps:$4 sm:$0xff]   ;;  %v4619_v52 = vld [vmem:[%s5678_s22 + $0x80] ss:$16 sps:$4 sm:$0xff]  }
 0x111   : > { %v4620_v53 = vld [vmem:[%s5678_s22 + $0x88] ss:$16 sps:$4 sm:$0xff]   ;;  %v4621_v54 = vld [vmem:[%s5678_s22 + $0xa4] ss:$16 sps:$4 sm:$0xff]   ;;  %v4623_v55 = vld [vmem:[%s5678_s22 + $0xac] ss:$16 sps:$4 sm:$0xff]  }
 0x112   : > { %v4625_v56 = vld [vmem:[%s5678_s22 + $0xa0] ss:$16 sps:$4 sm:$0xff]   ;;  %v4626_v57 = vld [vmem:[%s5678_s22 + $0xa8] ss:$16 sps:$4 sm:$0xff]   ;;  %v4627_v58 = vld [vmem:[%s5678_s22 + $0xc4] ss:$16 sps:$4 sm:$0xff]  }
 0x113   : > { %1660 = vmatpush1.bf16.msra.mxu0 %v4571_v14  ;;  %1949 = vmatpush1.bf16.msra.mxu1 %v4572_v15  ;;  %v4629_v59 = vld [vmem:[%s5678_s22 + $0xcc] ss:$16 sps:$4 sm:$0xff]   ;;  %v4631_v60 = vld [vmem:[%s5678_s22 + $0xc0] ss:$16 sps:$4 sm:$0xff]   ;;  %v4632_v61 = vld [vmem:[%s5678_s22 + $0xc8] ss:$16 sps:$4 sm:$0xff]  }
 0x114   : > { %1661 = vmatprep.subr.bf16.mxu0 %v5235_v2  ;;  %1950 = vmatprep.subr.bf16.mxu1 %v5235_v2  ;;  %v4633_v62 = vld [vmem:[%s5678_s22 + $0xe4] ss:$16 sps:$4 sm:$0xff]   ;;  %v4635_v63 = vld [vmem:[%s5678_s22 + $0xec] ss:$16 sps:$4 sm:$0xff]   ;;  %v4637_v0 = vld [vmem:[%s5678_s22 + $0xe0] ss:$16 sps:$4 sm:$0xff]  }
 0x115   : > { %v4638_v1 = vld [vmem:[%s5678_s22 + $0xe8] ss:$16 sps:$4 sm:$0xff]   ;;  %v4641_v3 = vld [vmem:[%s5678_s22 + $0x10c] ss:$16 sps:$4 sm:$0xff]   ;;  %v4643_v4 = vld [vmem:[%s5678_s22 + $0x100] ss:$16 sps:$4 sm:$0xff]  }
 0x116   : > { %v4644_v5 = vld [vmem:[%s5678_s22 + $0x108] ss:$16 sps:$4 sm:$0xff]   ;;  %v4645_v6 = vld [vmem:[%s5678_s22 + $0x124] ss:$16 sps:$4 sm:$0xff]   ;;  %v4647_v7 = vld [vmem:[%s5678_s22 + $0x12c] ss:$16 sps:$4 sm:$0xff]  }
 0x117   : > { %1662 = vmatpush1.bf16.msra.mxu0 %v4573_v16  ;;  %1951 = vmatpush1.bf16.msra.mxu1 %v4574_v17  ;;  %v4649_v8 = vld [vmem:[%s5678_s22 + $0x120] ss:$16 sps:$4 sm:$0xff]   ;;  %v4650_v9 = vld [vmem:[%s5678_s22 + $0x128] ss:$16 sps:$4 sm:$0xff]   ;;  %v4651_v10 = vld [vmem:[%s5678_s22 + $0x144] ss:$16 sps:$4 sm:$0xff]  }
 0x118   : > { %1663 = vmatprep.subr.bf16.mxu0 %v5235_v2  ;;  %1952 = vmatprep.subr.bf16.mxu1 %v5235_v2  ;;  %v4653_v11 = vld [vmem:[%s5678_s22 + $0x14c] ss:$16 sps:$4 sm:$0xff]   ;;  %v4655_v12 = vld [vmem:[%s5678_s22 + $0x140] ss:$16 sps:$4 sm:$0xff]   ;;  %v4656_v13 = vld [vmem:[%s5678_s22 + $0x148] ss:$16 sps:$4 sm:$0xff]  }
 0x119   : > { %v4657_v14 = vld [vmem:[%s5678_s22 + $0x164] ss:$16 sps:$4 sm:$0xff]   ;;  %v4659_v15 = vld [vmem:[%s5678_s22 + $0x16c] ss:$16 sps:$4 sm:$0xff]   ;;  %v4661_v16 = vld [vmem:[%s5678_s22 + $0x160] ss:$16 sps:$4 sm:$0xff]  }
 0x11a   : > { %v4662_v17 = vld [vmem:[%s5678_s22 + $0x168] ss:$16 sps:$4 sm:$0xff]   ;;  %v4667_v20 = vld [vmem:[%s5678_s22 + $0x180] ss:$16 sps:$4 sm:$0xff]   ;;  %v4669_v22 = vld [vmem:[%s5678_s22 + $0x1a4] ss:$16 sps:$4 sm:$0xff]  }
 0x11b   : > { %1664 = vmatpush1.bf16.msra.mxu0 %v4575_v18  ;;  %1953 = vmatpush1.bf16.msra.mxu1 %v4576_v19  ;;  %v4663_v18 = vld [vmem:[%s5678_s22 + $0x184] ss:$16 sps:$4 sm:$0xff]   ;;  %v4665_v19 = vld [vmem:[%s5678_s22 + $0x18c] ss:$16 sps:$4 sm:$0xff]  }
 0x11c   : > { %1665 = vmatprep.subr.bf16.mxu0 %v5235_v2  ;;  %1954 = vmatprep.subr.bf16.mxu1 %v5235_v2 }
 0x11f   : > { %1666 = vmatpush1.bf16.msra.mxu0 %v4577_v21  ;;  %1955 = vmatpush1.bf16.msra.mxu1 %v4578_v23  ;;  %v4668_v21 = vld [vmem:[%s5678_s22 + $0x188] ss:$16 sps:$4 sm:$0xff]   ;;  %v4671_v23 = vld [vmem:[%s5678_s22 + $0x1ac] ss:$16 sps:$4 sm:$0xff]  }
 0x120   : > { %1667 = vmatprep.subr.bf16.mxu0 %v5235_v2  ;;  %1956 = vmatprep.subr.bf16.mxu1 %v5235_v2 }
 0x123   : > { %1668 = vmatpush1.bf16.msra.mxu0 %v4579_v24  ;;  %1957 = vmatpush1.bf16.msra.mxu1 %v4580_v25  ;;  %v4673_v24 = vld [vmem:[%s5678_s22 + $0x1a0] ss:$16 sps:$4 sm:$0xff]   ;;  %v4674_v25 = vld [vmem:[%s5678_s22 + $0x1a8] ss:$16 sps:$4 sm:$0xff]  }
 0x124   : > { %1669 = vmatprep.subr.bf16.mxu0 %v5235_v2  ;;  %1958 = vmatprep.subr.bf16.mxu1 %v5235_v2 }
 0x127   : > { %1670 = vmatpush1.bf16.msra.mxu0 %v4581_v26  ;;  %1959 = vmatpush1.bf16.msra.mxu1 %v4582_v27  ;;  %v4675_v26 = vld [vmem:[%s5678_s22 + $0x1c4] ss:$16 sps:$4 sm:$0xff]   ;;  %v4677_v27 = vld [vmem:[%s5678_s22 + $0x1cc] ss:$16 sps:$4 sm:$0xff]  }
 0x128   : > { %1671 = vmatprep.subr.bf16.mxu0 %v5235_v2  ;;  %1960 = vmatprep.subr.bf16.mxu1 %v5235_v2 }
 0x12b   : > { %1672 = vmatpush1.bf16.msra.mxu0 %v4583_v28  ;;  %1961 = vmatpush1.bf16.msra.mxu1 %v4584_v29  ;;  %v4679_v28 = vld [vmem:[%s5678_s22 + $0x1c0] ss:$16 sps:$4 sm:$0xff]   ;;  %v4680_v29 = vld [vmem:[%s5678_s22 + $0x1c8] ss:$16 sps:$4 sm:$0xff]  }
 0x12c   : > { %1673 = vmatprep.subr.bf16.mxu0 %v5235_v2  ;;  %1962 = vmatprep.subr.bf16.mxu1 %v5235_v2 }
 0x12f   : > { %1674 = vmatpush1.bf16.msra.mxu0 %v4585_v30  ;;  %1963 = vmatpush1.bf16.msra.mxu1 %v4586_v31  ;;  %v4681_v30 = vld [vmem:[%s5678_s22 + $0x1e4] ss:$16 sps:$4 sm:$0xff]   ;;  %v4683_v31 = vld [vmem:[%s5678_s22 + $0x1ec] ss:$16 sps:$4 sm:$0xff]  }
 0x130   : > { %1675 = vmatprep.subr.bf16.mxu0 %v5235_v2  ;;  %1964 = vmatprep.subr.bf16.mxu1 %v5235_v2 }
 0x133   : > { %1676 = vmatpush1.bf16.msra.mxu0 %v4587_v32  ;;  %1965 = vmatpush1.bf16.msra.mxu1 %v4588_v33  ;;  %v4685_v32 = vld [vmem:[%s5678_s22 + $0x1e0] ss:$16 sps:$4 sm:$0xff]   ;;  %v4686_v33 = vld [vmem:[%s5678_s22 + $0x1e8] ss:$16 sps:$4 sm:$0xff]  }
 0x134   : > { %1677 = vmatprep.subr.bf16.mxu0 %v5235_v2  ;;  %1966 = vmatprep.subr.bf16.mxu1 %v5235_v2  ;;  %v4639_v2 = vld [vmem:[%s5678_s22 + $0x104] ss:$16 sps:$4 sm:$0xff]  }
 0x137   : > { %1678 = vmatpush1.bf16.msra.mxu0 %v4589_v34  ;;  %1967 = vmatpush1.bf16.msra.mxu1 %v4590_v35  ;;  %v4687_v34 = vld [vmem:[%s5678_s22 + $0x204] ss:$16 sps:$4 sm:$0xff]   ;;  %v4689_v35 = vld [vmem:[%s5678_s22 + $0x20c] ss:$16 sps:$4 sm:$0xff]  }
 0x13a   : > { %1680 = vmatmul.mubr.bf16.vlgmr.msra.gmra.mrb[0].mxu0 %v4591_v36  ;;  %1969 = vmatmul.mubr.bf16.vlgmr.msra.gmra.mrb[0].mxu1 %v4594_v37  ;;  %v4691_v36 = vld [vmem:[%s5678_s22 + $0x200] ss:$16 sps:$4 sm:$0xff]   ;;  %v4692_v37 = vld [vmem:[%s5678_s22 + $0x208] ss:$16 sps:$4 sm:$0xff]  }
 0x13b   : > { %1687 = vmatprep.mubr.bf16.mxu0 %v4597_v38  ;;  %1976 = vmatprep.mubr.bf16.mxu1 %v4599_v39  ;;  %v4693_v38 = vld [vmem:[%s5678_s22 + $0x224] ss:$16 sps:$4 sm:$0xff]   ;;  %v4695_v39 = vld [vmem:[%s5678_s22 + $0x22c] ss:$16 sps:$4 sm:$0xff]  }
 0x142   : > { %1688 = vmatmul.mubr.bf16.gmra.mrb[4].mxu0 %v4601_v40  ;;  %1977 = vmatmul.mubr.bf16.gmra.mrb[4].mxu1 %v4602_v41  ;;  %v4697_v40 = vld [vmem:[%s5678_s22 + $0x220] ss:$16 sps:$4 sm:$0xff]   ;;  %v4698_v41 = vld [vmem:[%s5678_s22 + $0x228] ss:$16 sps:$4 sm:$0xff]  }
 0x143   : > { %1695 = vmatprep.mubr.bf16.mxu0 %v4603_v42  ;;  %1984 = vmatprep.mubr.bf16.mxu1 %v4605_v43  ;;  %v4699_v42 = vld [vmem:[%s5678_s22 + $0x244] ss:$16 sps:$4 sm:$0xff]   ;;  %v4701_v43 = vld [vmem:[%s5678_s22 + $0x24c] ss:$16 sps:$4 sm:$0xff]  }
 0x14a   : > { %1696 = vmatmul.mubr.bf16.gmra.mrb[8].mxu0 %v4607_v44  ;;  %1985 = vmatmul.mubr.bf16.gmra.mrb[8].mxu1 %v4608_v45  ;;  %v4703_v44 = vld [vmem:[%s5678_s22 + $0x240] ss:$16 sps:$4 sm:$0xff]   ;;  %v4704_v45 = vld [vmem:[%s5678_s22 + $0x248] ss:$16 sps:$4 sm:$0xff]  }
 0x14b   : > { %1703 = vmatprep.mubr.bf16.mxu0 %v4609_v46  ;;  %1992 = vmatprep.mubr.bf16.mxu1 %v4611_v47  ;;  %v4705_v46 = vld [vmem:[%s5678_s22 + $0x264] ss:$16 sps:$4 sm:$0xff]   ;;  %v4707_v47 = vld [vmem:[%s5678_s22 + $0x26c] ss:$16 sps:$4 sm:$0xff]  }
 0x152   : > { %1704 = vmatmul.mubr.bf16.gmra.mrb[12].mxu0 %v4613_v48  ;;  %1993 = vmatmul.mubr.bf16.gmra.mrb[12].mxu1 %v4614_v49  ;;  %v4709_v48 = vld [vmem:[%s5678_s22 + $0x260] ss:$16 sps:$4 sm:$0xff]   ;;  %v4710_v49 = vld [vmem:[%s5678_s22 + $0x268] ss:$16 sps:$4 sm:$0xff]  }
 0x153   : > { %1711 = vmatprep.mubr.bf16.mxu0 %v4615_v50  ;;  %2000 = vmatprep.mubr.bf16.mxu1 %v4617_v51  ;;  %v4711_v50 = vld [vmem:[%s5678_s22 + $0x284] ss:$16 sps:$4 sm:$0xff]   ;;  %v4713_v51 = vld [vmem:[%s5678_s22 + $0x28c] ss:$16 sps:$4 sm:$0xff]  }
 0x15a   : > { %1712 = vmatmul.mubr.bf16.gmra.mrb[16].mxu0 %v4619_v52  ;;  %2001 = vmatmul.mubr.bf16.gmra.mrb[16].mxu1 %v4620_v53  ;;  %v4715_v52 = vld [vmem:[%s5678_s22 + $0x280] ss:$16 sps:$4 sm:$0xff]   ;;  %v4716_v53 = vld [vmem:[%s5678_s22 + $0x288] ss:$16 sps:$4 sm:$0xff]  }
 0x15b   : > { %1719 = vmatprep.mubr.bf16.mxu0 %v4621_v54  ;;  %2008 = vmatprep.mubr.bf16.mxu1 %v4623_v55  ;;  %v4717_v54 = vld [vmem:[%s5678_s22 + $0x2a4] ss:$16 sps:$4 sm:$0xff]   ;;  %v4719_v55 = vld [vmem:[%s5678_s22 + $0x2ac] ss:$16 sps:$4 sm:$0xff]  }
 0x162   : > { %1720 = vmatmul.mubr.bf16.gmra.mrb[20].mxu0 %v4625_v56  ;;  %2009 = vmatmul.mubr.bf16.gmra.mrb[20].mxu1 %v4626_v57  ;;  %v4721_v56 = vld [vmem:[%s5678_s22 + $0x2a0] ss:$16 sps:$4 sm:$0xff]   ;;  %v4722_v57 = vld [vmem:[%s5678_s22 + $0x2a8] ss:$16 sps:$4 sm:$0xff]  }
 0x163   : > { %1727 = vmatprep.mubr.bf16.mxu0 %v4627_v58  ;;  %2016 = vmatprep.mubr.bf16.mxu1 %v4629_v59  ;;  %v4723_v58 = vld [vmem:[%s5678_s22 + $0x2c4] ss:$16 sps:$4 sm:$0xff]   ;;  %v4725_v59 = vld [vmem:[%s5678_s22 + $0x2cc] ss:$16 sps:$4 sm:$0xff]  }
 0x16a   : > { %1728 = vmatmul.mubr.bf16.gmra.mrb[24].mxu0 %v4631_v60  ;;  %2017 = vmatmul.mubr.bf16.gmra.mrb[24].mxu1 %v4632_v61  ;;  %v4727_v60 = vld [vmem:[%s5678_s22 + $0x2c0] ss:$16 sps:$4 sm:$0xff]   ;;  %v4728_v61 = vld [vmem:[%s5678_s22 + $0x2c8] ss:$16 sps:$4 sm:$0xff]  }
 0x16b   : > { %1735 = vmatprep.mubr.bf16.mxu0 %v4633_v62  ;;  %2024 = vmatprep.mubr.bf16.mxu1 %v4635_v63  ;;  %v4729_v62 = vld [vmem:[%s5678_s22 + $0x2e4] ss:$16 sps:$4 sm:$0xff]   ;;  %v4731_v63 = vld [vmem:[%s5678_s22 + $0x2ec] ss:$16 sps:$4 sm:$0xff]  }
 0x172   : > { %1736 = vmatmul.mubr.bf16.gmra.mrb[28].mxu0 %v4637_v0  ;;  %2025 = vmatmul.mubr.bf16.gmra.mrb[28].mxu1 %v4638_v1  ;;  %v4733_v0 = vld [vmem:[%s5678_s22 + $0x2e0] ss:$16 sps:$4 sm:$0xff]   ;;  %v4734_v1 = vld [vmem:[%s5678_s22 + $0x2e8] ss:$16 sps:$4 sm:$0xff]  }
 0x173   : > { %1743 = vmatprep.mubr.bf16.mxu0 %v4639_v2  ;;  %2032 = vmatprep.mubr.bf16.mxu1 %v4641_v3  ;;  %v4735_v2 = vld [vmem:[%s5678_s22 + $0x304] ss:$16 sps:$4 sm:$0xff]   ;;  %v4737_v3 = vld [vmem:[%s5678_s22 + $0x30c] ss:$16 sps:$4 sm:$0xff]  }
 0x17a   : > { %1744 = vmatmul.mubr.bf16.gmra.mrb[32].mxu0 %v4643_v4  ;;  %2033 = vmatmul.mubr.bf16.gmra.mrb[32].mxu1 %v4644_v5  ;;  %v4739_v4 = vld [vmem:[%s5678_s22 + $0x300] ss:$16 sps:$4 sm:$0xff]   ;;  %v4740_v5 = vld [vmem:[%s5678_s22 + $0x308] ss:$16 sps:$4 sm:$0xff]  }
 0x17b   : > { %1751 = vmatprep.mubr.bf16.mxu0 %v4645_v6  ;;  %2040 = vmatprep.mubr.bf16.mxu1 %v4647_v7  ;;  %v4741_v6 = vld [vmem:[%s5678_s22 + $0x324] ss:$16 sps:$4 sm:$0xff]   ;;  %v4743_v7 = vld [vmem:[%s5678_s22 + $0x32c] ss:$16 sps:$4 sm:$0xff]  }
 0x182   : > { %1752 = vmatmul.mubr.bf16.gmra.mrb[36].mxu0 %v4649_v8  ;;  %2041 = vmatmul.mubr.bf16.gmra.mrb[36].mxu1 %v4650_v9  ;;  %v4745_v8 = vld [vmem:[%s5678_s22 + $0x320] ss:$16 sps:$4 sm:$0xff]   ;;  %v4746_v9 = vld [vmem:[%s5678_s22 + $0x328] ss:$16 sps:$4 sm:$0xff]  }
 0x183   : > { %1759 = vmatprep.mubr.bf16.mxu0 %v4651_v10  ;;  %2048 = vmatprep.mubr.bf16.mxu1 %v4653_v11  ;;  %v4747_v10 = vld [vmem:[%s5678_s22 + $0x344] ss:$16 sps:$4 sm:$0xff]   ;;  %v4749_v11 = vld [vmem:[%s5678_s22 + $0x34c] ss:$16 sps:$4 sm:$0xff]  }
 0x18a   : > { %1760 = vmatmul.mubr.bf16.gmra.mrb[40].mxu0 %v4655_v12  ;;  %2049 = vmatmul.mubr.bf16.gmra.mrb[40].mxu1 %v4656_v13  ;;  %v4751_v12 = vld [vmem:[%s5678_s22 + $0x340] ss:$16 sps:$4 sm:$0xff]   ;;  %v4752_v13 = vld [vmem:[%s5678_s22 + $0x348] ss:$16 sps:$4 sm:$0xff]  }
 0x18b   : > { %1767 = vmatprep.mubr.bf16.mxu0 %v4657_v14  ;;  %2056 = vmatprep.mubr.bf16.mxu1 %v4659_v15  ;;  %v4753_v14 = vld [vmem:[%s5678_s22 + $0x364] ss:$16 sps:$4 sm:$0xff]   ;;  %v4755_v15 = vld [vmem:[%s5678_s22 + $0x36c] ss:$16 sps:$4 sm:$0xff]  }
 0x192   : > { %1768 = vmatmul.mubr.bf16.gmra.mrb[44].mxu0 %v4661_v16  ;;  %2057 = vmatmul.mubr.bf16.gmra.mrb[44].mxu1 %v4662_v17  ;;  %v559_v17 = vld [vmem:[#allocation2] sm:$0xff] }
 0x193   : > { %1775 = vmatprep.mubr.bf16.mxu0 %v4663_v18  ;;  %2064 = vmatprep.mubr.bf16.mxu1 %v4665_v19 }
 0x19a   : > { %1776 = vmatmul.mubr.bf16.gmra.mrb[48].mxu0 %v4667_v20  ;;  %2065 = vmatmul.mubr.bf16.gmra.mrb[48].mxu1 %v4668_v21  ;;  %v4757_v20 = vld [vmem:[%s5678_s22 + $0x360] ss:$16 sps:$4 sm:$0xff]  }
 0x19b   : > { %1783 = vmatprep.mubr.bf16.mxu0 %v4669_v22  ;;  %2072 = vmatprep.mubr.bf16.mxu1 %v4671_v23 }
 0x1a2   : > { %1784 = vmatmul.mubr.bf16.gmra.mrb[52].mxu0 %v4673_v24  ;;  %2073 = vmatmul.mubr.bf16.gmra.mrb[52].mxu1 %v4674_v25  ;;  %v4758_v24 = vld [vmem:[%s5678_s22 + $0x368] ss:$16 sps:$4 sm:$0xff]   ;;  %v4759_v25 = vld [vmem:[%s5678_s22 + $0x384] ss:$16 sps:$4 sm:$0xff]  }
 0x1a3   : > { %1791 = vmatprep.mubr.bf16.mxu0 %v4675_v26  ;;  %2080 = vmatprep.mubr.bf16.mxu1 %v4677_v27  ;;  %v560_v26 = vld [vmem:[#allocation2 + $0x8] sm:$0xff] }
 0x1aa   : > { %1792 = vmatmul.mubr.bf16.gmra.mrb[56].mxu0 %v4679_v28  ;;  %2081 = vmatmul.mubr.bf16.gmra.mrb[56].mxu1 %v4680_v29  ;;  %v4761_v29 = vld [vmem:[%s5678_s22 + $0x38c] ss:$16 sps:$4 sm:$0xff]  }
 0x1ab   : > { %1799 = vmatprep.mubr.bf16.mxu0 %v4681_v30  ;;  %2088 = vmatprep.mubr.bf16.mxu1 %v4683_v31 }
 0x1b2   : > { %1800 = vmatmul.mubr.bf16.gmra.mrb[60].mxu0 %v4685_v32  ;;  %2089 = vmatmul.mubr.bf16.gmra.mrb[60].mxu1 %v4686_v33 }
 0x1b3   : > { %1807 = vmatprep.mubr.bf16.mxu0 %v4687_v34  ;;  %2096 = vmatprep.mubr.bf16.mxu1 %v4689_v35  ;;  %v561_v35 = vld [vmem:[#allocation2 + $0x10] sm:$0xff] }
 0x1ba   : > { %1808 = vmatmul.mubr.bf16.gmra.mrb[64].mxu0 %v4691_v36  ;;  %2097 = vmatmul.mubr.bf16.gmra.mrb[64].mxu1 %v4692_v37 }
 0x1bb   : > { %1815 = vmatprep.mubr.bf16.mxu0 %v4693_v38  ;;  %2104 = vmatprep.mubr.bf16.mxu1 %v4695_v39  ;;  %v4763_v38 = vld [vmem:[%s5678_s22 + $0x380] ss:$16 sps:$4 sm:$0xff]  }
 0x1c2   : > { %1816 = vmatmul.mubr.bf16.gmra.mrb[68].mxu0 %v4697_v40  ;;  %2105 = vmatmul.mubr.bf16.gmra.mrb[68].mxu1 %v4698_v41 }
 0x1c3   : > { %1823 = vmatprep.mubr.bf16.mxu0 %v4699_v42  ;;  %2112 = vmatprep.mubr.bf16.mxu1 %v4701_v43  ;;  %v4764_v42 = vld [vmem:[%s5678_s22 + $0x388] ss:$16 sps:$4 sm:$0xff]   ;;  %v4765_v43 = vld [vmem:[%s5678_s22 + $0x3a4] ss:$16 sps:$4 sm:$0xff]  }
 0x1ca   : > { %1824 = vmatmul.mubr.bf16.gmra.mrb[72].mxu0 %v4703_v44  ;;  %2113 = vmatmul.mubr.bf16.gmra.mrb[72].mxu1 %v4704_v45  ;;  %v562_v44 = vld [vmem:[#allocation2 + $0x18] sm:$0xff] }
 0x1cb   : > { %1831 = vmatprep.mubr.bf16.mxu0 %v4705_v46  ;;  %2120 = vmatprep.mubr.bf16.mxu1 %v4707_v47  ;;  %v4767_v47 = vld [vmem:[%s5678_s22 + $0x3ac] ss:$16 sps:$4 sm:$0xff]  }
 0x1d2   : > { %1832 = vmatmul.mubr.bf16.gmra.mrb[76].mxu0 %v4709_v48  ;;  %2121 = vmatmul.mubr.bf16.gmra.mrb[76].mxu1 %v4710_v49 }
 0x1d3   : > { %1839 = vmatprep.mubr.bf16.mxu0 %v4711_v50  ;;  %2128 = vmatprep.mubr.bf16.mxu1 %v4713_v51 }
 0x1da   : > { %1840 = vmatmul.mubr.bf16.gmra.mrb[80].mxu0 %v4715_v52  ;;  %2129 = vmatmul.mubr.bf16.gmra.mrb[80].mxu1 %v4716_v53  ;;  %v563_v53 = vld [vmem:[#allocation2 + $0x20] sm:$0xff] }
 0x1db   : > { %1847 = vmatprep.mubr.bf16.mxu0 %v4717_v54  ;;  %2136 = vmatprep.mubr.bf16.mxu1 %v4719_v55 }
 0x1e2   : > { %1848 = vmatmul.mubr.bf16.gmra.mrb[84].mxu0 %v4721_v56  ;;  %2137 = vmatmul.mubr.bf16.gmra.mrb[84].mxu1 %v4722_v57  ;;  %v4769_v56 = vld [vmem:[%s5678_s22 + $0x3a0] ss:$16 sps:$4 sm:$0xff]  }
 0x1e3   : > { %1855 = vmatprep.mubr.bf16.mxu0 %v4723_v58  ;;  %2144 = vmatprep.mubr.bf16.mxu1 %v4725_v59 }
 0x1ea   : > { %1856 = vmatmul.mubr.bf16.gmra.mrb[88].mxu0 %v4727_v60  ;;  %2145 = vmatmul.mubr.bf16.gmra.mrb[88].mxu1 %v4728_v61  ;;  %v4770_v60 = vld [vmem:[%s5678_s22 + $0x3a8] ss:$16 sps:$4 sm:$0xff]   ;;  %v4771_v61 = vld [vmem:[%s5678_s22 + $0x3c4] ss:$16 sps:$4 sm:$0xff]  }
 0x1eb   : > { %1863 = vmatprep.mubr.bf16.mxu0 %v4729_v62  ;;  %2152 = vmatprep.mubr.bf16.mxu1 %v4731_v63  ;;  %v564_v62 = vld [vmem:[#allocation2 + $0x28] sm:$0xff] }
 0x1f2   : > { %1864 = vmatmul.mubr.bf16.gmra.mrb[92].mxu0 %v4733_v0  ;;  %2153 = vmatmul.mubr.bf16.gmra.mrb[92].mxu1 %v4734_v1  ;;  %v4773_v1 = vld [vmem:[%s5678_s22 + $0x3cc] ss:$16 sps:$4 sm:$0xff]  }
 0x1f3   : > { %1871 = vmatprep.mubr.bf16.mxu0 %v4735_v2  ;;  %2160 = vmatprep.mubr.bf16.mxu1 %v4737_v3 }
 0x1fa   : > { %1872 = vmatmul.mubr.bf16.gmra.mrb[96].mxu0 %v4739_v4  ;;  %2161 = vmatmul.mubr.bf16.gmra.mrb[96].mxu1 %v4740_v5 }
 0x1fb   : > { %1879 = vmatprep.mubr.bf16.mxu0 %v4741_v6  ;;  %2168 = vmatprep.mubr.bf16.mxu1 %v4743_v7  ;;  %v565_v7 = vld [vmem:[#allocation2 + $0x30] sm:$0xff] }
 0x202   : > { %1880 = vmatmul.mubr.bf16.gmra.mrb[100].mxu0 %v4745_v8  ;;  %2169 = vmatmul.mubr.bf16.gmra.mrb[100].mxu1 %v4746_v9 }
 0x203   : > { %1887 = vmatprep.mubr.bf16.mxu0 %v4747_v10  ;;  %2176 = vmatprep.mubr.bf16.mxu1 %v4749_v11  ;;  %v4775_v10 = vld [vmem:[%s5678_s22 + $0x3c0] ss:$16 sps:$4 sm:$0xff]  }
 0x20a   : > { %1888 = vmatmul.mubr.bf16.gmra.mrb[104].mxu0 %v4751_v12  ;;  %2177 = vmatmul.mubr.bf16.gmra.mrb[104].mxu1 %v4752_v13 }
 0x20b   : > { %1895 = vmatprep.mubr.bf16.mxu0 %v4753_v14  ;;  %2184 = vmatprep.mubr.bf16.mxu1 %v4755_v15  ;;  %v4776_v14 = vld [vmem:[%s5678_s22 + $0x3c8] ss:$16 sps:$4 sm:$0xff]   ;;  %v4777_v15 = vld [vmem:[%s5678_s22 + $0x3e4] ss:$16 sps:$4 sm:$0xff]  }
 0x20d   : > { %v1681_v16 = vpop.f32.mrb[0].mxu0  ;;  %v1970_v18 = vpop.f32.mrb[0].mxu1 }
 0x20e   : > { %v1683_v19 = vpop.f32.mrb[1].mxu0  ;;  %v1971_v21 = vadd.f32 %v1970_v18, %v1681_v16  ;;  %v1972_v22 = vpop.f32.mrb[1].mxu1  ;;  %v566_v16 = vld [vmem:[#allocation2 + $0x38] sm:$0xff] }
 0x20f   : > { %v1684_v23 = vpop.f32.mrb[2].mxu0  ;;  %v1973_v27 = vpop.f32.mrb[2].mxu1  ;;  %v4779_v19 = vld [vmem:[%s5678_s22 + $0x3ec] ss:$16 sps:$4 sm:$0xff]  }
 0x210   : > { %v1686_v28 = vpop.f32.mrb[3].mxu0  ;;  %v2225_v30 = vadd.f32 %v1971_v21, %v559_v17  ;;  %v1974_v31 = vadd.f32 %v1973_v27, %v1684_v23  ;;  %v1975_v32 = vpop.f32.mrb[3].mxu1 }
 0x211   : > { %v4781_v28 = vld [vmem:[%s5678_s22 + $0x3e0] ss:$16 sps:$4 sm:$0xff]   ;;  %v4782_v32 = vld [vmem:[%s5678_s22 + $0x3e8] ss:$16 sps:$4 sm:$0xff]  }
 0x212   : > { %1896 = vmatmul.mubr.bf16.gmra.mrb[108].mxu0 %v4757_v20  ;;  %2289 = vst [vmem:[#allocation2] sm:$0xff] %v2225_v30  ;;  %v2226_v33 = vadd.f32 %v1974_v31, %v560_v26  ;;  %2185 = vmatmul.mubr.bf16.gmra.mrb[108].mxu1 %v4758_v24 }
 0x213   : > { %1903 = vmatprep.mubr.bf16.mxu0 %v4759_v25  ;;  %2192 = vmatprep.mubr.bf16.mxu1 %v4761_v29  ;;  %v567_v25 = vld [vmem:[#allocation2 + $0x40] sm:$0xff] }
 0x214   : > { %2290 = vst [vmem:[#allocation2 + $0x8] sm:$0xff] %v2226_v33  ;;  %v568_v33 = vld [vmem:[#allocation2 + $0x48] sm:$0xff] }
 0x215   : > { %v1689_v34 = vpop.f32.mrb[4].mxu0  ;;  %v1978_v36 = vpop.f32.mrb[4].mxu1 }
 0x216   : > { %v1691_v37 = vpop.f32.mrb[5].mxu0  ;;  %v1979_v39 = vadd.f32 %v1978_v36, %v1689_v34  ;;  %v1980_v40 = vpop.f32.mrb[5].mxu1 }
 0x217   : > { %v1692_v41 = vpop.f32.mrb[6].mxu0  ;;  %v1981_v45 = vpop.f32.mrb[6].mxu1 }
 0x218   : > { %v1694_v46 = vpop.f32.mrb[7].mxu0  ;;  %v2227_v48 = vadd.f32 %v1979_v39, %v561_v35  ;;  %v1982_v49 = vadd.f32 %v1981_v45, %v1692_v41  ;;  %v1983_v50 = vpop.f32.mrb[7].mxu1  ;;  %v569_v41 = vld [vmem:[#allocation2 + $0x50] sm:$0xff] }
 0x21a   : > { %1904 = vmatmul.mubr.bf16.gmra.mrb[112].mxu0 %v4763_v38  ;;  %2291 = vst [vmem:[#allocation2 + $0x10] sm:$0xff] %v2227_v48  ;;  %v2228_v51 = vadd.f32 %v1982_v49, %v562_v44  ;;  %2193 = vmatmul.mubr.bf16.gmra.mrb[112].mxu1 %v4764_v42 }
 0x21b   : > { %1911 = vmatprep.mubr.bf16.mxu0 %v4765_v43  ;;  %2200 = vmatprep.mubr.bf16.mxu1 %v4767_v47  ;;  %v570_v47 = vld [vmem:[#allocation2 + $0x58] sm:$0xff] }
 0x21c   : > { %2292 = vst [vmem:[#allocation2 + $0x18] sm:$0xff] %v2228_v51 }
 0x21d   : > { %v1697_v52 = vpop.f32.mrb[8].mxu0  ;;  %v1986_v54 = vpop.f32.mrb[8].mxu1 }
 0x21e   : > { %v1699_v55 = vpop.f32.mrb[9].mxu0  ;;  %v1987_v57 = vadd.f32 %v1986_v54, %v1697_v52  ;;  %v1988_v58 = vpop.f32.mrb[9].mxu1 }
 0x21f   : > { %v1700_v59 = vpop.f32.mrb[10].mxu0  ;;  %v1989_v63 = vpop.f32.mrb[10].mxu1  ;;  %v571_v55 = vld [vmem:[#allocation2 + $0x60] sm:$0xff] }
 0x220   : > { %v1702_v0 = vpop.f32.mrb[11].mxu0  ;;  %v2229_v2 = vadd.f32 %v1987_v57, %v563_v53  ;;  %v1990_v3 = vadd.f32 %v1989_v63, %v1700_v59  ;;  %v1991_v4 = vpop.f32.mrb[11].mxu1 }
 0x222   : > { %1912 = vmatmul.mubr.bf16.gmra.mrb[116].mxu0 %v4769_v56  ;;  %2293 = vst [vmem:[#allocation2 + $0x20] sm:$0xff] %v2229_v2  ;;  %v2230_v5 = vadd.f32 %v1990_v3, %v564_v62  ;;  %2201 = vmatmul.mubr.bf16.gmra.mrb[116].mxu1 %v4770_v60 }
 0x223   : > { %1919 = vmatprep.mubr.bf16.mxu0 %v4771_v61  ;;  %2208 = vmatprep.mubr.bf16.mxu1 %v4773_v1  ;;  %v572_v61 = vld [vmem:[#allocation2 + $0x68] sm:$0xff] }
 0x224   : > { %2294 = vst [vmem:[#allocation2 + $0x28] sm:$0xff] %v2230_v5  ;;  %v573_v5 = vld [vmem:[#allocation2 + $0x70] sm:$0xff] }
 0x225   : > { %v1705_v6 = vpop.f32.mrb[12].mxu0  ;;  %v1994_v8 = vpop.f32.mrb[12].mxu1 }
 0x226   : > { %v1707_v9 = vpop.f32.mrb[13].mxu0  ;;  %v1995_v11 = vadd.f32 %v1994_v8, %v1705_v6  ;;  %v1996_v12 = vpop.f32.mrb[13].mxu1 }
 0x227   : > { %v1708_v13 = vpop.f32.mrb[14].mxu0  ;;  %v1997_v17 = vpop.f32.mrb[14].mxu1 }
 0x228   : > { %v1710_v18 = vpop.f32.mrb[15].mxu0  ;;  %v2231_v20 = vadd.f32 %v1995_v11, %v565_v7  ;;  %v1998_v21 = vadd.f32 %v1997_v17, %v1708_v13  ;;  %v1999_v22 = vpop.f32.mrb[15].mxu1  ;;  %v574_v11 = vld [vmem:[#allocation2 + $0x78] sm:$0xff] }
 0x22a   : > { %1920 = vmatmul.mubr.bf16.gmra.mrb[120].mxu0 %v4775_v10  ;;  %2295 = vst [vmem:[#allocation2 + $0x30] sm:$0xff] %v2231_v20  ;;  %v2232_v23 = vadd.f32 %v1998_v21, %v566_v16  ;;  %2209 = vmatmul.mubr.bf16.gmra.mrb[120].mxu1 %v4776_v14 }
 0x22b   : > { %1927 = vmatprep.mubr.bf16.mxu0 %v4777_v15  ;;  %2216 = vmatprep.mubr.bf16.mxu1 %v4779_v19  ;;  %v575_v19 = vld [vmem:[#allocation2 + $0x80] sm:$0xff] }
 0x22c   : > { %2296 = vst [vmem:[#allocation2 + $0x38] sm:$0xff] %v2232_v23 }
 0x22d   : > { %v1713_v24 = vpop.f32.mrb[16].mxu0  ;;  %v2002_v26 = vpop.f32.mrb[16].mxu1 }
 0x22e   : > { %v1715_v27 = vpop.f32.mrb[17].mxu0  ;;  %v2003_v29 = vadd.f32 %v2002_v26, %v1713_v24  ;;  %v2004_v30 = vpop.f32.mrb[17].mxu1 }
 0x22f   : > { %v1716_v31 = vpop.f32.mrb[18].mxu0  ;;  %v2005_v34 = vpop.f32.mrb[18].mxu1 }
 0x230   : > { %v1718_v35 = vpop.f32.mrb[19].mxu0  ;;  %v2233_v36 = vadd.f32 %v2003_v29, %v567_v25  ;;  %v2006_v37 = vadd.f32 %v2005_v34, %v1716_v31  ;;  %v2007_v38 = vpop.f32.mrb[19].mxu1  ;;  %v576_v25 = vld [vmem:[#allocation2 + $0x88] sm:$0xff] }
 0x232   : > { %1928 = vmatmul.mubr.bf16.gmra.mrb[124].mxu0 %v4781_v28  ;;  %2297 = vst [vmem:[#allocation2 + $0x40] sm:$0xff] %v2233_v36  ;;  %v2234_v39 = vadd.f32 %v2006_v37, %v568_v33  ;;  %2217 = vmatmul.mubr.bf16.gmra.mrb[124].mxu1 %v4782_v32  ;;  %v577_v33 = vld [vmem:[#allocation2 + $0x90] sm:$0xff] }
 0x234   : > { %2298 = vst [vmem:[#allocation2 + $0x48] sm:$0xff] %v2234_v39  ;;  %v578_v39 = vld [vmem:[#allocation2 + $0x98] sm:$0xff] }
 0x235   : > { %v1721_v40 = vpop.f32.mrb[20].mxu0  ;;  %v2010_v42 = vpop.f32.mrb[20].mxu1 }
 0x236   : > { %v1723_v43 = vpop.f32.mrb[21].mxu0  ;;  %v2011_v44 = vadd.f32 %v2010_v42, %v1721_v40  ;;  %v2012_v45 = vpop.f32.mrb[21].mxu1 }
 0x237   : > { %v1724_v46 = vpop.f32.mrb[22].mxu0  ;;  %v2013_v48 = vpop.f32.mrb[22].mxu1 }
 0x238   : > { %v1726_v49 = vpop.f32.mrb[23].mxu0  ;;  %v2235_v50 = vadd.f32 %v2011_v44, %v569_v41  ;;  %v2014_v51 = vadd.f32 %v2013_v48, %v1724_v46  ;;  %v2015_v52 = vpop.f32.mrb[23].mxu1 }
 0x23a   : > { %2299 = vst [vmem:[#allocation2 + $0x50] sm:$0xff] %v2235_v50  ;;  %v2236_v53 = vadd.f32 %v2014_v51, %v570_v47  ;;  %v579_v47 = vld [vmem:[#allocation2 + $0xa0] sm:$0xff] }
 0x23c   : > { %2300 = vst [vmem:[#allocation2 + $0x58] sm:$0xff] %v2236_v53  ;;  %v580_v53 = vld [vmem:[#allocation2 + $0xa8] sm:$0xff] }
 0x23d   : > { %v1729_v54 = vpop.f32.mrb[24].mxu0  ;;  %v2018_v56 = vpop.f32.mrb[24].mxu1 }
 0x23e   : > { %v1731_v57 = vpop.f32.mrb[25].mxu0  ;;  %v2019_v58 = vadd.f32 %v2018_v56, %v1729_v54  ;;  %v2020_v59 = vpop.f32.mrb[25].mxu1 }
 0x23f   : > { %v1732_v60 = vpop.f32.mrb[26].mxu0  ;;  %v2021_v62 = vpop.f32.mrb[26].mxu1 }
 0x240   : > { %v1734_v63 = vpop.f32.mrb[27].mxu0  ;;  %v2237_v0 = vadd.f32 %v2019_v58, %v571_v55  ;;  %v2022_v1 = vadd.f32 %v2021_v62, %v1732_v60  ;;  %v2023_v2 = vpop.f32.mrb[27].mxu1 }
 0x242   : > { %2301 = vst [vmem:[#allocation2 + $0x60] sm:$0xff] %v2237_v0  ;;  %v2238_v3 = vadd.f32 %v2022_v1, %v572_v61  ;;  %v581_v61 = vld [vmem:[#allocation2 + $0xb0] sm:$0xff] }
 0x244   : > { %2302 = vst [vmem:[#allocation2 + $0x68] sm:$0xff] %v2238_v3  ;;  %v582_v3 = vld [vmem:[#allocation2 + $0xb8] sm:$0xff] }
 0x245   : > { %v1737_v4 = vpop.f32.mrb[28].mxu0  ;;  %v2026_v6 = vpop.f32.mrb[28].mxu1 }
 0x246   : > { %v1739_v7 = vpop.f32.mrb[29].mxu0  ;;  %v2027_v8 = vadd.f32 %v2026_v6, %v1737_v4  ;;  %v2028_v9 = vpop.f32.mrb[29].mxu1 }
 0x247   : > { %v1740_v10 = vpop.f32.mrb[30].mxu0  ;;  %v2029_v12 = vpop.f32.mrb[30].mxu1 }
 0x248   : > { %v1742_v13 = vpop.f32.mrb[31].mxu0  ;;  %v2239_v14 = vadd.f32 %v2027_v8, %v573_v5  ;;  %v2030_v15 = vadd.f32 %v2029_v12, %v1740_v10  ;;  %v2031_v16 = vpop.f32.mrb[31].mxu1 }
 0x24a   : > { %2303 = vst [vmem:[#allocation2 + $0x70] sm:$0xff] %v2239_v14  ;;  %v2240_v17 = vadd.f32 %v2030_v15, %v574_v11  ;;  %v583_v11 = vld [vmem:[#allocation2 + $0xc0] sm:$0xff] }
 0x24c   : > { %2304 = vst [vmem:[#allocation2 + $0x78] sm:$0xff] %v2240_v17  ;;  %v584_v17 = vld [vmem:[#allocation2 + $0xc8] sm:$0xff] }
 0x24d   : > { %v1745_v18 = vpop.f32.mrb[32].mxu0  ;;  %v2034_v20 = vpop.f32.mrb[32].mxu1 }
 0x24e   : > { %v1747_v21 = vpop.f32.mrb[33].mxu0  ;;  %v2035_v22 = vadd.f32 %v2034_v20, %v1745_v18  ;;  %v2036_v23 = vpop.f32.mrb[33].mxu1 }
 0x24f   : > { %v1748_v24 = vpop.f32.mrb[34].mxu0  ;;  %v2037_v26 = vpop.f32.mrb[34].mxu1 }
 0x250   : > { %v1750_v27 = vpop.f32.mrb[35].mxu0  ;;  %v2241_v28 = vadd.f32 %v2035_v22, %v575_v19  ;;  %v2038_v29 = vadd.f32 %v2037_v26, %v1748_v24  ;;  %v2039_v30 = vpop.f32.mrb[35].mxu1 }
 0x252   : > { %2305 = vst [vmem:[#allocation2 + $0x80] sm:$0xff] %v2241_v28  ;;  %v2242_v31 = vadd.f32 %v2038_v29, %v576_v25  ;;  %v585_v25 = vld [vmem:[#allocation2 + $0xd0] sm:$0xff] }
 0x254   : > { %2306 = vst [vmem:[#allocation2 + $0x88] sm:$0xff] %v2242_v31  ;;  %v586_v31 = vld [vmem:[#allocation2 + $0xd8] sm:$0xff] }
 0x255   : > { %v1753_v32 = vpop.f32.mrb[36].mxu0  ;;  %v2042_v34 = vpop.f32.mrb[36].mxu1 }
 0x256   : > { %v1755_v35 = vpop.f32.mrb[37].mxu0  ;;  %v2043_v36 = vadd.f32 %v2042_v34, %v1753_v32  ;;  %v2044_v37 = vpop.f32.mrb[37].mxu1 }
 0x257   : > { %v1756_v38 = vpop.f32.mrb[38].mxu0  ;;  %v2045_v40 = vpop.f32.mrb[38].mxu1 }
 0x258   : > { %v1758_v41 = vpop.f32.mrb[39].mxu0  ;;  %v2243_v42 = vadd.f32 %v2043_v36, %v577_v33  ;;  %v2046_v43 = vadd.f32 %v2045_v40, %v1756_v38  ;;  %v2047_v44 = vpop.f32.mrb[39].mxu1 }
 0x25a   : > { %2307 = vst [vmem:[#allocation2 + $0x90] sm:$0xff] %v2243_v42  ;;  %v2244_v45 = vadd.f32 %v2046_v43, %v578_v39  ;;  %v587_v39 = vld [vmem:[#allocation2 + $0xe0] sm:$0xff] }
 0x25c   : > { %2308 = vst [vmem:[#allocation2 + $0x98] sm:$0xff] %v2244_v45  ;;  %v588_v45 = vld [vmem:[#allocation2 + $0xe8] sm:$0xff] }
 0x25d   : > { %v1761_v46 = vpop.f32.mrb[40].mxu0  ;;  %v2050_v48 = vpop.f32.mrb[40].mxu1 }
 0x25e   : > { %v1763_v49 = vpop.f32.mrb[41].mxu0  ;;  %v2051_v50 = vadd.f32 %v2050_v48, %v1761_v46  ;;  %v2052_v51 = vpop.f32.mrb[41].mxu1 }
 0x25f   : > { %v1764_v52 = vpop.f32.mrb[42].mxu0  ;;  %v2053_v54 = vpop.f32.mrb[42].mxu1 }
 0x260   : > { %v1766_v55 = vpop.f32.mrb[43].mxu0  ;;  %v2245_v56 = vadd.f32 %v2051_v50, %v579_v47  ;;  %v2054_v57 = vadd.f32 %v2053_v54, %v1764_v52  ;;  %v2055_v58 = vpop.f32.mrb[43].mxu1 }
 0x262   : > { %2309 = vst [vmem:[#allocation2 + $0xa0] sm:$0xff] %v2245_v56  ;;  %v2246_v59 = vadd.f32 %v2054_v57, %v580_v53  ;;  %v589_v53 = vld [vmem:[#allocation2 + $0xf0] sm:$0xff] }
 0x264   : > { %2310 = vst [vmem:[#allocation2 + $0xa8] sm:$0xff] %v2246_v59  ;;  %v590_v59 = vld [vmem:[#allocation2 + $0xf8] sm:$0xff] }
 0x265   : > { %v1769_v60 = vpop.f32.mrb[44].mxu0  ;;  %v2058_v62 = vpop.f32.mrb[44].mxu1 }
 0x266   : > { %v1771_v63 = vpop.f32.mrb[45].mxu0  ;;  %v2059_v0 = vadd.f32 %v2058_v62, %v1769_v60  ;;  %v2060_v1 = vpop.f32.mrb[45].mxu1 }
 0x267   : > { %v1772_v2 = vpop.f32.mrb[46].mxu0  ;;  %v2061_v4 = vpop.f32.mrb[46].mxu1 }
 0x268   : > { %v1774_v5 = vpop.f32.mrb[47].mxu0  ;;  %v2247_v6 = vadd.f32 %v2059_v0, %v581_v61  ;;  %v2062_v7 = vadd.f32 %v2061_v4, %v1772_v2  ;;  %v2063_v8 = vpop.f32.mrb[47].mxu1 }
 0x26a   : > { %2311 = vst [vmem:[#allocation2 + $0xb0] sm:$0xff] %v2247_v6  ;;  %v2248_v9 = vadd.f32 %v2062_v7, %v582_v3  ;;  %v591_v3 = vld [vmem:[#allocation2 + $0x100] sm:$0xff] }
 0x26c   : > { %2312 = vst [vmem:[#allocation2 + $0xb8] sm:$0xff] %v2248_v9  ;;  %v592_v9 = vld [vmem:[#allocation2 + $0x108] sm:$0xff] }
 0x26d   : > { %v1777_v10 = vpop.f32.mrb[48].mxu0  ;;  %v2066_v12 = vpop.f32.mrb[48].mxu1 }
 0x26e   : > { %v1779_v13 = vpop.f32.mrb[49].mxu0  ;;  %v2067_v14 = vadd.f32 %v2066_v12, %v1777_v10  ;;  %v2068_v15 = vpop.f32.mrb[49].mxu1 }
 0x26f   : > { %v1780_v16 = vpop.f32.mrb[50].mxu0  ;;  %v2069_v18 = vpop.f32.mrb[50].mxu1 }
 0x270   : > { %v1782_v19 = vpop.f32.mrb[51].mxu0  ;;  %v2249_v20 = vadd.f32 %v2067_v14, %v583_v11  ;;  %v2070_v21 = vadd.f32 %v2069_v18, %v1780_v16  ;;  %v2071_v22 = vpop.f32.mrb[51].mxu1 }
 0x272   : > { %2313 = vst [vmem:[#allocation2 + $0xc0] sm:$0xff] %v2249_v20  ;;  %v2250_v23 = vadd.f32 %v2070_v21, %v584_v17  ;;  %v593_v17 = vld [vmem:[#allocation2 + $0x110] sm:$0xff] }
 0x274   : > { %2314 = vst [vmem:[#allocation2 + $0xc8] sm:$0xff] %v2250_v23  ;;  %v594_v23 = vld [vmem:[#allocation2 + $0x118] sm:$0xff] }
 0x275   : > { %v1785_v24 = vpop.f32.mrb[52].mxu0  ;;  %v2074_v26 = vpop.f32.mrb[52].mxu1 }
 0x276   : > { %v1787_v27 = vpop.f32.mrb[53].mxu0  ;;  %v2075_v28 = vadd.f32 %v2074_v26, %v1785_v24  ;;  %v2076_v29 = vpop.f32.mrb[53].mxu1 }
 0x277   : > { %v1788_v30 = vpop.f32.mrb[54].mxu0  ;;  %v2077_v32 = vpop.f32.mrb[54].mxu1 }
 0x278   : > { %v1790_v33 = vpop.f32.mrb[55].mxu0  ;;  %v2251_v34 = vadd.f32 %v2075_v28, %v585_v25  ;;  %v2078_v35 = vadd.f32 %v2077_v32, %v1788_v30  ;;  %v2079_v36 = vpop.f32.mrb[55].mxu1 }
 0x27a   : > { %2315 = vst [vmem:[#allocation2 + $0xd0] sm:$0xff] %v2251_v34  ;;  %v2252_v37 = vadd.f32 %v2078_v35, %v586_v31  ;;  %v595_v31 = vld [vmem:[#allocation2 + $0x120] sm:$0xff] }
 0x27c   : > { %2316 = vst [vmem:[#allocation2 + $0xd8] sm:$0xff] %v2252_v37  ;;  %v596_v37 = vld [vmem:[#allocation2 + $0x128] sm:$0xff] }
 0x27d   : > { %v1793_v38 = vpop.f32.mrb[56].mxu0  ;;  %v2082_v40 = vpop.f32.mrb[56].mxu1 }
 0x27e   : > { %v1795_v41 = vpop.f32.mrb[57].mxu0  ;;  %v2083_v42 = vadd.f32 %v2082_v40, %v1793_v38  ;;  %v2084_v43 = vpop.f32.mrb[57].mxu1 }
 0x27f   : > { %v1796_v44 = vpop.f32.mrb[58].mxu0  ;;  %v2085_v46 = vpop.f32.mrb[58].mxu1 }
 0x280   : > { %v1798_v47 = vpop.f32.mrb[59].mxu0  ;;  %v2253_v48 = vadd.f32 %v2083_v42, %v587_v39  ;;  %v2086_v49 = vadd.f32 %v2085_v46, %v1796_v44  ;;  %v2087_v50 = vpop.f32.mrb[59].mxu1 }
 0x282   : > { %2317 = vst [vmem:[#allocation2 + $0xe0] sm:$0xff] %v2253_v48  ;;  %v2254_v51 = vadd.f32 %v2086_v49, %v588_v45  ;;  %v597_v45 = vld [vmem:[#allocation2 + $0x130] sm:$0xff] }
 0x284   : > { %2318 = vst [vmem:[#allocation2 + $0xe8] sm:$0xff] %v2254_v51  ;;  %v598_v51 = vld [vmem:[#allocation2 + $0x138] sm:$0xff] }
 0x285   : > { %v1801_v52 = vpop.f32.mrb[60].mxu0  ;;  %v2090_v54 = vpop.f32.mrb[60].mxu1 }
 0x286   : > { %v1803_v55 = vpop.f32.mrb[61].mxu0  ;;  %v2091_v56 = vadd.f32 %v2090_v54, %v1801_v52  ;;  %v2092_v57 = vpop.f32.mrb[61].mxu1 }
 0x287   : > { %v1804_v58 = vpop.f32.mrb[62].mxu0  ;;  %v2093_v60 = vpop.f32.mrb[62].mxu1 }
 0x288   : > { %v1806_v61 = vpop.f32.mrb[63].mxu0  ;;  %v2255_v62 = vadd.f32 %v2091_v56, %v589_v53  ;;  %v2094_v63 = vadd.f32 %v2093_v60, %v1804_v58  ;;  %v2095_v0 = vpop.f32.mrb[63].mxu1 }
 0x28a   : > { %2319 = vst [vmem:[#allocation2 + $0xf0] sm:$0xff] %v2255_v62  ;;  %v2256_v1 = vadd.f32 %v2094_v63, %v590_v59  ;;  %v599_v59 = vld [vmem:[#allocation2 + $0x140] sm:$0xff] }
 0x28c   : > { %2320 = vst [vmem:[#allocation2 + $0xf8] sm:$0xff] %v2256_v1  ;;  %v600_v1 = vld [vmem:[#allocation2 + $0x148] sm:$0xff] }
 0x28d   : > { %v1809_v2 = vpop.f32.mrb[64].mxu0  ;;  %v2098_v4 = vpop.f32.mrb[64].mxu1 }
 0x28e   : > { %v1811_v5 = vpop.f32.mrb[65].mxu0  ;;  %v2099_v6 = vadd.f32 %v2098_v4, %v1809_v2  ;;  %v2100_v7 = vpop.f32.mrb[65].mxu1 }
 0x28f   : > { %v1812_v8 = vpop.f32.mrb[66].mxu0  ;;  %v2101_v10 = vpop.f32.mrb[66].mxu1 }
 0x290   : > { %v1814_v11 = vpop.f32.mrb[67].mxu0  ;;  %v2257_v12 = vadd.f32 %v2099_v6, %v591_v3  ;;  %v2102_v13 = vadd.f32 %v2101_v10, %v1812_v8  ;;  %v2103_v14 = vpop.f32.mrb[67].mxu1 }
 0x292   : > { %2321 = vst [vmem:[#allocation2 + $0x100] sm:$0xff] %v2257_v12  ;;  %v2258_v15 = vadd.f32 %v2102_v13, %v592_v9  ;;  %v601_v9 = vld [vmem:[#allocation2 + $0x150] sm:$0xff] }
 0x294   : > { %2322 = vst [vmem:[#allocation2 + $0x108] sm:$0xff] %v2258_v15  ;;  %v602_v15 = vld [vmem:[#allocation2 + $0x158] sm:$0xff] }
 0x295   : > { %v1817_v16 = vpop.f32.mrb[68].mxu0  ;;  %v2106_v18 = vpop.f32.mrb[68].mxu1 }
 0x296   : > { %v1819_v19 = vpop.f32.mrb[69].mxu0  ;;  %v2107_v20 = vadd.f32 %v2106_v18, %v1817_v16  ;;  %v2108_v21 = vpop.f32.mrb[69].mxu1 }
 0x297   : > { %v1820_v22 = vpop.f32.mrb[70].mxu0  ;;  %v2109_v24 = vpop.f32.mrb[70].mxu1 }
 0x298   : > { %v1822_v25 = vpop.f32.mrb[71].mxu0  ;;  %v2259_v26 = vadd.f32 %v2107_v20, %v593_v17  ;;  %v2110_v27 = vadd.f32 %v2109_v24, %v1820_v22  ;;  %v2111_v28 = vpop.f32.mrb[71].mxu1 }
 0x29a   : > { %2323 = vst [vmem:[#allocation2 + $0x110] sm:$0xff] %v2259_v26  ;;  %v2260_v29 = vadd.f32 %v2110_v27, %v594_v23  ;;  %v603_v23 = vld [vmem:[#allocation2 + $0x160] sm:$0xff] }
 0x29c   : > { %2324 = vst [vmem:[#allocation2 + $0x118] sm:$0xff] %v2260_v29  ;;  %v604_v29 = vld [vmem:[#allocation2 + $0x168] sm:$0xff] }
 0x29d   : > { %v1825_v30 = vpop.f32.mrb[72].mxu0  ;;  %v2114_v32 = vpop.f32.mrb[72].mxu1 }
 0x29e   : > { %v1827_v33 = vpop.f32.mrb[73].mxu0  ;;  %v2115_v34 = vadd.f32 %v2114_v32, %v1825_v30  ;;  %v2116_v35 = vpop.f32.mrb[73].mxu1 }
 0x29f   : > { %v1828_v36 = vpop.f32.mrb[74].mxu0  ;;  %v2117_v38 = vpop.f32.mrb[74].mxu1 }
 0x2a0   : > { %v1830_v39 = vpop.f32.mrb[75].mxu0  ;;  %v2261_v40 = vadd.f32 %v2115_v34, %v595_v31  ;;  %v2118_v41 = vadd.f32 %v2117_v38, %v1828_v36  ;;  %v2119_v42 = vpop.f32.mrb[75].mxu1 }
 0x2a2   : > { %2325 = vst [vmem:[#allocation2 + $0x120] sm:$0xff] %v2261_v40  ;;  %v2262_v43 = vadd.f32 %v2118_v41, %v596_v37  ;;  %v605_v37 = vld [vmem:[#allocation2 + $0x170] sm:$0xff] }
 0x2a4   : > { %2326 = vst [vmem:[#allocation2 + $0x128] sm:$0xff] %v2262_v43  ;;  %v606_v43 = vld [vmem:[#allocation2 + $0x178] sm:$0xff] }
 0x2a5   : > { %v1833_v44 = vpop.f32.mrb[76].mxu0  ;;  %v2122_v46 = vpop.f32.mrb[76].mxu1 }
 0x2a6   : > { %v1835_v47 = vpop.f32.mrb[77].mxu0  ;;  %v2123_v48 = vadd.f32 %v2122_v46, %v1833_v44  ;;  %v2124_v49 = vpop.f32.mrb[77].mxu1 }
 0x2a7   : > { %v1836_v50 = vpop.f32.mrb[78].mxu0  ;;  %v2125_v52 = vpop.f32.mrb[78].mxu1 }
 0x2a8   : > { %v1838_v53 = vpop.f32.mrb[79].mxu0  ;;  %v2263_v54 = vadd.f32 %v2123_v48, %v597_v45  ;;  %v2126_v55 = vadd.f32 %v2125_v52, %v1836_v50  ;;  %v2127_v56 = vpop.f32.mrb[79].mxu1 }
 0x2aa   : > { %2327 = vst [vmem:[#allocation2 + $0x130] sm:$0xff] %v2263_v54  ;;  %v2264_v57 = vadd.f32 %v2126_v55, %v598_v51  ;;  %v607_v51 = vld [vmem:[#allocation2 + $0x180] sm:$0xff] }
 0x2ac   : > { %2328 = vst [vmem:[#allocation2 + $0x138] sm:$0xff] %v2264_v57  ;;  %v608_v57 = vld [vmem:[#allocation2 + $0x188] sm:$0xff] }
 0x2ad   : > { %v1841_v58 = vpop.f32.mrb[80].mxu0  ;;  %v2130_v60 = vpop.f32.mrb[80].mxu1 }
 0x2ae   : > { %v1843_v61 = vpop.f32.mrb[81].mxu0  ;;  %v2131_v62 = vadd.f32 %v2130_v60, %v1841_v58  ;;  %v2132_v63 = vpop.f32.mrb[81].mxu1 }
 0x2af   : > { %v1844_v0 = vpop.f32.mrb[82].mxu0  ;;  %v2133_v2 = vpop.f32.mrb[82].mxu1 }
 0x2b0   : > { %v1846_v3 = vpop.f32.mrb[83].mxu0  ;;  %v2265_v4 = vadd.f32 %v2131_v62, %v599_v59  ;;  %v2134_v5 = vadd.f32 %v2133_v2, %v1844_v0  ;;  %v2135_v6 = vpop.f32.mrb[83].mxu1 }
 0x2b2   : > { %2329 = vst [vmem:[#allocation2 + $0x140] sm:$0xff] %v2265_v4  ;;  %v2266_v7 = vadd.f32 %v2134_v5, %v600_v1  ;;  %v609_v1 = vld [vmem:[#allocation2 + $0x190] sm:$0xff] }
 0x2b4   : > { %2330 = vst [vmem:[#allocation2 + $0x148] sm:$0xff] %v2266_v7  ;;  %v610_v7 = vld [vmem:[#allocation2 + $0x198] sm:$0xff] }
 0x2b5   : > { %v1849_v8 = vpop.f32.mrb[84].mxu0  ;;  %v2138_v10 = vpop.f32.mrb[84].mxu1 }
 0x2b6   : > { %v1851_v11 = vpop.f32.mrb[85].mxu0  ;;  %v2139_v12 = vadd.f32 %v2138_v10, %v1849_v8  ;;  %v2140_v13 = vpop.f32.mrb[85].mxu1 }
 0x2b7   : > { %v1852_v14 = vpop.f32.mrb[86].mxu0  ;;  %v2141_v16 = vpop.f32.mrb[86].mxu1 }
 0x2b8   : > { %v1854_v17 = vpop.f32.mrb[87].mxu0  ;;  %v2267_v18 = vadd.f32 %v2139_v12, %v601_v9  ;;  %v2142_v19 = vadd.f32 %v2141_v16, %v1852_v14  ;;  %v2143_v20 = vpop.f32.mrb[87].mxu1 }
 0x2ba   : > { %2331 = vst [vmem:[#allocation2 + $0x150] sm:$0xff] %v2267_v18  ;;  %v2268_v21 = vadd.f32 %v2142_v19, %v602_v15  ;;  %v611_v15 = vld [vmem:[#allocation2 + $0x1a0] sm:$0xff] }
 0x2bc   : > { %2332 = vst [vmem:[#allocation2 + $0x158] sm:$0xff] %v2268_v21  ;;  %v612_v21 = vld [vmem:[#allocation2 + $0x1a8] sm:$0xff] }
 0x2bd   : > { %v1857_v22 = vpop.f32.mrb[88].mxu0  ;;  %v2146_v24 = vpop.f32.mrb[88].mxu1 }
 0x2be   : > { %v1859_v25 = vpop.f32.mrb[89].mxu0  ;;  %v2147_v26 = vadd.f32 %v2146_v24, %v1857_v22  ;;  %v2148_v27 = vpop.f32.mrb[89].mxu1 }
 0x2bf   : > { %v1860_v28 = vpop.f32.mrb[90].mxu0  ;;  %v2149_v30 = vpop.f32.mrb[90].mxu1 }
 0x2c0   : > { %v1862_v31 = vpop.f32.mrb[91].mxu0  ;;  %v2269_v32 = vadd.f32 %v2147_v26, %v603_v23  ;;  %v2150_v33 = vadd.f32 %v2149_v30, %v1860_v28  ;;  %v2151_v34 = vpop.f32.mrb[91].mxu1 }
 0x2c2   : > { %2333 = vst [vmem:[#allocation2 + $0x160] sm:$0xff] %v2269_v32  ;;  %v2270_v35 = vadd.f32 %v2150_v33, %v604_v29  ;;  %v613_v29 = vld [vmem:[#allocation2 + $0x1b0] sm:$0xff] }
 0x2c4   : > { %2334 = vst [vmem:[#allocation2 + $0x168] sm:$0xff] %v2270_v35  ;;  %v614_v35 = vld [vmem:[#allocation2 + $0x1b8] sm:$0xff] }
 0x2c5   : > { %v1865_v36 = vpop.f32.mrb[92].mxu0  ;;  %v2154_v38 = vpop.f32.mrb[92].mxu1 }
 0x2c6   : > { %v1867_v39 = vpop.f32.mrb[93].mxu0  ;;  %v2155_v40 = vadd.f32 %v2154_v38, %v1865_v36  ;;  %v2156_v41 = vpop.f32.mrb[93].mxu1 }
 0x2c7   : > { %v1868_v42 = vpop.f32.mrb[94].mxu0  ;;  %v2157_v44 = vpop.f32.mrb[94].mxu1 }
 0x2c8   : > { %v1870_v45 = vpop.f32.mrb[95].mxu0  ;;  %v2271_v46 = vadd.f32 %v2155_v40, %v605_v37  ;;  %v2158_v47 = vadd.f32 %v2157_v44, %v1868_v42  ;;  %v2159_v48 = vpop.f32.mrb[95].mxu1 }
 0x2ca   : > { %2335 = vst [vmem:[#allocation2 + $0x170] sm:$0xff] %v2271_v46  ;;  %v2272_v49 = vadd.f32 %v2158_v47, %v606_v43  ;;  %v615_v43 = vld [vmem:[#allocation2 + $0x1c0] sm:$0xff] }
 0x2cc   : > { %2336 = vst [vmem:[#allocation2 + $0x178] sm:$0xff] %v2272_v49  ;;  %v616_v49 = vld [vmem:[#allocation2 + $0x1c8] sm:$0xff] }
 0x2cd   : > { %v1873_v50 = vpop.f32.mrb[96].mxu0  ;;  %v2162_v52 = vpop.f32.mrb[96].mxu1 }
 0x2ce   : > { %v1875_v53 = vpop.f32.mrb[97].mxu0  ;;  %v2163_v54 = vadd.f32 %v2162_v52, %v1873_v50  ;;  %v2164_v55 = vpop.f32.mrb[97].mxu1 }
 0x2cf   : > { %v1876_v56 = vpop.f32.mrb[98].mxu0  ;;  %v2165_v58 = vpop.f32.mrb[98].mxu1 }
 0x2d0   : > { %v1878_v59 = vpop.f32.mrb[99].mxu0  ;;  %v2273_v60 = vadd.f32 %v2163_v54, %v607_v51  ;;  %v2166_v61 = vadd.f32 %v2165_v58, %v1876_v56  ;;  %v2167_v62 = vpop.f32.mrb[99].mxu1 }
 0x2d2   : > { %2337 = vst [vmem:[#allocation2 + $0x180] sm:$0xff] %v2273_v60  ;;  %v2274_v63 = vadd.f32 %v2166_v61, %v608_v57  ;;  %v617_v57 = vld [vmem:[#allocation2 + $0x1d0] sm:$0xff] }
 0x2d4   : > { %2338 = vst [vmem:[#allocation2 + $0x188] sm:$0xff] %v2274_v63  ;;  %v618_v63 = vld [vmem:[#allocation2 + $0x1d8] sm:$0xff] }
 0x2d5   : > { %v1881_v0 = vpop.f32.mrb[100].mxu0  ;;  %v2170_v2 = vpop.f32.mrb[100].mxu1 }
 0x2d6   : > { %v1883_v3 = vpop.f32.mrb[101].mxu0  ;;  %v2171_v4 = vadd.f32 %v2170_v2, %v1881_v0  ;;  %v2172_v5 = vpop.f32.mrb[101].mxu1 }
 0x2d7   : > { %v1884_v6 = vpop.f32.mrb[102].mxu0  ;;  %v2173_v8 = vpop.f32.mrb[102].mxu1 }
 0x2d8   : > { %v1886_v9 = vpop.f32.mrb[103].mxu0  ;;  %v2275_v10 = vadd.f32 %v2171_v4, %v609_v1  ;;  %v2174_v11 = vadd.f32 %v2173_v8, %v1884_v6  ;;  %v2175_v12 = vpop.f32.mrb[103].mxu1 }
 0x2da   : > { %2339 = vst [vmem:[#allocation2 + $0x190] sm:$0xff] %v2275_v10  ;;  %v2276_v13 = vadd.f32 %v2174_v11, %v610_v7  ;;  %v619_v7 = vld [vmem:[#allocation2 + $0x1e0] sm:$0xff] }
 0x2dc   : > { %2340 = vst [vmem:[#allocation2 + $0x198] sm:$0xff] %v2276_v13  ;;  %v620_v13 = vld [vmem:[#allocation2 + $0x1e8] sm:$0xff] }
 0x2dd   : > { %v1889_v14 = vpop.f32.mrb[104].mxu0  ;;  %v2178_v16 = vpop.f32.mrb[104].mxu1 }
 0x2de   : > { %v1891_v17 = vpop.f32.mrb[105].mxu0  ;;  %v2179_v18 = vadd.f32 %v2178_v16, %v1889_v14  ;;  %v2180_v19 = vpop.f32.mrb[105].mxu1 }
 0x2df   : > { %v1892_v20 = vpop.f32.mrb[106].mxu0  ;;  %v2181_v22 = vpop.f32.mrb[106].mxu1 }
 0x2e0   : > { %v1894_v23 = vpop.f32.mrb[107].mxu0  ;;  %v2277_v24 = vadd.f32 %v2179_v18, %v611_v15  ;;  %v2182_v25 = vadd.f32 %v2181_v22, %v1892_v20  ;;  %v2183_v26 = vpop.f32.mrb[107].mxu1 }
 0x2e2   : > { %2341 = vst [vmem:[#allocation2 + $0x1a0] sm:$0xff] %v2277_v24  ;;  %v2278_v27 = vadd.f32 %v2182_v25, %v612_v21  ;;  %v621_v21 = vld [vmem:[#allocation2 + $0x1f0] sm:$0xff] }
 0x2e4   : > { %2342 = vst [vmem:[#allocation2 + $0x1a8] sm:$0xff] %v2278_v27  ;;  %v622_v27 = vld [vmem:[#allocation2 + $0x1f8] sm:$0xff] }
 0x2e5   : > { %v1897_v28 = vpop.f32.mrb[108].mxu0  ;;  %v2186_v30 = vpop.f32.mrb[108].mxu1 }
 0x2e6   : > { %v1899_v31 = vpop.f32.mrb[109].mxu0  ;;  %v2187_v32 = vadd.f32 %v2186_v30, %v1897_v28  ;;  %v2188_v33 = vpop.f32.mrb[109].mxu1 }
 0x2e7   : > { %v1900_v34 = vpop.f32.mrb[110].mxu0  ;;  %v2189_v36 = vpop.f32.mrb[110].mxu1 }
 0x2e8   : > { %v1902_v37 = vpop.f32.mrb[111].mxu0  ;;  %v2279_v38 = vadd.f32 %v2187_v32, %v613_v29  ;;  %v2190_v39 = vadd.f32 %v2189_v36, %v1900_v34  ;;  %v2191_v40 = vpop.f32.mrb[111].mxu1 }
 0x2ea   : > { %2343 = vst [vmem:[#allocation2 + $0x1b0] sm:$0xff] %v2279_v38  ;;  %v2280_v41 = vadd.f32 %v2190_v39, %v614_v35 }
 0x2ec   : > { %2344 = vst [vmem:[#allocation2 + $0x1b8] sm:$0xff] %v2280_v41 }
 0x2ed   : > { %v1905_v42 = vpop.f32.mrb[112].mxu0  ;;  %v2194_v44 = vpop.f32.mrb[112].mxu1 }
 0x2ee   : > { %v1907_v45 = vpop.f32.mrb[113].mxu0  ;;  %v2195_v46 = vadd.f32 %v2194_v44, %v1905_v42  ;;  %v2196_v47 = vpop.f32.mrb[113].mxu1 }
 0x2ef   : > { %v1908_v48 = vpop.f32.mrb[114].mxu0  ;;  %v2197_v50 = vpop.f32.mrb[114].mxu1 }
 0x2f0   : > { %v1910_v51 = vpop.f32.mrb[115].mxu0  ;;  %v2281_v52 = vadd.f32 %v2195_v46, %v615_v43  ;;  %v2198_v53 = vadd.f32 %v2197_v50, %v1908_v48  ;;  %v2199_v54 = vpop.f32.mrb[115].mxu1 }
 0x2f2   : > { %2345 = vst [vmem:[#allocation2 + $0x1c0] sm:$0xff] %v2281_v52  ;;  %v2282_v55 = vadd.f32 %v2198_v53, %v616_v49 }
 0x2f4   : > { %2346 = vst [vmem:[#allocation2 + $0x1c8] sm:$0xff] %v2282_v55 }
 0x2f5   : > { %v1913_v56 = vpop.f32.mrb[116].mxu0  ;;  %v2202_v58 = vpop.f32.mrb[116].mxu1 }
 0x2f6   : > { %v1915_v59 = vpop.f32.mrb[117].mxu0  ;;  %v2203_v60 = vadd.f32 %v2202_v58, %v1913_v56  ;;  %v2204_v61 = vpop.f32.mrb[117].mxu1 }
 0x2f7   : > { %v1916_v62 = vpop.f32.mrb[118].mxu0  ;;  %v2205_v0 = vpop.f32.mrb[118].mxu1 }
 0x2f8   : > { %v1918_v1 = vpop.f32.mrb[119].mxu0  ;;  %v2283_v2 = vadd.f32 %v2203_v60, %v617_v57  ;;  %v2206_v3 = vadd.f32 %v2205_v0, %v1916_v62  ;;  %v2207_v4 = vpop.f32.mrb[119].mxu1 }
 0x2fa   : > { %2347 = vst [vmem:[#allocation2 + $0x1d0] sm:$0xff] %v2283_v2  ;;  %v2284_v5 = vadd.f32 %v2206_v3, %v618_v63 }
 0x2fc   : > { %2348 = vst [vmem:[#allocation2 + $0x1d8] sm:$0xff] %v2284_v5 }
 0x2fd   : > { %v1921_v6 = vpop.f32.mrb[120].mxu0  ;;  %v2210_v8 = vpop.f32.mrb[120].mxu1 }
 0x2fe   : > { %v1923_v9 = vpop.f32.mrb[121].mxu0  ;;  %v2211_v10 = vadd.f32 %v2210_v8, %v1921_v6  ;;  %v2212_v11 = vpop.f32.mrb[121].mxu1 }
 0x2ff   : > { %v1924_v12 = vpop.f32.mrb[122].mxu0  ;;  %v2213_v14 = vpop.f32.mrb[122].mxu1 }
 0x300   : > { %v1926_v15 = vpop.f32.mrb[123].mxu0  ;;  %v2285_v16 = vadd.f32 %v2211_v10, %v619_v7  ;;  %v2214_v17 = vadd.f32 %v2213_v14, %v1924_v12  ;;  %v2215_v18 = vpop.f32.mrb[123].mxu1 }
 0x302   : > { %2349 = vst [vmem:[#allocation2 + $0x1e0] sm:$0xff] %v2285_v16  ;;  %v2286_v19 = vadd.f32 %v2214_v17, %v620_v13 }
 0x304   : > { %2350 = vst [vmem:[#allocation2 + $0x1e8] sm:$0xff] %v2286_v19 }
 0x305   : > { %v1929_v20 = vpop.f32.mrb[124].mxu0  ;;  %v2218_v22 = vpop.f32.mrb[124].mxu1 }
 0x306   : > { %v1931_v23 = vpop.f32.mrb[125].mxu0  ;;  %v2219_v24 = vadd.f32 %v2218_v22, %v1929_v20  ;;  %v2220_v25 = vpop.f32.mrb[125].mxu1 }
 0x307   : > { %v1932_v26 = vpop.f32.mrb[126].mxu0  ;;  %v2221_v28 = vpop.f32.mrb[126].mxu1 }
 0x308   : > { %v1934_v29 = vpop.f32.mrb[127].mxu0  ;;  %v2287_v30 = vadd.f32 %v2219_v24, %v621_v21  ;;  %v2222_v31 = vadd.f32 %v2221_v28, %v1932_v26  ;;  %v2223_v32 = vpop.f32.mrb[127].mxu1 }
 0x30a   : > { %2351 = vst [vmem:[#allocation2 + $0x1f0] sm:$0xff] %v2287_v30  ;;  %v2288_v33 = vadd.f32 %v2222_v31, %v622_v27 }
 0x30c   : > { %2352 = vst [vmem:[#allocation2 + $0x1f8] sm:$0xff] %v2288_v33 }
 0x30d PF: > { %v4783_v34 = vld [vmem:[#allocation13] sm:$0xff]   ;;  %v4784_v35 = vld [vmem:[#allocation13 + $0x8] sm:$0xff]   ;;  %v4785_v36 = vld [vmem:[#allocation13 + $0x10] sm:$0xff]   ;;  %s7191_s25 = sld [smem:[#allocation51_spill]]  ;;  %s7237_s0 = sld [smem:[#allocation52_spill]] }
 0x30e   : > { %4311 = vmatprep.subr.bf16.mxu0 %v4783_v34  ;;  %4391 = vmatprep.subr.bf16.mxu1 %v4783_v34  ;;  %v4786_v37 = vld [vmem:[#allocation13 + $0x18] sm:$0xff]   ;;  %v2356_v38 = vld [vmem:[#allocation2] sm:$0xff]  ;;  %v2357_v39 = vld [vmem:[#allocation2 + $0x8] sm:$0xff]  ;;  %s7238_s10 = sld [smem:[#allocation53_spill]]  ;;  %s7254_s21 = sld [smem:[#allocation26_spill]] }
 0x30f   : > { %4312 = vmatpush3.bf16.msra.mxu0 %v4783_v34  ;;  %4399 = vmatpush3.bf16.msra.mxu1 %v4783_v34  ;;  %v2388_v40 = vld [vmem:[#allocation2 + $0x100] sm:$0xff]  ;;  %v2484_v41 = vmax.f32 %v2356_v38, 0.0  ;;  %v2485_v42 = vmax.f32 %v2357_v39, 0.0  ;;  %v2389_v43 = vld [vmem:[#allocation2 + $0x108] sm:$0xff]  ;;  %v4789_v50 = vld [vmem:[#allocation13 + $0x30] sm:$0xff]   ;;  %s3929_s4 = sshll.u32 %s5776_s3, 4  ;;  %s7011_s4 = int_to_ptr.vmem [resolvable:$true] %s3929_s4 }
 0x310   : > { %4313 = vmatprep.subr.bf16.mxu0 %v4784_v35  ;;  %4392 = vmatprep.subr.bf16.mxu1 %v4784_v35  ;;  %v2516_v44 = vmax.f32 %v2388_v40, 0.0  ;;  %v2517_v45 = vmax.f32 %v2389_v43, 0.0  ;;  %v4787_v47 = vld [vmem:[#allocation13 + $0x20] sm:$0xff]   ;;  %v4788_v49 = vld [vmem:[#allocation13 + $0x28] sm:$0xff]   ;;  %v4790_v51 = vld [vmem:[#allocation13 + $0x38] sm:$0xff]   ;;  %s7259_s22 = sld [smem:[#allocation54_spill]] }
 0x311   : > { %v2548_v46 = vpack.c.bf16 %v2485_v42, %v2484_v41  ;;  %v2358_v52 = vld [vmem:[#allocation2 + $0x10] sm:$0xff]  ;;  %v2359_v53 = vld [vmem:[#allocation2 + $0x18] sm:$0xff]  ;;  %v2360_v56 = vld [vmem:[#allocation2 + $0x20] sm:$0xff]  ;;  %s7017_s28 = scalar_lea.sflag [#allocation9], %s419_s18  ;;  %s5075_s7 = scalar_lea.vmem %s7011_s4, 8192 }
 0x312   : > { %v2564_v48 = vpack.c.bf16 %v2517_v45, %v2516_v44  ;;  %v2390_v54 = vld [vmem:[#allocation2 + $0x110] sm:$0xff]  ;;  %v2391_v55 = vld [vmem:[#allocation2 + $0x118] sm:$0xff]  ;;  %v2361_v57 = vld [vmem:[#allocation2 + $0x28] sm:$0xff]  ;;  %v2486_v60 = vmax.f32 %v2358_v52, 0.0  ;;  %v2487_v61 = vmax.f32 %v2359_v53, 0.0  ;;  %v2488_v0 = vmax.f32 %v2360_v56, 0.0  ;;  %p5076_p4 = scmp.ne.s32.totalorder %s7011_s4, %s5075_s7 }
 0x313   : > { %4314 = vmatpush3.bf16.msra.mxu0 %v4784_v35  ;;  %4400 = vmatpush3.bf16.msra.mxu1 %v4784_v35  ;;  %v2392_v58 = vld [vmem:[#allocation2 + $0x120] sm:$0xff]  ;;  %v2393_v59 = vld [vmem:[#allocation2 + $0x128] sm:$0xff]  ;;  %v2518_v62 = vmax.f32 %v2390_v54, 0.0  ;;  %v2519_v63 = vmax.f32 %v2391_v55, 0.0  ;;  %v2489_v1 = vmax.f32 %v2361_v57, 0.0  ;;  %v2362_v6 = vld [vmem:[#allocation2 + $0x30] sm:$0xff] }
 0x314   : > { %4315 = vmatprep.subr.bf16.mxu0 %v4785_v36  ;;  %4393 = vmatprep.subr.bf16.mxu1 %v4785_v36  ;;  %v2520_v2 = vmax.f32 %v2392_v58, 0.0  ;;  %v2521_v3 = vmax.f32 %v2393_v59, 0.0  ;;  %v2549_v4 = vpack.c.bf16 %v2487_v61, %v2486_v60  ;;  %v2363_v7 = vld [vmem:[#allocation2 + $0x38] sm:$0xff]  ;;  %v2394_v10 = vld [vmem:[#allocation2 + $0x130] sm:$0xff]  ;;  %v2364_v12 = vld [vmem:[#allocation2 + $0x40] sm:$0xff]  ;;  %v2490_v16 = vmax.f32 %v2362_v6, 0.0 }
 0x315   : > { %4327 = vmatprep.mubr.bf16.mxu0 %v2548_v46  ;;  %4359 = vmatprep.mubr.bf16.mxu1 %v2564_v48  ;;  %v2565_v5 = vpack.c.bf16 %v2519_v63, %v2518_v62  ;;  %v2550_v8 = vpack.c.bf16 %v2489_v1, %v2488_v0  ;;  %v2395_v11 = vld [vmem:[#allocation2 + $0x138] sm:$0xff]  ;;  %v2365_v13 = vld [vmem:[#allocation2 + $0x48] sm:$0xff]  ;;  %v2396_v14 = vld [vmem:[#allocation2 + $0x140] sm:$0xff]  ;;  %v2491_v17 = vmax.f32 %v2363_v7, 0.0  ;;  %v2522_v18 = vmax.f32 %v2394_v10, 0.0  ;;  %s4270_s1 = sshll.u32 %s7254_s21, 13 }
 0x316   : > { %v2566_v9 = vpack.c.bf16 %v2521_v3, %v2520_v2  ;;  %v2397_v15 = vld [vmem:[#allocation2 + $0x148] sm:$0xff]  ;;  %v2523_v19 = vmax.f32 %v2395_v11, 0.0  ;;  %v2492_v20 = vmax.f32 %v2364_v12, 0.0  ;;  %v2493_v21 = vmax.f32 %v2365_v13, 0.0  ;;  %v2366_v26 = vld [vmem:[#allocation2 + $0x50] sm:$0xff]  ;;  %v2367_v27 = vld [vmem:[#allocation2 + $0x58] sm:$0xff]  ;;  %s7009_s6 = scalar_lea.hbm %s7259_s22, %s4270_s1 }
 0x317   : > { %4316 = vmatpush3.bf16.msra.mxu0 %v4785_v36  ;;  %4401 = vmatpush3.bf16.msra.mxu1 %v4785_v36  ;;  %v2524_v22 = vmax.f32 %v2396_v14, 0.0  ;;  %v2525_v23 = vmax.f32 %v2397_v15, 0.0  ;;  %v2551_v24 = vpack.c.bf16 %v2491_v17, %v2490_v16  ;;  %v2398_v30 = vld [vmem:[#allocation2 + $0x150] sm:$0xff]  ;;  %v2399_v31 = vld [vmem:[#allocation2 + $0x158] sm:$0xff]  ;;  %v2368_v32 = vld [vmem:[#allocation2 + $0x60] sm:$0xff]  ;;  %v2494_v36 = vmax.f32 %v2366_v26, 0.0 }
 0x318   : > { %4317 = vmatprep.subr.bf16.mxu0 %v4786_v37  ;;  %4394 = vmatprep.subr.bf16.mxu1 %v4786_v37  ;;  %v2567_v25 = vpack.c.bf16 %v2523_v19, %v2522_v18  ;;  %v2552_v28 = vpack.c.bf16 %v2493_v21, %v2492_v20  ;;  %v2369_v33 = vld [vmem:[#allocation2 + $0x68] sm:$0xff]  ;;  %v2400_v34 = vld [vmem:[#allocation2 + $0x160] sm:$0xff]  ;;  %v2526_v38 = vmax.f32 %v2398_v30, 0.0  ;;  %v2527_v39 = vmax.f32 %v2399_v31, 0.0  ;;  %v2370_v46 = vld [vmem:[#allocation2 + $0x70] sm:$0xff]  ;;  %p7260_p0 = scmp.ne.s32.totalorder %s7177_s19, 0 }
 0x319   : > { %v2568_v29 = vpack.c.bf16 %v2525_v23, %v2524_v22  ;;  %v2401_v35 = vld [vmem:[#allocation2 + $0x168] sm:$0xff]  ;;  %v2496_v40 = vmax.f32 %v2368_v32, 0.0  ;;  %v2497_v41 = vmax.f32 %v2369_v33, 0.0  ;;  %v2528_v42 = vmax.f32 %v2400_v34, 0.0  ;;  %v2372_v52 = vld [vmem:[#allocation2 + $0x80] sm:$0xff]  ;;  %v2374_v2 = vld [vmem:[#allocation2 + $0x90] sm:$0xff] }
 0x31a   : > { %v2529_v43 = vmax.f32 %v2401_v35, 0.0  ;;  %v2569_v45 = vpack.c.bf16 %v2527_v39, %v2526_v38  ;;  %v2373_v53 = vld [vmem:[#allocation2 + $0x88] sm:$0xff]  ;;  %v2404_v54 = vld [vmem:[#allocation2 + $0x180] sm:$0xff]  ;;  %v2498_v56 = vmax.f32 %v2370_v46, 0.0  ;;  %v2500_v60 = vmax.f32 %v2372_v52, 0.0  ;;  %v2375_v3 = vld [vmem:[#allocation2 + $0x98] sm:$0xff]  ;;  %p5077_p8 = pnand %p5076_p4, %p7260_p0 }
 0x31b   : > { %4318 = vmatpush3.bf16.msra.mxu0 %v4786_v37  ;;  %4402 = vmatpush3.bf16.msra.mxu1 %v4786_v37  ;;  %v2495_v37 = vmax.f32 %v2367_v27, 0.0  ;;  %v2554_v48 = vpack.c.bf16 %v2497_v41, %v2496_v40  ;;  %v2405_v55 = vld [vmem:[#allocation2 + $0x188] sm:$0xff]  ;;  %v2501_v61 = vmax.f32 %v2373_v53, 0.0  ;;  %v2532_v62 = vmax.f32 %v2404_v54, 0.0  ;;  %v2406_v6 = vld [vmem:[#allocation2 + $0x190] sm:$0xff]  ;;  %v2407_v7 = vld [vmem:[#allocation2 + $0x198] sm:$0xff] }
 0x31c   : > { %4319 = vmatprep.subr.bf16.mxu0 %v4787_v47  ;;  %4395 = vmatprep.subr.bf16.mxu1 %v4787_v47  ;;  %v2533_v63 = vmax.f32 %v2405_v55, 0.0  ;;  %v2408_v10 = vld [vmem:[#allocation2 + $0x1a0] sm:$0xff]  ;;  %v2409_v11 = vld [vmem:[#allocation2 + $0x1a8] sm:$0xff]  ;;  %v2502_v12 = vmax.f32 %v2374_v2, 0.0  ;;  %v2503_v13 = vmax.f32 %v2375_v3, 0.0  ;;  %v2534_v14 = vmax.f32 %v2406_v6, 0.0  ;;  %p5078_p6 = pneg %p5077_p8 }
 0x31d   : > { %v2553_v44 = vpack.c.bf16 %v2495_v37, %v2494_v36  ;;  %v2535_v15 = vmax.f32 %v2407_v7, 0.0  ;;  %v2536_v18 = vmax.f32 %v2408_v10, 0.0  ;;  %v2537_v19 = vmax.f32 %v2409_v11, 0.0  ;;  %v2378_v22 = vld [vmem:[#allocation2 + $0xb0] sm:$0xff]  ;;  %v2379_v23 = vld [vmem:[#allocation2 + $0xb8] sm:$0xff]  ;;  %v2412_v30 = vld [vmem:[#allocation2 + $0x1c0] sm:$0xff] }
 0x31e   : > { %v2557_v20 = vpack.c.bf16 %v2503_v13, %v2502_v12  ;;  %v2410_v26 = vld [vmem:[#allocation2 + $0x1b0] sm:$0xff]  ;;  %v2411_v27 = vld [vmem:[#allocation2 + $0x1b8] sm:$0xff]  ;;  %v2413_v31 = vld [vmem:[#allocation2 + $0x1c8] sm:$0xff]  ;;  %v2506_v32 = vmax.f32 %v2378_v22, 0.0  ;;  %v2507_v33 = vmax.f32 %v2379_v23, 0.0  ;;  %v2540_v38 = vmax.f32 %v2412_v30, 0.0 }
 0x31f   : > { %4320 = vmatpush3.bf16.msra.mxu0 %v4787_v47  ;;  %4403 = vmatpush3.bf16.msra.mxu1 %v4787_v47  ;;  %v2371_v47 = vld [vmem:[#allocation2 + $0x78] sm:$0xff]  ;;  %v2573_v21 = vpack.c.bf16 %v2535_v15, %v2534_v14  ;;  %v2538_v34 = vmax.f32 %v2410_v26, 0.0  ;;  %v2539_v35 = vmax.f32 %v2411_v27, 0.0  ;;  %v2541_v39 = vmax.f32 %v2413_v31, 0.0  ;;  %v2414_v46 = vld [vmem:[#allocation2 + $0x1d0] sm:$0xff]  ;;  %s5236_s20 = smov [#allocation15]  }
 0x320   : > { %4321 = vmatprep.subr.bf16.mxu0 %v4788_v49  ;;  %4396 = vmatprep.subr.bf16.mxu1 %v4788_v49  ;;  %v2499_v57 = vmax.f32 %v2371_v47, 0.0  ;;  %v2559_v40 = vpack.c.bf16 %v2507_v33, %v2506_v32  ;;  %v2415_v47 = vld [vmem:[#allocation2 + $0x1d8] sm:$0xff]  ;;  %v2542_v54 = vmax.f32 %v2414_v46, 0.0  ;;  %v2418_v2 = vld [vmem:[#allocation2 + $0x1f0] sm:$0xff]  ;;  %v5974_v10 = vld [vmem:[%s7191_s25] ss:$0 sm:$0xff] }
 0x321   : > { %v2575_v41 = vpack.c.bf16 %v2539_v35, %v2538_v34  ;;  %v2543_v55 = vmax.f32 %v2415_v47, 0.0  ;;  %v2419_v3 = vld [vmem:[#allocation2 + $0x1f8] sm:$0xff]  ;;  %v2546_v6 = vmax.f32 %v2418_v2, 0.0  ;;  %v2454_v13 = vld [vmem:[%s5698_s11 + $0x110] sm:$0xff]  ;;  %v2452_v35 = vld [vmem:[%s5698_s11 + $0x100] sm:$0xff] }
 0x322   : > { %v2555_v0 = vpack.c.bf16 %v2499_v57, %v2498_v56  ;;  %v2547_v7 = vmax.f32 %v2419_v3, 0.0  ;;  %v2422_v14 = vld [vmem:[%s5698_s11 + $0x10] sm:$0xff]  ;;  %v2423_v27 = vld [vmem:[%s5698_s11 + $0x18] sm:$0xff]  ;;  %v2453_v47 = vld [vmem:[%s5698_s11 + $0x108] sm:$0xff] }
 0x323   : > { %4322 = vmatpush3.bf16.msra.mxu0 %v4788_v49  ;;  %4404 = vmatpush3.bf16.msra.mxu1 %v4788_v49  ;;  %v2570_v49 = vpack.c.bf16 %v2529_v43, %v2528_v42  ;;  %v2382_v42 = vld [vmem:[#allocation2 + $0xd0] sm:$0xff]  ;;  %v2383_v43 = vld [vmem:[#allocation2 + $0xd8] sm:$0xff] }
 0x324   : > { %4323 = vmatprep.subr.bf16.mxu0 %v4789_v50  ;;  %4397 = vmatprep.subr.bf16.mxu1 %v4789_v50  ;;  %v2510_v52 = vmax.f32 %v2382_v42, 0.0  ;;  %v2511_v53 = vmax.f32 %v2383_v43, 0.0  ;;  %v2455_v34 = vld [vmem:[%s5698_s11 + $0x118] sm:$0xff] }
 0x325   : > { %v2459_v3 = vld [vmem:[%s5698_s11 + $0x138] sm:$0xff] }
 0x327   : > { %4324 = vmatpush3.bf16.msra.mxu0 %v4789_v50  ;;  %4405 = vmatpush3.bf16.msra.mxu1 %v4789_v50  ;;  %v2402_v50 = vld [vmem:[#allocation2 + $0x170] sm:$0xff] }
 0x328   : > { %4325 = vmatprep.subr.bf16.mxu0 %v4790_v51  ;;  %4398 = vmatprep.subr.bf16.mxu1 %v4790_v51  ;;  %v2530_v58 = vmax.f32 %v2402_v50, 0.0  ;;  %v2416_v50 = vld [vmem:[#allocation2 + $0x1e0] sm:$0xff] }
 0x32b   : > { %4326 = vmatpush3.bf16.msra.mxu0 %v4790_v51  ;;  %4406 = vmatpush3.bf16.msra.mxu1 %v4790_v51  ;;  %v2403_v51 = vld [vmem:[#allocation2 + $0x178] sm:$0xff] }
 0x32c   : > { %v2531_v59 = vmax.f32 %v2403_v51, 0.0  ;;  %v2417_v51 = vld [vmem:[#allocation2 + $0x1e8] sm:$0xff] }
 0x32e   : > { %4328 = vmatmul.mubr.bf16.vlgmr.msra.gmra.mrb[0].mxu0 %v2549_v4  ;;  %4360 = vmatmul.mubr.bf16.vlgmr.msra.gmra.mrb[0].mxu1 %v2565_v5  ;;  %v2571_v1 = vpack.c.bf16 %v2531_v59, %v2530_v58  ;;  %v2556_v4 = vpack.c.bf16 %v2501_v61, %v2500_v60  ;;  %v2572_v5 = vpack.c.bf16 %v2533_v63, %v2532_v62  ;;  %v2544_v58 = vmax.f32 %v2416_v50, 0.0  ;;  %v2386_v62 = vld [vmem:[#allocation2 + $0xf0] sm:$0xff] }
 0x32f   : > { %4331 = vmatprep.mubr.bf16.mxu0 %v2550_v8  ;;  %4363 = vmatprep.mubr.bf16.mxu1 %v2566_v9  ;;  %v2376_v8 = vld [vmem:[#allocation2 + $0xa0] sm:$0xff]  ;;  %v2377_v9 = vld [vmem:[#allocation2 + $0xa8] sm:$0xff]  ;;  %v2545_v59 = vmax.f32 %v2417_v51, 0.0  ;;  %v2561_v60 = vpack.c.bf16 %v2511_v53, %v2510_v52  ;;  %v2577_v61 = vpack.c.bf16 %v2543_v55, %v2542_v54  ;;  %v2427_v53 = vld [vmem:[%s5698_s11 + $0x38] sm:$0xff] }
 0x330   : > { %v2504_v16 = vmax.f32 %v2376_v8, 0.0  ;;  %v2505_v17 = vmax.f32 %v2377_v9, 0.0  ;;  %v2579_v9 = vpack.c.bf16 %v2547_v7, %v2546_v6  ;;  %v2426_v54 = vld [vmem:[%s5698_s11 + $0x30] sm:$0xff] }
 0x336   : > { %4332 = vmatmul.mubr.bf16.gmra.mrb[4].mxu0 %v2551_v24  ;;  %4364 = vmatmul.mubr.bf16.gmra.mrb[4].mxu1 %v2567_v25  ;;  %v2558_v24 = vpack.c.bf16 %v2505_v17, %v2504_v16  ;;  %v2574_v25 = vpack.c.bf16 %v2537_v19, %v2536_v18 }
 0x337   : > { %4335 = vmatprep.mubr.bf16.mxu0 %v2552_v28  ;;  %4367 = vmatprep.mubr.bf16.mxu1 %v2568_v29  ;;  %v2380_v28 = vld [vmem:[#allocation2 + $0xc0] sm:$0xff]  ;;  %v2381_v29 = vld [vmem:[#allocation2 + $0xc8] sm:$0xff] }
 0x338   : > { %v2508_v36 = vmax.f32 %v2380_v28, 0.0  ;;  %v2509_v37 = vmax.f32 %v2381_v29, 0.0  ;;  %v2420_v28 = vld [vmem:[%s5698_s11] sm:$0xff] }
 0x33e   : > { %4336 = vmatmul.mubr.bf16.gmra.mrb[8].mxu0 %v2553_v44  ;;  %4368 = vmatmul.mubr.bf16.gmra.mrb[8].mxu1 %v2569_v45  ;;  %v2560_v44 = vpack.c.bf16 %v2509_v37, %v2508_v36  ;;  %v2576_v45 = vpack.c.bf16 %v2541_v39, %v2540_v38 }
 0x33f   : > { %4339 = vmatprep.mubr.bf16.mxu0 %v2554_v48  ;;  %4371 = vmatprep.mubr.bf16.mxu1 %v2570_v49  ;;  %v2384_v48 = vld [vmem:[#allocation2 + $0xe0] sm:$0xff]  ;;  %v2385_v49 = vld [vmem:[#allocation2 + $0xe8] sm:$0xff] }
 0x340   : > { %v2512_v56 = vmax.f32 %v2384_v48, 0.0  ;;  %v2513_v57 = vmax.f32 %v2385_v49, 0.0  ;;  %v2421_v48 = vld [vmem:[%s5698_s11 + $0x8] sm:$0xff] }
 0x342   : > { %v2562_v63 = vpack.c.bf16 %v2513_v57, %v2512_v56 }
 0x346   : > { %4340 = vmatmul.mubr.bf16.gmra.mrb[12].mxu0 %v2555_v0  ;;  %4372 = vmatmul.mubr.bf16.gmra.mrb[12].mxu1 %v2571_v1  ;;  %v2387_v0 = vld [vmem:[#allocation2 + $0xf8] sm:$0xff]  ;;  %v2578_v1 = vpack.c.bf16 %v2545_v59, %v2544_v58 }
 0x347   : > { %4343 = vmatprep.mubr.bf16.mxu0 %v2556_v4  ;;  %4375 = vmatprep.mubr.bf16.mxu1 %v2572_v5  ;;  %v2514_v4 = vmax.f32 %v2386_v62, 0.0  ;;  %v2515_v5 = vmax.f32 %v2387_v0, 0.0 }
 0x349   : > { %v2563_v8 = vpack.c.bf16 %v2515_v5, %v2514_v4  ;;  %v2458_v4 = vld [vmem:[%s5698_s11 + $0x130] sm:$0xff] }
 0x34e   : > { %4344 = vmatmul.mubr.bf16.gmra.mrb[16].mxu0 %v2557_v20  ;;  %4376 = vmatmul.mubr.bf16.gmra.mrb[16].mxu1 %v2573_v21 }
 0x34f   : > { %4347 = vmatprep.mubr.bf16.mxu0 %v2558_v24  ;;  %4379 = vmatprep.mubr.bf16.mxu1 %v2574_v25 }
 0x356   : > { %4348 = vmatmul.mubr.bf16.gmra.mrb[20].mxu0 %v2559_v40  ;;  %4380 = vmatmul.mubr.bf16.gmra.mrb[20].mxu1 %v2575_v41 }
 0x357   : > { %4351 = vmatprep.mubr.bf16.mxu0 %v2560_v44  ;;  %4383 = vmatprep.mubr.bf16.mxu1 %v2576_v45 }
 0x35e   : > { %4352 = vmatmul.mubr.bf16.gmra.mrb[24].mxu0 %v2561_v60  ;;  %4384 = vmatmul.mubr.bf16.gmra.mrb[24].mxu1 %v2577_v61 }
 0x35f   : > { %4355 = vmatprep.mubr.bf16.mxu0 %v2562_v63  ;;  %4387 = vmatprep.mubr.bf16.mxu1 %v2578_v1 }
 0x366   : > { %4356 = vmatmul.mubr.bf16.gmra.mrb[28].mxu0 %v2563_v8  ;;  %4388 = vmatmul.mubr.bf16.gmra.mrb[28].mxu1 %v2579_v9  ;;  %v2425_v9 = vld [vmem:[%s5698_s11 + $0x28] sm:$0xff] }
 0x401   : > { %v4329_v11 = vpop.f32.mrb[0].mxu0  ;;  %v4361_v12 = vpop.f32.mrb[0].mxu1 }
 0x402   : > { %v2694_v15 = vadd.f32 %v4329_v11, %v5974_v10  ;;  %v2822_v16 = vadd.f32 %v4361_v12, %v5974_v10  ;;  %v2685_v17 = vpop.f32.mrb[1].mxu0  ;;  %v2813_v18 = vpop.f32.mrb[1].mxu1  ;;  %v2424_v11 = vld [vmem:[%s5698_s11 + $0x20] sm:$0xff] }
 0x403   : > { %v4330_v19 = vpop.f32.mrb[2].mxu0  ;;  %v4362_v20 = vpop.f32.mrb[2].mxu1  ;;  %v2686_v21 = vadd.f32 %v5974_v10, %v2685_v17  ;;  %v2814_v29 = vadd.f32 %v5974_v10, %v2813_v18 }
 0x404   : > { %v2697_v22 = vadd.f32 %v4330_v19, %v5974_v10  ;;  %v2688_v23 = vpop.f32.mrb[3].mxu0  ;;  %v2816_v24 = vpop.f32.mrb[3].mxu1  ;;  %v5982_v25 = vadd.f32 %v2822_v16, %v2454_v13  ;;  %v5984_v26 = vadd.f32 %v2694_v15, %v2422_v14  ;;  %v2825_v30 = vadd.f32 %v4362_v20, %v5974_v10 }
 0x405   : > { %v5994_v32 = vadd.f32 %v2686_v21, %v2420_v28  ;;  %v2689_v41 = vadd.f32 %v5974_v10, %v2688_v23  ;;  %v2817_v42 = vadd.f32 %v5974_v10, %v2816_v24  ;;  %v6004_v44 = vadd.f32 %v2814_v29, %v2452_v35  ;;  %v2457_v24 = vld [vmem:[%s5698_s11 + $0x128] sm:$0xff]  ;;  %v2430_v35 = vld [vmem:[%s5698_s11 + $0x50] sm:$0xff] }
 0x406   : > { %3072 = vadd.xlane.f32.xlu0 %v5982_v25  ;;  %3008 = vadd.xlane.f32.xlu1 %v5984_v26  ;;  %v5992_v31 = vadd.f32 %v2697_v22, %v2423_v27  ;;  %v6002_v43 = vadd.f32 %v2825_v30, %v2455_v34  ;;  %v2456_v27 = vld [vmem:[%s5698_s11 + $0x120] sm:$0xff]  ;;  %v2431_v34 = vld [vmem:[%s5698_s11 + $0x58] sm:$0xff] }
 0x407   : > { %v6012_v51 = vadd.f32 %v2817_v42, %v2453_v47  ;;  %v6014_v52 = vadd.f32 %v2689_v41, %v2421_v48 }
 0x409   : > { %v4333_v33 = vpop.f32.mrb[4].mxu0  ;;  %v4365_v36 = vpop.f32.mrb[4].mxu1 }
 0x40a   : > { %3010 = vadd.xlane.f32.xlu1 %v5992_v31  ;;  %3004 = vadd.xlane.f32.xlu0 %v5994_v32  ;;  %v2701_v37 = vpop.f32.mrb[5].mxu0  ;;  %v2829_v38 = vpop.f32.mrb[5].mxu1  ;;  %v2710_v49 = vadd.f32 %v4333_v33, %v5974_v10  ;;  %v2838_v61 = vadd.f32 %v4365_v36, %v5974_v10 }
 0x40b   : > { %v4334_v39 = vpop.f32.mrb[6].mxu0  ;;  %v4366_v40 = vpop.f32.mrb[6].mxu1  ;;  %v2702_v5 = vadd.f32 %v5974_v10, %v2701_v37  ;;  %v2830_v18 = vadd.f32 %v5974_v10, %v2829_v38 }
 0x40c   : > { %v2704_v45 = vpop.f32.mrb[7].mxu0  ;;  %v2832_v46 = vpop.f32.mrb[7].mxu1  ;;  %v2713_v50 = vadd.f32 %v4334_v39, %v5974_v10  ;;  %v2841_v62 = vadd.f32 %v4366_v40, %v5974_v10  ;;  %v6028_v0 = vadd.f32 %v2710_v49, %v2426_v54  ;;  %v6042_v8 = vadd.f32 %v2838_v61, %v2458_v4  ;;  %v2462_v61 = vld [vmem:[%s5698_s11 + $0x150] sm:$0xff] }
 0x40d   : > { %v2705_v6 = vadd.f32 %v5974_v10, %v2704_v45  ;;  %v2833_v19 = vadd.f32 %v5974_v10, %v2832_v46  ;;  %v6064_v21 = vadd.f32 %v2702_v5, %v2424_v11  ;;  %v6078_v33 = vadd.f32 %v2830_v18, %v2456_v27  ;;  %v2429_v11 = vld [vmem:[%s5698_s11 + $0x48] sm:$0xff]  ;;  %v2428_v18 = vld [vmem:[%s5698_s11 + $0x40] sm:$0xff] }
 0x40e   : > { %3074 = vadd.xlane.f32.xlu1 %v6002_v43  ;;  %3068 = vadd.xlane.f32.xlu0 %v6004_v44  ;;  %v6026_v63 = vadd.f32 %v2713_v50, %v2427_v53  ;;  %v6040_v7 = vadd.f32 %v2841_v62, %v2459_v3 }
 0x40f   : > { %v6062_v20 = vadd.f32 %v2705_v6, %v2425_v9  ;;  %v6076_v30 = vadd.f32 %v2833_v19, %v2457_v24 }
 0x411   : > { %v4337_v55 = vpop.f32.mrb[8].mxu0  ;;  %v4369_v56 = vpop.f32.mrb[8].mxu1 }
 0x412   : > { %3070 = vadd.xlane.f32.xlu1 %v6012_v51  ;;  %3006 = vadd.xlane.f32.xlu0 %v6014_v52  ;;  %v6020_v57 = vpop.f32.mrb[9].mxu0  ;;  %v6022_v58 = vpop.f32.mrb[9].mxu1  ;;  %v2726_v28 = vadd.f32 %v4337_v55, %v5974_v10  ;;  %v2854_v42 = vadd.f32 %v4369_v56, %v5974_v10 }
 0x413   : > { %v4338_v59 = vpop.f32.mrb[10].mxu0  ;;  %v4370_v60 = vpop.f32.mrb[10].mxu1  ;;  %v2718_v4 = vadd.f32 %v5974_v10, %v6020_v57 }
 0x414   : > { %v6030_v1 = vpop.f32.mrb[11].mxu0  ;;  %v6032_v2 = vpop.f32.mrb[11].mxu1  ;;  %v2729_v29 = vadd.f32 %v4338_v59, %v5974_v10  ;;  %v2857_v45 = vadd.f32 %v4370_v60, %v5974_v10  ;;  %v6100_v53 = vadd.f32 %v2726_v28, %v2430_v35  ;;  %v2463_v60 = vld [vmem:[%s5698_s11 + $0x158] sm:$0xff]  ;;  %v6124_v9 = vadd.f32 %v2854_v42, %v2462_v61 }
 0x415   : > { %v2721_v5 = vadd.f32 %v5974_v10, %v6030_v1  ;;  %v6148_v42 = vadd.f32 %v2718_v4, %v2428_v18  ;;  %v2435_v18 = vld [vmem:[%s5698_s11 + $0x78] sm:$0xff] }
 0x416   : > { %3018 = vadd.xlane.f32.xlu1 %v6026_v63  ;;  %3016 = vadd.xlane.f32.xlu0 %v6028_v0  ;;  %v6098_v50 = vadd.f32 %v2729_v29, %v2431_v34  ;;  %v6122_v6 = vadd.f32 %v2857_v45, %v2463_v60  ;;  %7193 = vst [vmem:[#allocation29_spill] sm:$0xff] %v6124_v9 }
 0x417   : > { %v2846_v29 = vadd.f32 %v5974_v10, %v6022_v58  ;;  %v2849_v34 = vadd.f32 %v5974_v10, %v6032_v2  ;;  %7195 = vst [vmem:[#allocation31_spill] sm:$0xff] %v6148_v42 }
 0x418   : > { %7192 = vst [vmem:[#allocation28_spill] sm:$0xff] %v6122_v6 }
 0x419   : > { %v6046_v12 = vpop.f32.mrb[12].mxu0  ;;  %v6048_v13 = vpop.f32.mrb[12].mxu1 }
 0x41a   : > { %3082 = vadd.xlane.f32.xlu1 %v6040_v7  ;;  %3080 = vadd.xlane.f32.xlu0 %v6042_v8  ;;  %v6052_v14 = vpop.f32.mrb[13].mxu0  ;;  %v6054_v15 = vpop.f32.mrb[13].mxu1  ;;  %v2742_v61 = vadd.f32 %v6046_v12, %v5974_v10 }
 0x41b   : > { %v6056_v16 = vpop.f32.mrb[14].mxu0  ;;  %v6058_v17 = vpop.f32.mrb[14].mxu1 }
 0x41c   : > { %v6066_v22 = vpop.f32.mrb[15].mxu0  ;;  %v6068_v23 = vpop.f32.mrb[15].mxu1  ;;  %v2745_v4 = vadd.f32 %v6056_v16, %v5974_v10 }
 0x41e   : > { %3014 = vadd.xlane.f32.xlu1 %v6062_v20  ;;  %3012 = vadd.xlane.f32.xlu0 %v6064_v21 }
 0x421   : > { %v4345_v36 = vpop.f32.mrb[16].mxu0  ;;  %v4377_v37 = vpop.f32.mrb[16].mxu1 }
 0x422   : > { %3078 = vadd.xlane.f32.xlu1 %v6076_v30  ;;  %3076 = vadd.xlane.f32.xlu0 %v6078_v33  ;;  %v6085_v38 = vadd.f32 %v4345_v36, %v5974_v10  ;;  %v2749_v39 = vpop.f32.mrb[17].mxu0  ;;  %v6088_v40 = vadd.f32 %v4377_v37, %v5974_v10  ;;  %v2877_v41 = vpop.f32.mrb[17].mxu1 }
 0x423   : > { %v6093_v46 = vadd.f32 %v5974_v10, %v2749_v39  ;;  %v4346_v47 = vpop.f32.mrb[18].mxu0  ;;  %v6096_v48 = vadd.f32 %v5974_v10, %v2877_v41  ;;  %v4378_v49 = vpop.f32.mrb[18].mxu1  ;;  %v6146_v41 = vadd.f32 %v2721_v5, %v2429_v11 }
 0x424   : > { %v6103_v54 = vadd.f32 %v4346_v47, %v5974_v10  ;;  %v2752_v55 = vpop.f32.mrb[19].mxu0  ;;  %v6106_v56 = vadd.f32 %v4378_v49, %v5974_v10  ;;  %v2880_v59 = vpop.f32.mrb[19].mxu1  ;;  %v2461_v49 = vld [vmem:[%s5698_s11 + $0x148] sm:$0xff] }
 0x425   : > { %v6111_v62 = vadd.f32 %v5974_v10, %v2752_v55  ;;  %v6114_v3 = vadd.f32 %v5974_v10, %v2880_v59  ;;  %7194 = vst [vmem:[#allocation30_spill] sm:$0xff] %v6146_v41  ;;  %v2460_v55 = vld [vmem:[%s5698_s11 + $0x140] sm:$0xff]  ;;  %v6170_v5 = vadd.f32 %v2849_v34, %v2461_v49 }
 0x426   : > { %3026 = vadd.xlane.f32.xlu1 %v6098_v50  ;;  %3024 = vadd.xlane.f32.xlu0 %v6100_v53  ;;  %v6172_v11 = vadd.f32 %v2846_v29, %v2460_v55  ;;  %v2870_v29 = vadd.f32 %v6048_v13, %v5974_v10  ;;  %v6194_v55 = vadd.f32 %v2745_v4, %v2435_v18 }
 0x427   : > { %7196 = vst [vmem:[#allocation32_spill] sm:$0xff] %v6170_v5  ;;  %v2737_v18 = vadd.f32 %v5974_v10, %v6066_v22 }
 0x428   : > { %7197 = vst [vmem:[#allocation33_spill] sm:$0xff] %v6172_v11  ;;  %7198 = vst [vmem:[#allocation34_spill] sm:$0xff] %v6194_v55 }
 0x429   : > { %v4349_v19 = vpop.f32.mrb[20].mxu0  ;;  %v4381_v24 = vpop.f32.mrb[20].mxu1 }
 0x42a   : > { %3090 = vadd.xlane.f32.xlu1 %v6122_v6  ;;  %3088 = vadd.xlane.f32.xlu0 %v6124_v9  ;;  %v6131_v27 = vadd.f32 %v4349_v19, %v5974_v10  ;;  %v2765_v57 = vpop.f32.mrb[21].mxu0  ;;  %v6134_v1 = vadd.f32 %v4381_v24, %v5974_v10  ;;  %v2893_v28 = vpop.f32.mrb[21].mxu1  ;;  %v2434_v19 = vld [vmem:[%s5698_s11 + $0x70] sm:$0xff]  ;;  %v2465_v6 = vld [vmem:[%s5698_s11 + $0x168] sm:$0xff] }
 0x42b   : > { %v6141_v35 = vadd.f32 %v5974_v10, %v2765_v57  ;;  %v4350_v36 = vpop.f32.mrb[22].mxu0  ;;  %v6144_v37 = vadd.f32 %v5974_v10, %v2893_v28  ;;  %v4382_v39 = vpop.f32.mrb[22].mxu1 }
 0x42c   : > { %v6151_v45 = vadd.f32 %v4350_v36, %v5974_v10  ;;  %v2768_v58 = vpop.f32.mrb[23].mxu0  ;;  %v6154_v2 = vadd.f32 %v4382_v39, %v5974_v10  ;;  %v2896_v47 = vpop.f32.mrb[23].mxu1  ;;  %v2873_v36 = vadd.f32 %v6058_v17, %v5974_v10 }
 0x42d   : > { %v6159_v59 = vadd.f32 %v5974_v10, %v2768_v58  ;;  %v6162_v60 = vadd.f32 %v5974_v10, %v2896_v47 }
 0x42e   : > { %3022 = vadd.xlane.f32.xlu1 %v6146_v41  ;;  %3020 = vadd.xlane.f32.xlu0 %v6148_v42 }
 0x431   : > { %v4353_v24 = vpop.f32.mrb[24].mxu0  ;;  %v4385_v57 = vpop.f32.mrb[24].mxu1 }
 0x432   : > { %3086 = vadd.xlane.f32.xlu1 %v6170_v5  ;;  %3084 = vadd.xlane.f32.xlu0 %v6172_v11  ;;  %v6179_v28 = vadd.f32 %v4353_v24, %v5974_v10  ;;  %v2781_v12 = vpop.f32.mrb[25].mxu0  ;;  %v6182_v16 = vadd.f32 %v4385_v57, %v5974_v10  ;;  %v2909_v34 = vpop.f32.mrb[25].mxu1  ;;  %v6196_v24 = vadd.f32 %v2742_v61, %v2434_v19  ;;  %v2467_v5 = vld [vmem:[%s5698_s11 + $0x178] sm:$0xff]  ;;  %v2466_v11 = vld [vmem:[%s5698_s11 + $0x170] sm:$0xff] }
 0x433   : > { %v6189_v39 = vadd.f32 %v5974_v10, %v2781_v12  ;;  %v4354_v58 = vpop.f32.mrb[26].mxu0  ;;  %v6192_v47 = vadd.f32 %v5974_v10, %v2909_v34  ;;  %v4386_v49 = vpop.f32.mrb[26].mxu1  ;;  %v2734_v61 = vadd.f32 %v5974_v10, %v6052_v14  ;;  %v6218_v19 = vadd.f32 %v2873_v36, %v2467_v5 }
 0x434   : > { %7199 = vst [vmem:[#allocation35_spill] sm:$0xff] %v6196_v24  ;;  %v6199_v57 = vadd.f32 %v4354_v58, %v5974_v10  ;;  %v2784_v13 = vpop.f32.mrb[27].mxu0  ;;  %v6202_v17 = vadd.f32 %v4386_v49, %v5974_v10  ;;  %v2912_v12 = vpop.f32.mrb[27].mxu1  ;;  %v6220_v58 = vadd.f32 %v2870_v29, %v2466_v11  ;;  %v2433_v49 = vld [vmem:[%s5698_s11 + $0x68] sm:$0xff]  ;;  %v2862_v11 = vadd.f32 %v5974_v10, %v6054_v15 }
 0x435   : > { %v6207_v34 = vadd.f32 %v5974_v10, %v2784_v13  ;;  %v6210_v4 = vadd.f32 %v5974_v10, %v2912_v12  ;;  %7200 = vst [vmem:[#allocation36_spill] sm:$0xff] %v6218_v19  ;;  %v2432_v13 = vld [vmem:[%s5698_s11 + $0x60] sm:$0xff]  ;;  %v2865_v29 = vadd.f32 %v5974_v10, %v6068_v23 }
 0x436   : > { %3034 = vadd.xlane.f32.xlu1 %v6194_v55  ;;  %3032 = vadd.xlane.f32.xlu0 %v6196_v24  ;;  %7201 = vst [vmem:[#allocation37_spill] sm:$0xff] %v6220_v58  ;;  %v6242_v55 = vadd.f32 %v2737_v18, %v2433_v49  ;;  %v2438_v49 = vld [vmem:[%s5698_s11 + $0x90] sm:$0xff] }
 0x439   : > { %v4357_v41 = vpop.f32.mrb[28].mxu0  ;;  %v4389_v42 = vpop.f32.mrb[28].mxu1 }
 0x43a   : > { %3098 = vadd.xlane.f32.xlu1 %v6218_v19  ;;  %3096 = vadd.xlane.f32.xlu0 %v6220_v58  ;;  %v6227_v12 = vadd.f32 %v4357_v41, %v5974_v10  ;;  %v2797_v14 = vpop.f32.mrb[29].mxu0  ;;  %v6230_v22 = vadd.f32 %v4389_v42, %v5974_v10  ;;  %v2925_v5 = vpop.f32.mrb[29].mxu1  ;;  %v6244_v42 = vadd.f32 %v2734_v61, %v2432_v13 }
 0x43b   : > { %v6237_v36 = vadd.f32 %v5974_v10, %v2797_v14  ;;  %v4358_v19 = vpop.f32.mrb[30].mxu0  ;;  %v6240_v41 = vadd.f32 %v5974_v10, %v2925_v5  ;;  %v4390_v58 = vpop.f32.mrb[30].mxu1  ;;  %v2464_v5 = vld [vmem:[%s5698_s11 + $0x160] sm:$0xff]  ;;  %v6262_v61 = vadd.f32 %v2865_v29, %v2465_v6  ;;  %v6274_v13 = vadd.f32 %v6085_v38, %v2438_v49  ;;  %v2437_v29 = vld [vmem:[%s5698_s11 + $0x88] sm:$0xff] }
 0x43c   : > { %v6247_v24 = vadd.f32 %v4358_v19, %v5974_v10  ;;  %v2800_v15 = vpop.f32.mrb[31].mxu0  ;;  %v6250_v23 = vadd.f32 %v4390_v58, %v5974_v10  ;;  %v2928_v14 = vpop.f32.mrb[31].mxu1  ;;  %v6264_v19 = vadd.f32 %v2862_v11, %v2464_v5  ;;  %v2439_v58 = vld [vmem:[%s5698_s11 + $0x98] sm:$0xff]  ;;  %v6291_v38 = vadd.f32 %v6111_v62, %v2437_v29  ;;  %v2442_v62 = vld [vmem:[%s5698_s11 + $0xb0] sm:$0xff] }
 0x43d   : > { %v6255_v9 = vadd.f32 %v5974_v10, %v2800_v15  ;;  %v6258_v18 = vadd.f32 %v5974_v10, %v2928_v14  ;;  %v6271_v10 = vadd.f32 %v6103_v54, %v2439_v58  ;;  %v2471_v15 = vld [vmem:[%s5698_s11 + $0x198] sm:$0xff]  ;;  %v2470_v14 = vld [vmem:[%s5698_s11 + $0x190] sm:$0xff]  ;;  %v2436_v54 = vld [vmem:[%s5698_s11 + $0x80] sm:$0xff] }
 0x43e   : > { %3030 = vadd.xlane.f32.xlu1 %v6242_v55  ;;  %3028 = vadd.xlane.f32.xlu0 %v6244_v42  ;;  %v6281_v6 = vadd.f32 %v6106_v56, %v2471_v15  ;;  %v6284_v11 = vadd.f32 %v6088_v40, %v2470_v14  ;;  %v6294_v5 = vadd.f32 %v6093_v46, %v2436_v54  ;;  %v2469_v58 = vld [vmem:[%s5698_s11 + $0x188] sm:$0xff]  ;;  %v2468_v56 = vld [vmem:[%s5698_s11 + $0x180] sm:$0xff]  ;;  %v2443_v15 = vld [vmem:[%s5698_s11 + $0xb8] sm:$0xff] }
 0x43f   : > { %v6301_v40 = vadd.f32 %v6114_v3, %v2469_v58  ;;  %v6304_v49 = vadd.f32 %v6096_v48, %v2468_v56  ;;  %v6311_v46 = vadd.f32 %v6151_v45, %v2443_v15  ;;  %v6314_v14 = vadd.f32 %v6131_v27, %v2442_v62  ;;  %v2475_v29 = vld [vmem:[%s5698_s11 + $0x1b8] sm:$0xff]  ;;  %v2474_v3 = vld [vmem:[%s5698_s11 + $0x1b0] sm:$0xff]  ;;  %v2441_v58 = vld [vmem:[%s5698_s11 + $0xa8] sm:$0xff] }
 0x440   : > { %v6321_v48 = vadd.f32 %v6154_v2, %v2475_v29  ;;  %v6324_v54 = vadd.f32 %v6134_v1, %v2474_v3  ;;  %v2440_v45 = vld [vmem:[%s5698_s11 + $0xa0] sm:$0xff]  ;;  %v6331_v27 = vadd.f32 %v6159_v59, %v2441_v58  ;;  %v2473_v15 = vld [vmem:[%s5698_s11 + $0x1a8] sm:$0xff]  ;;  %v2447_v29 = vld [vmem:[%s5698_s11 + $0xd8] sm:$0xff] }
 0x441   : > { %v6334_v56 = vadd.f32 %v6141_v35, %v2440_v45  ;;  %v2472_v2 = vld [vmem:[%s5698_s11 + $0x1a0] sm:$0xff]  ;;  %v6341_v1 = vadd.f32 %v6162_v60, %v2473_v15  ;;  %v2446_v59 = vld [vmem:[%s5698_s11 + $0xd0] sm:$0xff]  ;;  %v6351_v35 = vadd.f32 %v6199_v57, %v2447_v29  ;;  %v2479_v58 = vld [vmem:[%s5698_s11 + $0x1d8] sm:$0xff] }
 0x442   : > { %3094 = vadd.xlane.f32.xlu1 %v6262_v61  ;;  %3092 = vadd.xlane.f32.xlu0 %v6264_v19  ;;  %v6344_v62 = vadd.f32 %v6144_v37, %v2472_v2  ;;  %v6354_v3 = vadd.f32 %v6179_v28, %v2446_v59  ;;  %v2478_v60 = vld [vmem:[%s5698_s11 + $0x1d0] sm:$0xff]  ;;  %v6361_v37 = vadd.f32 %v6202_v17, %v2479_v58  ;;  %v2445_v15 = vld [vmem:[%s5698_s11 + $0xc8] sm:$0xff]  ;;  %v2444_v57 = vld [vmem:[%s5698_s11 + $0xc0] sm:$0xff] }
 0x443   : > { %v6364_v45 = vadd.f32 %v6182_v16, %v2478_v60  ;;  %v6371_v28 = vadd.f32 %v6207_v34, %v2445_v15  ;;  %v6374_v2 = vadd.f32 %v6189_v39, %v2444_v57  ;;  %v2477_v29 = vld [vmem:[%s5698_s11 + $0x1c8] sm:$0xff]  ;;  %v2476_v17 = vld [vmem:[%s5698_s11 + $0x1c0] sm:$0xff]  ;;  %v2451_v58 = vld [vmem:[%s5698_s11 + $0xf8] sm:$0xff] }
 0x444   : > { %v6381_v16 = vadd.f32 %v6210_v4, %v2477_v29  ;;  %v6384_v59 = vadd.f32 %v6192_v47, %v2476_v17  ;;  %v2450_v34 = vld [vmem:[%s5698_s11 + $0xf0] sm:$0xff]  ;;  %v6391_v39 = vadd.f32 %v6247_v24, %v2451_v58  ;;  %v2483_v15 = vld [vmem:[%s5698_s11 + $0x1f8] sm:$0xff]  ;;  %v2449_v29 = vld [vmem:[%s5698_s11 + $0xe8] sm:$0xff] }
 0x445   : > { %v6394_v60 = vadd.f32 %v6227_v12, %v2450_v34  ;;  %v2482_v4 = vld [vmem:[%s5698_s11 + $0x1f0] sm:$0xff]  ;;  %v6401_v47 = vadd.f32 %v6250_v23, %v2483_v15  ;;  %v2448_v17 = vld [vmem:[%s5698_s11 + $0xe0] sm:$0xff]  ;;  %v6411_v24 = vadd.f32 %v6255_v9, %v2449_v29  ;;  %v2481_v58 = vld [vmem:[%s5698_s11 + $0x1e8] sm:$0xff] }
 0x446   : > { %3042 = vadd.xlane.f32.xlu1 %v6271_v10  ;;  %3040 = vadd.xlane.f32.xlu0 %v6274_v13  ;;  %v6404_v57 = vadd.f32 %v6230_v22, %v2482_v4  ;;  %v6414_v12 = vadd.f32 %v6237_v36, %v2448_v17  ;;  %v2480_v34 = vld [vmem:[%s5698_s11 + $0x1e0] sm:$0xff]  ;;  %v6421_v22 = vadd.f32 %v6258_v18, %v2481_v58  ;;  %s5079_s11 = sshll.u32 %s5236_s20, 4  ;;  %s5080_s11 = int_to_ptr.vmem [resolvable:$false] %s5079_s11 }
 0x447   : > { %7202 = vst [vmem:[#allocation38_spill] sm:$0xff] %v6401_v47  ;;  %v6424_v23 = vadd.f32 %v6240_v41, %v2480_v34  ;;  %s5081_s9 = scalar_lea.vmem %s5080_s11, 16384  ;;  %p5082_p3 = scmp.lt.s32.totalorder %s7011_s4, %s5080_s11 }
 0x448   : > { %7203 = vst [vmem:[#allocation39_spill] sm:$0xff] %v6404_v57  ;;  %p5083_p11 = scmp.lt.s32.totalorder %s5081_s9, %s5075_s7 }
 0x449   : > { %7204 = vst [vmem:[#allocation40_spill] sm:$0xff] %v6424_v23 }
 0x44a   : > { %3106 = vadd.xlane.f32.xlu1 %v6281_v6  ;;  %3104 = vadd.xlane.f32.xlu0 %v6284_v11  ;;  %p5084_p5 = por %p5083_p11, %p5082_p3 }
 0x44c   : > { %p5085_p1 = pnand %p5084_p5, %p5078_p6 }
 0x44e   : > { %3038 = vadd.xlane.f32.xlu1 %v6291_v38  ;;  %3036 = vadd.xlane.f32.xlu0 %v6294_v5 }
 0x452   : > { %3102 = vadd.xlane.f32.xlu1 %v6301_v40  ;;  %3100 = vadd.xlane.f32.xlu0 %v6304_v49 }
 0x456   : > { %3050 = vadd.xlane.f32.xlu1 %v6311_v46  ;;  %3048 = vadd.xlane.f32.xlu0 %v6314_v14 }
 0x45a   : > { %3114 = vadd.xlane.f32.xlu1 %v6321_v48  ;;  %3112 = vadd.xlane.f32.xlu0 %v6324_v54 }
 0x45e   : > { %3046 = vadd.xlane.f32.xlu1 %v6331_v27  ;;  %3044 = vadd.xlane.f32.xlu0 %v6334_v56 }
 0x462   : > { %3110 = vadd.xlane.f32.xlu1 %v6341_v1  ;;  %3108 = vadd.xlane.f32.xlu0 %v6344_v62 }
 0x466   : > { %3058 = vadd.xlane.f32.xlu1 %v6351_v35  ;;  %3056 = vadd.xlane.f32.xlu0 %v6354_v3 }
 0x46a   : > { %3122 = vadd.xlane.f32.xlu1 %v6361_v37  ;;  %3120 = vadd.xlane.f32.xlu0 %v6364_v45 }
 0x46e   : > { %3054 = vadd.xlane.f32.xlu1 %v6371_v28  ;;  %3052 = vadd.xlane.f32.xlu0 %v6374_v2 }
 0x472   : > { %3118 = vadd.xlane.f32.xlu1 %v6381_v16  ;;  %3116 = vadd.xlane.f32.xlu0 %v6384_v59 }
 0x476   : > { %3066 = vadd.xlane.f32.xlu1 %v6391_v39  ;;  %3064 = vadd.xlane.f32.xlu0 %v6394_v60 }
 0x47a   : > { %3130 = vadd.xlane.f32.xlu1 %v6401_v47  ;;  %3128 = vadd.xlane.f32.xlu0 %v6404_v57 }
 0x47e   : > { %3062 = vadd.xlane.f32.xlu1 %v6411_v24  ;;  %3060 = vadd.xlane.f32.xlu0 %v6414_v12 }
 0x482   : > { %3126 = vadd.xlane.f32.xlu1 %v6421_v22  ;;  %3124 = vadd.xlane.f32.xlu0 %v6424_v23 }
 0x493   : > { %v3073_v9 = vpop.xlane.xlu0 %3072  ;;  %v3009_v15 = vpop.xlane.xlu1 %3008 }
 0x494   : > { %v3167_v36 = vmul.f32 0.0078125, %v3073_v9  ;;  %v3135_v4 = vmul.f32 0.0078125, %v3009_v15 }
 0x496   : > { %v6429_v29 = vsub.f32 %v5984_v26, %v3135_v4  ;;  %v6432_v47 = vsub.f32 %v5982_v25, %v3167_v36 }
 0x497   : > { %v3011_v17 = vpop.xlane.xlu1 %3010  ;;  %v3005_v57 = vpop.xlane.xlu0 %3004 }
 0x498   : > { %7205 = vst [vmem:[#allocation41_spill] sm:$0xff] %v6432_v47  ;;  %v3136_v18 = vmul.f32 0.0078125, %v3011_v17  ;;  %v3133_v58 = vmul.f32 0.0078125, %v3005_v57  ;;  %v3263_v41 = vmul.f32 %v6429_v29, %v6429_v29  ;;  %v3295_v26 = vmul.f32 %v6432_v47, %v6432_v47 }
 0x49a   : > { %3329 = vadd.xlane.f32.xlu0 %v3263_v41  ;;  %v6437_v34 = vsub.f32 %v5992_v31, %v3136_v18  ;;  %v6444_v36 = vsub.f32 %v5994_v32, %v3133_v58 }
 0x49b   : > { %v3075_v23 = vpop.xlane.xlu1 %3074  ;;  %v3069_v9 = vpop.xlane.xlu0 %3068 }
 0x49c   : > { %v3168_v15 = vmul.f32 0.0078125, %v3075_v23  ;;  %v3165_v4 = vmul.f32 0.0078125, %v3069_v9  ;;  %v3264_v25 = vmul.f32 %v6437_v34, %v6437_v34  ;;  %v3261_v9 = vmul.f32 %v6444_v36, %v6444_v36 }
 0x49e   : > { %3331 = vadd.xlane.f32.xlu1 %v3264_v25  ;;  %3393 = vadd.xlane.f32.xlu0 %v3295_v26  ;;  %v6447_v57 = vsub.f32 %v6002_v43, %v3168_v15  ;;  %v6450_v18 = vsub.f32 %v6004_v44, %v3165_v4 }
 0x49f   : > { %v3071_v31 = vpop.xlane.xlu1 %3070  ;;  %v3007_v17 = vpop.xlane.xlu0 %3006 }
 0x4a0   : > { %v3166_v41 = vmul.f32 0.0078125, %v3071_v31  ;;  %v3134_v47 = vmul.f32 0.0078125, %v3007_v17  ;;  %v3296_v23 = vmul.f32 %v6447_v57, %v6447_v57  ;;  %v3293_v26 = vmul.f32 %v6450_v18, %v6450_v18 }
 0x4a2   : > { %3395 = vadd.xlane.f32.xlu1 %v3296_v23  ;;  %3325 = vadd.xlane.f32.xlu0 %v3261_v9  ;;  %v6457_v32 = vsub.f32 %v6014_v52, %v3134_v47  ;;  %v6464_v25 = vsub.f32 %v6012_v51, %v3166_v41 }
 0x4a3   : > { %v3019_v43 = vpop.xlane.xlu1 %3018  ;;  %v3017_v58 = vpop.xlane.xlu0 %3016 }
 0x4a4   : > { %v3140_v44 = vmul.f32 0.0078125, %v3019_v43  ;;  %v3139_v15 = vmul.f32 0.0078125, %v3017_v58  ;;  %v3262_v4 = vmul.f32 %v6457_v32, %v6457_v32  ;;  %v3294_v43 = vmul.f32 %v6464_v25, %v6464_v25 }
 0x4a6   : > { %3389 = vadd.xlane.f32.xlu0 %v3293_v26  ;;  %3327 = vadd.xlane.f32.xlu1 %v3262_v4  ;;  %v6467_v31 = vsub.f32 %v6028_v0, %v3139_v15  ;;  %v6470_v17 = vsub.f32 %v6026_v63, %v3140_v44 }
 0x4a7   : > { %v3083_v52 = vpop.xlane.xlu1 %3082  ;;  %v3081_v47 = vpop.xlane.xlu0 %3080 }
 0x4a8   : > { %v3172_v23 = vmul.f32 0.0078125, %v3083_v52  ;;  %v3171_v9 = vmul.f32 0.0078125, %v3081_v47  ;;  %v3267_v58 = vmul.f32 %v6467_v31, %v6467_v31  ;;  %v3268_v26 = vmul.f32 %v6470_v17, %v6470_v17 }
 0x4aa   : > { %3391 = vadd.xlane.f32.xlu1 %v3294_v43  ;;  %3337 = vadd.xlane.f32.xlu0 %v3267_v58  ;;  %v6477_v51 = vsub.f32 %v6042_v8, %v3171_v9  ;;  %v6484_v4 = vsub.f32 %v6040_v7, %v3172_v23 }
 0x4ab   : > { %v3015_v0 = vpop.xlane.xlu1 %3014  ;;  %v3013_v41 = vpop.xlane.xlu0 %3012 }
 0x4ac   : > { %v3138_v63 = vmul.f32 0.0078125, %v3015_v0  ;;  %v3137_v44 = vmul.f32 0.0078125, %v3013_v41  ;;  %v3299_v15 = vmul.f32 %v6477_v51, %v6477_v51  ;;  %v3300_v0 = vmul.f32 %v6484_v4, %v6484_v4 }
 0x4ae   : > { %3339 = vadd.xlane.f32.xlu1 %v3268_v26  ;;  %3401 = vadd.xlane.f32.xlu0 %v3299_v15  ;;  %v6487_v52 = vsub.f32 %v6064_v21, %v3137_v44  ;;  %v6490_v9 = vsub.f32 %v6062_v20, %v3138_v63 }
 0x4af   : > { %v3079_v8 = vpop.xlane.xlu1 %3078  ;;  %v3077_v47 = vpop.xlane.xlu0 %3076 }
 0x4b0   : > { %v3170_v43 = vmul.f32 0.0078125, %v3079_v8  ;;  %v3169_v58 = vmul.f32 0.0078125, %v3077_v47  ;;  %v3265_v41 = vmul.f32 %v6487_v52, %v6487_v52  ;;  %v3266_v26 = vmul.f32 %v6490_v9, %v6490_v9 }
 0x4b2   : > { %3403 = vadd.xlane.f32.xlu1 %v3300_v0  ;;  %3333 = vadd.xlane.f32.xlu0 %v3265_v41  ;;  %v6497_v7 = vsub.f32 %v6078_v33, %v3169_v58  ;;  %v6504_v15 = vsub.f32 %v6076_v30, %v3170_v43  ;;  %v7210_v30 = vld [vmem:[#allocation29_spill] sm:$0xff] }
 0x4b3   : > { %v3027_v21 = vpop.xlane.xlu1 %3026  ;;  %v3025_v23 = vpop.xlane.xlu0 %3024 }
 0x4b4   : > { %7206 = vst [vmem:[#allocation42_spill] sm:$0xff] %v6497_v7  ;;  %v3144_v20 = vmul.f32 0.0078125, %v3027_v21  ;;  %v3143_v63 = vmul.f32 0.0078125, %v3025_v23  ;;  %v3297_v44 = vmul.f32 %v6497_v7, %v6497_v7  ;;  %7207 = vst [vmem:[#allocation43_spill] sm:$0xff] %v6504_v15  ;;  %v3298_v21 = vmul.f32 %v6504_v15, %v6504_v15 }
 0x4b6   : > { %3335 = vadd.xlane.f32.xlu1 %v3266_v26  ;;  %3397 = vadd.xlane.f32.xlu0 %v3297_v44  ;;  %v6507_v8 = vsub.f32 %v6100_v53, %v3143_v63  ;;  %v6510_v58 = vsub.f32 %v6098_v50, %v3144_v20 }
 0x4b7   : > { %v3091_v33 = vpop.xlane.xlu1 %3090  ;;  %v3089_v47 = vpop.xlane.xlu0 %3088 }
 0x4b8   : > { %7208 = vst [vmem:[#allocation44_spill] sm:$0xff] %v6507_v8  ;;  %7209 = vst [vmem:[#allocation45_spill] sm:$0xff] %v6510_v58  ;;  %v3176_v0 = vmul.f32 0.0078125, %v3091_v33  ;;  %v3175_v41 = vmul.f32 0.0078125, %v3089_v47  ;;  %v3271_v23 = vmul.f32 %v6507_v8, %v6507_v8  ;;  %v3272_v63 = vmul.f32 %v6510_v58, %v6510_v58  ;;  %v7212_v33 = vld [vmem:[#allocation28_spill] sm:$0xff]  ;;  %v7216_v8 = vld [vmem:[#allocation30_spill] sm:$0xff] }
 0x4ba   : > { %3399 = vadd.xlane.f32.xlu1 %v3298_v21  ;;  %3345 = vadd.xlane.f32.xlu0 %v3271_v23  ;;  %v6517_v43 = vsub.f32 %v7210_v30, %v3175_v41  ;;  %v6524_v47 = vsub.f32 %v7212_v33, %v3176_v0  ;;  %v7214_v21 = vld [vmem:[#allocation31_spill] sm:$0xff]  ;;  %v7218_v0 = vld [vmem:[#allocation33_spill] sm:$0xff] }
 0x4bb   : > { %v3023_v53 = vpop.xlane.xlu1 %3022  ;;  %v3021_v26 = vpop.xlane.xlu0 %3020 }
 0x4bc   : > { %7211 = vst [vmem:[#allocation29_spill] sm:$0xff] %v6517_v43  ;;  %v3142_v50 = vmul.f32 0.0078125, %v3023_v53  ;;  %v3141_v20 = vmul.f32 0.0078125, %v3021_v26  ;;  %v3303_v44 = vmul.f32 %v6517_v43, %v6517_v43  ;;  %7213 = vst [vmem:[#allocation28_spill] sm:$0xff] %v6524_v47  ;;  %v3304_v53 = vmul.f32 %v6524_v47, %v6524_v47 }
 0x4be   : > { %3347 = vadd.xlane.f32.xlu1 %v3272_v63  ;;  %3409 = vadd.xlane.f32.xlu0 %v3303_v44  ;;  %v6527_v23 = vsub.f32 %v7214_v21, %v3141_v20  ;;  %v6530_v15 = vsub.f32 %v7216_v8, %v3142_v50 }
 0x4bf   : > { %v3087_v41 = vpop.xlane.xlu1 %3086  ;;  %v3085_v30 = vpop.xlane.xlu0 %3084 }
 0x4c0   : > { %7215 = vst [vmem:[#allocation31_spill] sm:$0xff] %v6527_v23  ;;  %7217 = vst [vmem:[#allocation30_spill] sm:$0xff] %v6530_v15  ;;  %v3174_v7 = vmul.f32 0.0078125, %v3087_v41  ;;  %v3173_v58 = vmul.f32 0.0078125, %v3085_v30  ;;  %v3269_v26 = vmul.f32 %v6527_v23, %v6527_v23  ;;  %v3270_v33 = vmul.f32 %v6530_v15, %v6530_v15  ;;  %v7219_v41 = vld [vmem:[#allocation32_spill] sm:$0xff]  ;;  %v7222_v23 = vld [vmem:[#allocation34_spill] sm:$0xff] }
 0x4c2   : > { %3411 = vadd.xlane.f32.xlu1 %v3304_v53  ;;  %3341 = vadd.xlane.f32.xlu0 %v3269_v26  ;;  %v6537_v63 = vsub.f32 %v7218_v0, %v3173_v58  ;;  %v6544_v30 = vsub.f32 %v7219_v41, %v3174_v7  ;;  %v7220_v53 = vld [vmem:[#allocation35_spill] sm:$0xff]  ;;  %v7224_v7 = vld [vmem:[#allocation37_spill] sm:$0xff] }
 0x4c3   : > { %v3035_v20 = vpop.xlane.xlu1 %3034  ;;  %v3033_v44 = vpop.xlane.xlu0 %3032 }
 0x4c4   : > { %v3148_v8 = vmul.f32 0.0078125, %v3035_v20  ;;  %v3147_v50 = vmul.f32 0.0078125, %v3033_v44  ;;  %v3301_v21 = vmul.f32 %v6537_v63, %v6537_v63  ;;  %v3302_v20 = vmul.f32 %v6544_v30, %v6544_v30 }
 0x4c6   : > { %3343 = vadd.xlane.f32.xlu1 %v3270_v33  ;;  %3405 = vadd.xlane.f32.xlu0 %v3301_v21  ;;  %v6547_v26 = vsub.f32 %v7220_v53, %v3147_v50  ;;  %v6550_v47 = vsub.f32 %v7222_v23, %v3148_v8 }
 0x4c7   : > { %v3099_v58 = vpop.xlane.xlu1 %3098  ;;  %v3097_v0 = vpop.xlane.xlu0 %3096 }
 0x4c8   : > { %7221 = vst [vmem:[#allocation33_spill] sm:$0xff] %v6547_v26  ;;  %7223 = vst [vmem:[#allocation32_spill] sm:$0xff] %v6550_v47  ;;  %v3180_v43 = vmul.f32 0.0078125, %v3099_v58  ;;  %v3179_v15 = vmul.f32 0.0078125, %v3097_v0  ;;  %v3275_v44 = vmul.f32 %v6547_v26, %v6547_v26  ;;  %v3276_v41 = vmul.f32 %v6550_v47, %v6550_v47  ;;  %v7225_v58 = vld [vmem:[#allocation36_spill] sm:$0xff] }
 0x4ca   : > { %3407 = vadd.xlane.f32.xlu1 %v3302_v20  ;;  %3353 = vadd.xlane.f32.xlu0 %v3275_v44  ;;  %v6557_v33 = vsub.f32 %v7224_v7, %v3179_v15  ;;  %v6564_v0 = vsub.f32 %v7225_v58, %v3180_v43 }
 0x4cb   : > { %v3031_v50 = vpop.xlane.xlu1 %3030  ;;  %v3029_v21 = vpop.xlane.xlu0 %3028 }
 0x4cc   : > { %v3146_v23 = vmul.f32 0.0078125, %v3031_v50  ;;  %v3145_v8 = vmul.f32 0.0078125, %v3029_v21  ;;  %v3307_v53 = vmul.f32 %v6557_v33, %v6557_v33  ;;  %v3308_v50 = vmul.f32 %v6564_v0, %v6564_v0 }
 0x4ce   : > { %3355 = vadd.xlane.f32.xlu1 %v3276_v41  ;;  %3417 = vadd.xlane.f32.xlu0 %v3307_v53  ;;  %v6567_v20 = vsub.f32 %v6244_v42, %v3145_v8  ;;  %v6570_v7 = vsub.f32 %v6242_v55, %v3146_v23 }
 0x4cf   : > { %v3095_v15 = vpop.xlane.xlu1 %3094  ;;  %v3093_v44 = vpop.xlane.xlu0 %3092 }
 0x4d0   : > { %v3178_v26 = vmul.f32 0.0078125, %v3095_v15  ;;  %v3177_v47 = vmul.f32 0.0078125, %v3093_v44  ;;  %v3273_v21 = vmul.f32 %v6567_v20, %v6567_v20  ;;  %v3274_v8 = vmul.f32 %v6570_v7, %v6570_v7 }
 0x4d2   : > { %v6577_v43 = vsub.f32 %v6264_v19, %v3177_v47  ;;  %3419 = vadd.xlane.f32.xlu1 %v3308_v50  ;;  %3349 = vadd.xlane.f32.xlu0 %v3273_v21  ;;  %v6582_v55 = vsub.f32 %v6262_v61, %v3178_v26 }
 0x4d3   : > { %v3043_v42 = vpop.xlane.xlu1 %3042  ;;  %v3041_v41 = vpop.xlane.xlu0 %3040 }
 0x4d4   : > { %v3152_v23 = vmul.f32 0.0078125, %v3043_v42  ;;  %v3151_v53 = vmul.f32 0.0078125, %v3041_v41  ;;  %v3305_v58 = vmul.f32 %v6577_v43, %v6577_v43  ;;  %v3306_v61 = vmul.f32 %v6582_v55, %v6582_v55 }
 0x4d6   : > { %v6587_v15 = vsub.f32 %v6274_v13, %v3151_v53  ;;  %3351 = vadd.xlane.f32.xlu1 %v3274_v8  ;;  %3413 = vadd.xlane.f32.xlu0 %v3305_v58  ;;  %v6590_v19 = vsub.f32 %v6271_v10, %v3152_v23 }
 0x4d7   : > { %v3107_v47 = vpop.xlane.xlu1 %3106  ;;  %v3105_v44 = vpop.xlane.xlu0 %3104 }
 0x4d8   : > { %v3184_v50 = vmul.f32 0.0078125, %v3107_v47  ;;  %v3183_v21 = vmul.f32 0.0078125, %v3105_v44  ;;  %v3279_v26 = vmul.f32 %v6587_v15, %v6587_v15  ;;  %v3280_v10 = vmul.f32 %v6590_v19, %v6590_v19 }
 0x4da   : > { %v6597_v42 = vsub.f32 %v6284_v11, %v3183_v21  ;;  %3415 = vadd.xlane.f32.xlu1 %v3306_v61  ;;  %3361 = vadd.xlane.f32.xlu0 %v3279_v26  ;;  %v6602_v8 = vsub.f32 %v6281_v6, %v3184_v50 }
 0x4db   : > { %v3039_v13 = vpop.xlane.xlu1 %3038  ;;  %v3037_v41 = vpop.xlane.xlu0 %3036 }
 0x4dc   : > { %v3150_v23 = vmul.f32 0.0078125, %v3039_v13  ;;  %v3149_v53 = vmul.f32 0.0078125, %v3037_v41  ;;  %v3311_v58 = vmul.f32 %v6597_v42, %v6597_v42  ;;  %v3312_v6 = vmul.f32 %v6602_v8, %v6602_v8 }
 0x4de   : > { %v6607_v47 = vsub.f32 %v6294_v5, %v3149_v53  ;;  %3363 = vadd.xlane.f32.xlu1 %v3280_v10  ;;  %3425 = vadd.xlane.f32.xlu0 %v3311_v58  ;;  %v6610_v11 = vsub.f32 %v6291_v38, %v3150_v23 }
 0x4df   : > { %v3103_v44 = vpop.xlane.xlu1 %3102  ;;  %v3101_v21 = vpop.xlane.xlu0 %3100 }
 0x4e0   : > { %v3182_v61 = vmul.f32 0.0078125, %v3103_v44  ;;  %v3181_v26 = vmul.f32 0.0078125, %v3101_v21  ;;  %v3277_v50 = vmul.f32 %v6607_v47, %v6607_v47  ;;  %v3278_v38 = vmul.f32 %v6610_v11, %v6610_v11 }
 0x4e2   : > { %v6617_v13 = vsub.f32 %v6304_v49, %v3181_v26  ;;  %3427 = vadd.xlane.f32.xlu1 %v3312_v6  ;;  %3357 = vadd.xlane.f32.xlu0 %v3277_v50  ;;  %v6622_v10 = vsub.f32 %v6301_v40, %v3182_v61 }
 0x4e3   : > { %v3051_v5 = vpop.xlane.xlu1 %3050  ;;  %v3049_v41 = vpop.xlane.xlu0 %3048 }
 0x4e4   : > { %v3156_v23 = vmul.f32 0.0078125, %v3051_v5  ;;  %v3155_v53 = vmul.f32 0.0078125, %v3049_v41  ;;  %v3309_v58 = vmul.f32 %v6617_v13, %v6617_v13  ;;  %v3310_v40 = vmul.f32 %v6622_v10, %v6622_v10 }
 0x4e6   : > { %v6627_v44 = vsub.f32 %v6314_v14, %v3155_v53  ;;  %3359 = vadd.xlane.f32.xlu1 %v3278_v38  ;;  %3421 = vadd.xlane.f32.xlu0 %v3309_v58  ;;  %v6630_v49 = vsub.f32 %v6311_v46, %v3156_v23 }
 0x4e7   : > { %v3115_v21 = vpop.xlane.xlu1 %3114  ;;  %v3113_v26 = vpop.xlane.xlu0 %3112 }
 0x4e8   : > { %v3188_v6 = vmul.f32 0.0078125, %v3115_v21  ;;  %v3187_v50 = vmul.f32 0.0078125, %v3113_v26  ;;  %v3283_v61 = vmul.f32 %v6627_v44, %v6627_v44  ;;  %v3284_v46 = vmul.f32 %v6630_v49, %v6630_v49 }
 0x4ea   : > { %v6637_v5 = vsub.f32 %v6324_v54, %v3187_v50  ;;  %3423 = vadd.xlane.f32.xlu1 %v3310_v40  ;;  %3369 = vadd.xlane.f32.xlu0 %v3283_v61  ;;  %v6642_v38 = vsub.f32 %v6321_v48, %v3188_v6 }
 0x4eb   : > { %v3047_v14 = vpop.xlane.xlu1 %3046  ;;  %v3045_v41 = vpop.xlane.xlu0 %3044 }
 0x4ec   : > { %v3154_v23 = vmul.f32 0.0078125, %v3047_v14  ;;  %v3153_v53 = vmul.f32 0.0078125, %v3045_v41  ;;  %v3315_v58 = vmul.f32 %v6637_v5, %v6637_v5  ;;  %v3316_v48 = vmul.f32 %v6642_v38, %v6642_v38 }
 0x4ee   : > { %v6647_v21 = vsub.f32 %v6334_v56, %v3153_v53  ;;  %3371 = vadd.xlane.f32.xlu1 %v3284_v46  ;;  %3433 = vadd.xlane.f32.xlu0 %v3315_v58  ;;  %v6650_v54 = vsub.f32 %v6331_v27, %v3154_v23 }
 0x4ef   : > { %v3111_v26 = vpop.xlane.xlu1 %3110  ;;  %v3109_v50 = vpop.xlane.xlu0 %3108 }
 0x4f0   : > { %v3186_v40 = vmul.f32 0.0078125, %v3111_v26  ;;  %v3185_v61 = vmul.f32 0.0078125, %v3109_v50  ;;  %v3281_v6 = vmul.f32 %v6647_v21, %v6647_v21  ;;  %v3282_v27 = vmul.f32 %v6650_v54, %v6650_v54 }
 0x4f2   : > { %v6657_v14 = vsub.f32 %v6344_v62, %v3185_v61  ;;  %3435 = vadd.xlane.f32.xlu1 %v3316_v48  ;;  %3365 = vadd.xlane.f32.xlu0 %v3281_v6  ;;  %v6662_v46 = vsub.f32 %v6341_v1, %v3186_v40 }
 0x4f3   : > { %v3059_v56 = vpop.xlane.xlu1 %3058  ;;  %v3057_v41 = vpop.xlane.xlu0 %3056 }
 0x4f4   : > { %v3160_v23 = vmul.f32 0.0078125, %v3059_v56  ;;  %v3159_v53 = vmul.f32 0.0078125, %v3057_v41  ;;  %v3313_v58 = vmul.f32 %v6657_v14, %v6657_v14  ;;  %v3314_v1 = vmul.f32 %v6662_v46, %v6662_v46 }
 0x4f6   : > { %v6667_v26 = vsub.f32 %v6354_v3, %v3159_v53  ;;  %3367 = vadd.xlane.f32.xlu1 %v3282_v27  ;;  %3429 = vadd.xlane.f32.xlu0 %v3313_v58  ;;  %v6670_v62 = vsub.f32 %v6351_v35, %v3160_v23 }
 0x4f7   : > { %v3123_v50 = vpop.xlane.xlu1 %3122  ;;  %v3121_v61 = vpop.xlane.xlu0 %3120 }
 0x4f8   : > { %v3192_v48 = vmul.f32 0.0078125, %v3123_v50  ;;  %v3191_v6 = vmul.f32 0.0078125, %v3121_v61  ;;  %v3287_v40 = vmul.f32 %v6667_v26, %v6667_v26  ;;  %v3288_v35 = vmul.f32 %v6670_v62, %v6670_v62 }
 0x4fa   : > { %v6677_v56 = vsub.f32 %v6364_v45, %v3191_v6  ;;  %3431 = vadd.xlane.f32.xlu1 %v3314_v1  ;;  %3377 = vadd.xlane.f32.xlu0 %v3287_v40  ;;  %v6682_v27 = vsub.f32 %v6361_v37, %v3192_v48 }
 0x4fb   : > { %v3055_v3 = vpop.xlane.xlu1 %3054  ;;  %v3053_v41 = vpop.xlane.xlu0 %3052 }
 0x4fc   : > { %v3158_v23 = vmul.f32 0.0078125, %v3055_v3  ;;  %v3157_v53 = vmul.f32 0.0078125, %v3053_v41  ;;  %v3319_v58 = vmul.f32 %v6677_v56, %v6677_v56  ;;  %v3320_v37 = vmul.f32 %v6682_v27, %v6682_v27 }
 0x4fe   : > { %v6687_v50 = vsub.f32 %v6374_v2, %v3157_v53  ;;  %3379 = vadd.xlane.f32.xlu1 %v3288_v35  ;;  %3441 = vadd.xlane.f32.xlu0 %v3319_v58  ;;  %v6690_v45 = vsub.f32 %v6371_v28, %v3158_v23 }
 0x4ff   : > { %v3119_v61 = vpop.xlane.xlu1 %3118  ;;  %v3117_v6 = vpop.xlane.xlu0 %3116 }
 0x500   : > { %v3190_v1 = vmul.f32 0.0078125, %v3119_v61  ;;  %v3189_v40 = vmul.f32 0.0078125, %v3117_v6  ;;  %v3285_v48 = vmul.f32 %v6687_v50, %v6687_v50  ;;  %v3286_v28 = vmul.f32 %v6690_v45, %v6690_v45 }
 0x502   : > { %v6697_v3 = vsub.f32 %v6384_v59, %v3189_v40  ;;  %3443 = vadd.xlane.f32.xlu1 %v3320_v37  ;;  %3373 = vadd.xlane.f32.xlu0 %v3285_v48  ;;  %v6702_v35 = vsub.f32 %v6381_v16, %v3190_v1 }
 0x503   : > { %v3067_v2 = vpop.xlane.xlu1 %3066  ;;  %v3065_v41 = vpop.xlane.xlu0 %3064 }
 0x504   : > { %v3164_v23 = vmul.f32 0.0078125, %v3067_v2  ;;  %v3163_v53 = vmul.f32 0.0078125, %v3065_v41  ;;  %v3317_v58 = vmul.f32 %v6697_v3, %v6697_v3  ;;  %v3318_v37 = vmul.f32 %v6702_v35, %v6702_v35 }
 0x506   : > { %v6707_v61 = vsub.f32 %v6394_v60, %v3163_v53  ;;  %3375 = vadd.xlane.f32.xlu1 %v3286_v28  ;;  %3437 = vadd.xlane.f32.xlu0 %v3317_v58  ;;  %v6710_v40 = vsub.f32 %v6391_v39, %v3164_v23 }
 0x507   : > { %v3131_v59 = vpop.xlane.xlu1 %3130  ;;  %v3129_v6 = vpop.xlane.xlu0 %3128 }
 0x508   : > { %7226 = vst [vmem:[#allocation35_spill] sm:$0xff] %v6707_v61  ;;  %7227 = vst [vmem:[#allocation34_spill] sm:$0xff] %v6710_v40  ;;  %v3291_v16 = vmul.f32 %v6707_v61, %v6707_v61  ;;  %v3292_v41 = vmul.f32 %v6710_v40, %v6710_v40  ;;  %v3196_v23 = vmul.f32 0.0078125, %v3131_v59  ;;  %v3195_v53 = vmul.f32 0.0078125, %v3129_v6  ;;  %v7235_v6 = vld [vmem:[#allocation39_spill] sm:$0xff] }
 0x50a   : > { %3439 = vadd.xlane.f32.xlu1 %v3318_v37  ;;  %3385 = vadd.xlane.f32.xlu0 %v3291_v16 }
 0x50b   : > { %v3063_v1 = vpop.xlane.xlu1 %3062  ;;  %v3061_v48 = vpop.xlane.xlu0 %3060 }
 0x50c   : > { %v3162_v2 = vmul.f32 0.0078125, %v3063_v1  ;;  %v3161_v60 = vmul.f32 0.0078125, %v3061_v48 }
 0x50e   : > { %v6719_v28 = vsub.f32 %v6411_v24, %v3162_v2  ;;  %v6722_v39 = vsub.f32 %v6414_v12, %v3161_v60  ;;  %3387 = vadd.xlane.f32.xlu1 %v3292_v41  ;;  %v7231_v24 = vld [vmem:[#allocation40_spill] sm:$0xff]  ;;  %v7233_v12 = vld [vmem:[#allocation38_spill] sm:$0xff]  ;;  %v6738_v60 = vsub.f32 %v7235_v6, %v3195_v53 }
 0x50f   : > { %v3127_v58 = vpop.xlane.xlu1 %3126  ;;  %v3125_v61 = vpop.xlane.xlu0 %3124  ;;  %v6735_v59 = vsub.f32 %v7233_v12, %v3196_v23 }
 0x510   : > { %7228 = vst [vmem:[#allocation37_spill] sm:$0xff] %v6719_v28  ;;  %7229 = vst [vmem:[#allocation36_spill] sm:$0xff] %v6722_v39  ;;  %v3194_v37 = vmul.f32 0.0078125, %v3127_v58  ;;  %v3193_v16 = vmul.f32 0.0078125, %v3125_v61  ;;  %v3290_v1 = vmul.f32 %v6719_v28, %v6719_v28  ;;  %v3289_v48 = vmul.f32 %v6722_v39, %v6722_v39 }
 0x511   : > { %7234 = vst [vmem:[#allocation38_spill] sm:$0xff] %v6735_v59  ;;  %7236 = vst [vmem:[#allocation39_spill] sm:$0xff] %v6738_v60  ;;  %v3323_v58 = vmul.f32 %v6738_v60, %v6738_v60 }
 0x512   : > { %v6729_v40 = vsub.f32 %v6421_v22, %v3194_v37  ;;  %v6732_v2 = vsub.f32 %v7231_v24, %v3193_v16  ;;  %3383 = vadd.xlane.f32.xlu1 %v3290_v1  ;;  %3381 = vadd.xlane.f32.xlu0 %v3289_v48  ;;  %v3324_v22 = vmul.f32 %v6735_v59, %v6735_v59 }
 0x514   : > { %7230 = vst [vmem:[#allocation46_spill] sm:$0xff] %v6729_v40  ;;  %7232 = vst [vmem:[#allocation40_spill] sm:$0xff] %v6732_v2  ;;  %v3322_v61 = vmul.f32 %v6729_v40, %v6729_v40  ;;  %v3321_v41 = vmul.f32 %v6732_v2, %v6732_v2 }
 0x516   : > { %3447 = vadd.xlane.f32.xlu1 %v3322_v61  ;;  %3445 = vadd.xlane.f32.xlu0 %v3321_v41 }
 0x51a   : > { %3451 = vadd.xlane.f32.xlu1 %v3324_v22  ;;  %3449 = vadd.xlane.f32.xlu0 %v3323_v58 }
 0x527   : > { %v3330_v23 = vpop.xlane.xlu0 %3329 }
 0x528   : > { %v3455_v37 = vmul.f32 0.0078125, %v3330_v23 }
 0x52a   : > { %v3519_v53 = vadd.f32 1e-05, %v3455_v37 }
 0x52b   : > { %v3332_v16 = vpop.xlane.xlu1 %3331  ;;  %v3394_v1 = vpop.xlane.xlu0 %3393 }
 0x52c   : > { %4791 = vrsqrt.f32 %v3519_v53  ;;  %v3456_v48 = vmul.f32 0.0078125, %v3332_v16  ;;  %v3487_v24 = vmul.f32 0.0078125, %v3394_v1  ;;  %v6751_v53 = vld [vmem:[%s7237_s0] ss:$0 sm:$0xff] }
 0x52e   : > { %v3520_v12 = vadd.f32 1e-05, %v3456_v48  ;;  %v3551_v6 = vadd.f32 1e-05, %v3487_v24 }
 0x52f   : > { %v3396_v61 = vpop.xlane.xlu1 %3395  ;;  %v3326_v41 = vpop.xlane.xlu0 %3325 }
 0x530   : > { %4793 = vrsqrt.f32 %v3520_v12  ;;  %v3488_v2 = vmul.f32 0.0078125, %v3396_v61  ;;  %v3453_v59 = vmul.f32 0.0078125, %v3326_v41 }
 0x531   : > { %4795 = vrsqrt.f32 %v3551_v6 }
 0x532   : > { %v3552_v40 = vadd.f32 1e-05, %v3488_v2  ;;  %v3517_v60 = vadd.f32 1e-05, %v3453_v59  ;;  %v6757_v2 = vld [vmem:[%s7238_s10] ss:$0 sm:$0xff] }
 0x533   : > { %v3328_v22 = vpop.xlane.xlu1 %3327  ;;  %v3390_v58 = vpop.xlane.xlu0 %3389 }
 0x534   : > { %4797 = vrsqrt.f32 %v3552_v40  ;;  %v3454_v23 = vmul.f32 0.0078125, %v3328_v22  ;;  %v3485_v37 = vmul.f32 0.0078125, %v3390_v58 }
 0x535   : > { %4799 = vrsqrt.f32 %v3517_v60 }
 0x536   : > { %v4792_v39 = vpop.eup %4791  ;;  %v3518_v16 = vadd.f32 1e-05, %v3454_v23  ;;  %v3549_v1 = vadd.f32 1e-05, %v3485_v37  ;;  %v7239_v37 = vld [vmem:[#allocation41_spill] sm:$0xff] }
 0x537   : > { %v3647_v48 = vmul.f32 %v4792_v39, %v6429_v29  ;;  %v3392_v24 = vpop.xlane.xlu1 %3391  ;;  %v3338_v12 = vpop.xlane.xlu0 %3337 }
 0x538   : > { %4801 = vrsqrt.f32 %v3518_v16  ;;  %v3486_v40 = vmul.f32 0.0078125, %v3392_v24  ;;  %v3459_v59 = vmul.f32 0.0078125, %v3338_v12 }
 0x539   : > { %v3718_v60 = vmul.f32 %v6751_v53, %v3647_v48  ;;  %4803 = vrsqrt.f32 %v3549_v1 }
 0x53a   : > { %v4794_v6 = vpop.eup %4793  ;;  %v3550_v61 = vadd.f32 1e-05, %v3486_v40  ;;  %v3523_v41 = vadd.f32 1e-05, %v3459_v59 }
 0x53b   : > { %v4796_v22 = vpop.eup %4795  ;;  %v3789_v29 = vadd.f32 %v6757_v2, %v3718_v60  ;;  %v3648_v39 = vmul.f32 %v4794_v6, %v6437_v34  ;;  %v3340_v58 = vpop.xlane.xlu1 %3339 }
 0x53c   : > { %v3402_v23 = vpop.xlane.xlu0 %3401  ;;  %v3679_v28 = vmul.f32 %v4796_v22, %v7239_v37  ;;  %4805 = vrsqrt.f32 %v3550_v61  ;;  %v3460_v16 = vmul.f32 0.0078125, %v3340_v58 }
 0x53d   : > { %v3491_v24 = vmul.f32 0.0078125, %v3402_v23  ;;  %3853 = vst [vmem:[%s5776_s3 + $0x10] sm:$0xff] %v3789_v29  ;;  %v3719_v48 = vmul.f32 %v6751_v53, %v3648_v39  ;;  %4807 = vrsqrt.f32 %v3523_v41 }
 0x53e   : > { %v4798_v1 = vpop.eup %4797  ;;  %v3750_v12 = vmul.f32 %v6751_v53, %v3679_v28  ;;  %v3524_v40 = vadd.f32 1e-05, %v3460_v16 }
 0x53f   : > { %v3555_v59 = vadd.f32 1e-05, %v3491_v24  ;;  %v4800_v60 = vpop.eup %4799  ;;  %v3790_v34 = vadd.f32 %v6757_v2, %v3719_v48  ;;  %v3680_v6 = vmul.f32 %v4798_v1, %v6447_v57  ;;  %v3404_v22 = vpop.xlane.xlu1 %3403 }
 0x540   : > { %v3334_v61 = vpop.xlane.xlu0 %3333  ;;  %v3821_v58 = vadd.f32 %v6757_v2, %v3750_v12  ;;  %v3645_v29 = vmul.f32 %v4800_v60, %v6444_v36  ;;  %4809 = vrsqrt.f32 %v3524_v40  ;;  %v3492_v39 = vmul.f32 0.0078125, %v3404_v22 }
 0x541   : > { %3854 = vst [vmem:[%s5776_s3 + $0x18] sm:$0xff] %v3790_v34  ;;  %v3751_v41 = vmul.f32 %v6751_v53, %v3680_v6  ;;  %4811 = vrsqrt.f32 %v3555_v59  ;;  %v3457_v28 = vmul.f32 0.0078125, %v3334_v61 }
 0x542   : > { %v4802_v23 = vpop.eup %4801  ;;  %3885 = vst [vmem:[%s5776_s3 + $0x110] sm:$0xff] %v3821_v58  ;;  %v3716_v37 = vmul.f32 %v6751_v53, %v3645_v29  ;;  %v3556_v16 = vadd.f32 1e-05, %v3492_v39 }
 0x543   : > { %v4804_v57 = vpop.eup %4803  ;;  %v3822_v24 = vadd.f32 %v6757_v2, %v3751_v41  ;;  %v3646_v48 = vmul.f32 %v4802_v23, %v6457_v32  ;;  %v3521_v36 = vadd.f32 1e-05, %v3457_v28  ;;  %v3336_v1 = vpop.xlane.xlu1 %3335 }
 0x544   : > { %v3398_v12 = vpop.xlane.xlu0 %3397  ;;  %v3787_v40 = vadd.f32 %v6757_v2, %v3716_v37  ;;  %v3677_v59 = vmul.f32 %v4804_v57, %v6450_v18  ;;  %4813 = vrsqrt.f32 %v3556_v16  ;;  %v3458_v60 = vmul.f32 0.0078125, %v3336_v1 }
 0x545   : > { %3886 = vst [vmem:[%s5776_s3 + $0x118] sm:$0xff] %v3822_v24  ;;  %v3717_v34 = vmul.f32 %v6751_v53, %v3646_v48  ;;  %4815 = vrsqrt.f32 %v3521_v36  ;;  %v3489_v6 = vmul.f32 0.0078125, %v3398_v12 }
 0x546   : > { %v4806_v22 = vpop.eup %4805  ;;  %3851 = vst [vmem:[%s5776_s3] sm:$0xff] %v3787_v40  ;;  %v3748_v61 = vmul.f32 %v6751_v53, %v3677_v59  ;;  %v3522_v32 = vadd.f32 1e-05, %v3458_v60 }
 0x547   : > { %v4808_v58 = vpop.eup %4807  ;;  %v3788_v29 = vadd.f32 %v6757_v2, %v3717_v34  ;;  %v3678_v39 = vmul.f32 %v4806_v22, %v6464_v25  ;;  %v3553_v18 = vadd.f32 1e-05, %v3489_v6  ;;  %v3400_v41 = vpop.xlane.xlu1 %3399 }
 0x548   : > { %v3346_v28 = vpop.xlane.xlu0 %3345  ;;  %v3819_v23 = vadd.f32 %v6757_v2, %v3748_v61  ;;  %v3651_v37 = vmul.f32 %v4808_v58, %v6467_v31  ;;  %4817 = vrsqrt.f32 %v3522_v32  ;;  %v3490_v16 = vmul.f32 0.0078125, %v3400_v41 }
 0x549   : > { %3852 = vst [vmem:[%s5776_s3 + $0x8] sm:$0xff] %v3788_v29  ;;  %v3749_v57 = vmul.f32 %v6751_v53, %v3678_v39  ;;  %4819 = vrsqrt.f32 %v3553_v18  ;;  %v3463_v24 = vmul.f32 0.0078125, %v3346_v28 }
 0x54a   : > { %v4810_v48 = vpop.eup %4809  ;;  %3883 = vst [vmem:[%s5776_s3 + $0x100] sm:$0xff] %v3819_v23  ;;  %v3722_v36 = vmul.f32 %v6751_v53, %v3651_v37  ;;  %v3554_v25 = vadd.f32 1e-05, %v3490_v16 }
 0x54b   : > { %v4812_v1 = vpop.eup %4811  ;;  %v3820_v12 = vadd.f32 %v6757_v2, %v3749_v57  ;;  %v3652_v40 = vmul.f32 %v4810_v48, %v6470_v17  ;;  %v3527_v31 = vadd.f32 1e-05, %v3463_v24  ;;  %v3348_v59 = vpop.xlane.xlu1 %3347 }
 0x54c   : > { %v3410_v60 = vpop.xlane.xlu0 %3409  ;;  %v3793_v34 = vadd.f32 %v6757_v2, %v3722_v36  ;;  %v3683_v6 = vmul.f32 %v4812_v1, %v6477_v51  ;;  %4821 = vrsqrt.f32 %v3554_v25  ;;  %v3464_v22 = vmul.f32 0.0078125, %v3348_v59 }
 0x54d   : > { %3884 = vst [vmem:[%s5776_s3 + $0x108] sm:$0xff] %v3820_v12  ;;  %v3723_v61 = vmul.f32 %v6751_v53, %v3652_v40  ;;  %4823 = vrsqrt.f32 %v3527_v31  ;;  %v3495_v32 = vmul.f32 0.0078125, %v3410_v60 }
 0x54e   : > { %v4814_v58 = vpop.eup %4813  ;;  %3857 = vst [vmem:[%s5776_s3 + $0x30] sm:$0xff] %v3793_v34  ;;  %v3754_v29 = vmul.f32 %v6751_v53, %v3683_v6  ;;  %v3528_v17 = vadd.f32 1e-05, %v3464_v22  ;;  %v7240_v34 = vld [vmem:[#allocation42_spill] sm:$0xff] }
 0x54f   : > { %v4816_v39 = vpop.eup %4815  ;;  %v3794_v18 = vadd.f32 %v6757_v2, %v3723_v61  ;;  %v3684_v41 = vmul.f32 %v4814_v58, %v6484_v4  ;;  %v3559_v51 = vadd.f32 1e-05, %v3495_v32  ;;  %v3412_v28 = vpop.xlane.xlu1 %3411 }
 0x550   : > { %v3342_v23 = vpop.xlane.xlu0 %3341  ;;  %v3825_v37 = vadd.f32 %v6757_v2, %v3754_v29  ;;  %v3649_v16 = vmul.f32 %v4816_v39, %v6487_v52  ;;  %4825 = vrsqrt.f32 %v3528_v17  ;;  %v3496_v57 = vmul.f32 0.0078125, %v3412_v28 }
 0x551   : > { %3858 = vst [vmem:[%s5776_s3 + $0x38] sm:$0xff] %v3794_v18  ;;  %v3755_v24 = vmul.f32 %v6751_v53, %v3684_v41  ;;  %4827 = vrsqrt.f32 %v3559_v51  ;;  %v3461_v48 = vmul.f32 0.0078125, %v3342_v23  ;;  %v7241_v18 = vld [vmem:[#allocation43_spill] sm:$0xff] }
 0x552   : > { %v4818_v36 = vpop.eup %4817  ;;  %3889 = vst [vmem:[%s5776_s3 + $0x130] sm:$0xff] %v3825_v37  ;;  %v3720_v25 = vmul.f32 %v6751_v53, %v3649_v16  ;;  %v3560_v4 = vadd.f32 1e-05, %v3496_v57  ;;  %v7242_v16 = vld [vmem:[#allocation44_spill] sm:$0xff] }
 0x553   : > { %v4820_v1 = vpop.eup %4819  ;;  %v3826_v12 = vadd.f32 %v6757_v2, %v3755_v24  ;;  %v3650_v40 = vmul.f32 %v4818_v36, %v6490_v9  ;;  %v3525_v52 = vadd.f32 1e-05, %v3461_v48  ;;  %v3344_v31 = vpop.xlane.xlu1 %3343 }
 0x554   : > { %v3406_v59 = vpop.xlane.xlu0 %3405  ;;  %v3791_v60 = vadd.f32 %v6757_v2, %v3720_v25  ;;  %v3681_v6 = vmul.f32 %v4820_v1, %v7240_v34  ;;  %4829 = vrsqrt.f32 %v3560_v4  ;;  %v3462_v22 = vmul.f32 0.0078125, %v3344_v31 }
 0x555   : > { %3890 = vst [vmem:[%s5776_s3 + $0x138] sm:$0xff] %v3826_v12  ;;  %v3721_v61 = vmul.f32 %v6751_v53, %v3650_v40  ;;  %4831 = vrsqrt.f32 %v3525_v52  ;;  %v3493_v32 = vmul.f32 0.0078125, %v3406_v59  ;;  %v7243_v52 = vld [vmem:[#allocation45_spill] sm:$0xff] }
 0x556   : > { %v4822_v58 = vpop.eup %4821  ;;  %3855 = vst [vmem:[%s5776_s3 + $0x20] sm:$0xff] %v3791_v60  ;;  %v3752_v29 = vmul.f32 %v6751_v53, %v3681_v6  ;;  %v3526_v9 = vadd.f32 1e-05, %v3462_v22  ;;  %v7244_v22 = vld [vmem:[#allocation29_spill] sm:$0xff] }
 0x557   : > { %v4824_v17 = vpop.eup %4823  ;;  %v3792_v39 = vadd.f32 %v6757_v2, %v3721_v61  ;;  %v3682_v41 = vmul.f32 %v4822_v58, %v7241_v18  ;;  %v3557_v51 = vadd.f32 1e-05, %v3493_v32  ;;  %v3408_v28 = vpop.xlane.xlu1 %3407 }
 0x558   : > { %v3354_v23 = vpop.xlane.xlu0 %3353  ;;  %v3823_v37 = vadd.f32 %v6757_v2, %v3752_v29  ;;  %v3655_v57 = vmul.f32 %v4824_v17, %v7242_v16  ;;  %4833 = vrsqrt.f32 %v3526_v9  ;;  %v3494_v24 = vmul.f32 0.0078125, %v3408_v28 }
 0x559   : > { %3856 = vst [vmem:[%s5776_s3 + $0x28] sm:$0xff] %v3792_v39  ;;  %v3753_v48 = vmul.f32 %v6751_v53, %v3682_v41  ;;  %4835 = vrsqrt.f32 %v3557_v51  ;;  %v3467_v36 = vmul.f32 0.0078125, %v3354_v23  ;;  %v7245_v51 = vld [vmem:[#allocation28_spill] sm:$0xff] }
 0x55a   : > { %v4826_v25 = vpop.eup %4825  ;;  %3887 = vst [vmem:[%s5776_s3 + $0x120] sm:$0xff] %v3823_v37  ;;  %v3726_v4 = vmul.f32 %v6751_v53, %v3655_v57  ;;  %v3558_v1 = vadd.f32 1e-05, %v3494_v24  ;;  %v7246_v24 = vld [vmem:[#allocation31_spill] sm:$0xff] }
 0x55b   : > { %v4828_v12 = vpop.eup %4827  ;;  %v3824_v40 = vadd.f32 %v6757_v2, %v3753_v48  ;;  %v3656_v31 = vmul.f32 %v4826_v25, %v7243_v52  ;;  %v3531_v59 = vadd.f32 1e-05, %v3467_v36  ;;  %v3356_v60 = vpop.xlane.xlu1 %3355 }
 0x55c   : > { %v3418_v34 = vpop.xlane.xlu0 %3417  ;;  %v3797_v6 = vadd.f32 %v6757_v2, %v3726_v4  ;;  %v3687_v61 = vmul.f32 %v4828_v12, %v7244_v22  ;;  %4837 = vrsqrt.f32 %v3558_v1  ;;  %v3468_v32 = vmul.f32 0.0078125, %v3356_v60 }
 0x55d   : > { %3888 = vst [vmem:[%s5776_s3 + $0x128] sm:$0xff] %v3824_v40  ;;  %v3727_v58 = vmul.f32 %v6751_v53, %v3656_v31  ;;  %4839 = vrsqrt.f32 %v3531_v59  ;;  %v3499_v29 = vmul.f32 0.0078125, %v3418_v34  ;;  %v7247_v59 = vld [vmem:[#allocation30_spill] sm:$0xff] }
 0x55e   : > { %v4830_v9 = vpop.eup %4829  ;;  %3861 = vst [vmem:[%s5776_s3 + $0x50] sm:$0xff] %v3797_v6  ;;  %v3758_v17 = vmul.f32 %v6751_v53, %v3687_v61  ;;  %v3532_v39 = vadd.f32 1e-05, %v3468_v32 }
 0x55f   : > { %v4832_v18 = vpop.eup %4831  ;;  %v3798_v41 = vadd.f32 %v6757_v2, %v3727_v58  ;;  %v3688_v28 = vmul.f32 %v4830_v9, %v7245_v51  ;;  %v3563_v23 = vadd.f32 1e-05, %v3499_v29  ;;  %v3420_v37 = vpop.xlane.xlu1 %3419 }
 0x560   : > { %v3350_v16 = vpop.xlane.xlu0 %3349  ;;  %v3829_v57 = vadd.f32 %v6757_v2, %v3758_v17  ;;  %v3653_v48 = vmul.f32 %v4832_v18, %v7246_v24  ;;  %4841 = vrsqrt.f32 %v3532_v39  ;;  %v3500_v36 = vmul.f32 0.0078125, %v3420_v37 }
 0x561   : > { %3862 = vst [vmem:[%s5776_s3 + $0x58] sm:$0xff] %v3798_v41  ;;  %v3759_v25 = vmul.f32 %v6751_v53, %v3688_v28  ;;  %4843 = vrsqrt.f32 %v3563_v23  ;;  %v3465_v4 = vmul.f32 0.0078125, %v3350_v16 }
 0x562   : > { %v4834_v1 = vpop.eup %4833  ;;  %3893 = vst [vmem:[%s5776_s3 + $0x150] sm:$0xff] %v3829_v57  ;;  %v3724_v12 = vmul.f32 %v6751_v53, %v3653_v48  ;;  %v3564_v40 = vadd.f32 1e-05, %v3500_v36  ;;  %v7248_v57 = vld [vmem:[#allocation33_spill] sm:$0xff] }
 0x563   : > { %v4836_v52 = vpop.eup %4835  ;;  %v3830_v31 = vadd.f32 %v6757_v2, %v3759_v25  ;;  %v3654_v60 = vmul.f32 %v4834_v1, %v7247_v59  ;;  %v3529_v34 = vadd.f32 1e-05, %v3465_v4  ;;  %v3352_v6 = vpop.xlane.xlu1 %3351 }
 0x564   : > { %v3414_v22 = vpop.xlane.xlu0 %3413  ;;  %v3795_v61 = vadd.f32 %v6757_v2, %v3724_v12  ;;  %v3685_v32 = vmul.f32 %v4836_v52, %v6537_v63  ;;  %4845 = vrsqrt.f32 %v3564_v40  ;;  %v3466_v58 = vmul.f32 0.0078125, %v3352_v6  ;;  %v7249_v52 = vld [vmem:[#allocation32_spill] sm:$0xff] }
 0x565   : > { %3894 = vst [vmem:[%s5776_s3 + $0x158] sm:$0xff] %v3830_v31  ;;  %v3725_v29 = vmul.f32 %v6751_v53, %v3654_v60  ;;  %4847 = vrsqrt.f32 %v3529_v34  ;;  %v3497_v9 = vmul.f32 0.0078125, %v3414_v22 }
 0x566   : > { %v4838_v17 = vpop.eup %4837  ;;  %3859 = vst [vmem:[%s5776_s3 + $0x40] sm:$0xff] %v3795_v61  ;;  %v3756_v39 = vmul.f32 %v6751_v53, %v3685_v32  ;;  %v3530_v18 = vadd.f32 1e-05, %v3466_v58 }
 0x567   : > { %v4840_v41 = vpop.eup %4839  ;;  %v3796_v51 = vadd.f32 %v6757_v2, %v3725_v29  ;;  %v3686_v28 = vmul.f32 %v4838_v17, %v6544_v30  ;;  %v3561_v63 = vadd.f32 1e-05, %v3497_v9  ;;  %v3416_v23 = vpop.xlane.xlu1 %3415 }
 0x568   : > { %v3362_v37 = vpop.xlane.xlu0 %3361  ;;  %v3827_v16 = vadd.f32 %v6757_v2, %v3756_v39  ;;  %v3659_v24 = vmul.f32 %v4840_v41, %v7248_v57  ;;  %4849 = vrsqrt.f32 %v3530_v18  ;;  %v3498_v48 = vmul.f32 0.0078125, %v3416_v23 }
 0x569   : > { %3860 = vst [vmem:[%s5776_s3 + $0x48] sm:$0xff] %v3796_v51  ;;  %v3757_v36 = vmul.f32 %v6751_v53, %v3686_v28  ;;  %4851 = vrsqrt.f32 %v3561_v63  ;;  %v3471_v25 = vmul.f32 0.0078125, %v3362_v37 }
 0x56a   : > { %v4842_v4 = vpop.eup %4841  ;;  %3891 = vst [vmem:[%s5776_s3 + $0x140] sm:$0xff] %v3827_v16  ;;  %v3730_v1 = vmul.f32 %v6751_v53, %v3659_v24  ;;  %v3562_v30 = vadd.f32 1e-05, %v3498_v48 }
 0x56b   : > { %v4844_v12 = vpop.eup %4843  ;;  %v3828_v40 = vadd.f32 %v6757_v2, %v3757_v36  ;;  %v3660_v31 = vmul.f32 %v4842_v4, %v7249_v52  ;;  %v3535_v59 = vadd.f32 1e-05, %v3471_v25  ;;  %v3364_v60 = vpop.xlane.xlu1 %3363 }
 0x56c   : > { %v3426_v34 = vpop.xlane.xlu0 %3425  ;;  %v3801_v6 = vadd.f32 %v6757_v2, %v3730_v1  ;;  %v3691_v22 = vmul.f32 %v4844_v12, %v6557_v33  ;;  %4853 = vrsqrt.f32 %v3562_v30  ;;  %v3472_v61 = vmul.f32 0.0078125, %v3364_v60 }
 0x56d   : > { %3892 = vst [vmem:[%s5776_s3 + $0x148] sm:$0xff] %v3828_v40  ;;  %v3731_v32 = vmul.f32 %v6751_v53, %v3660_v31  ;;  %4855 = vrsqrt.f32 %v3535_v59  ;;  %v3503_v58 = vmul.f32 0.0078125, %v3426_v34 }
 0x56e   : > { %v4846_v29 = vpop.eup %4845  ;;  %3865 = vst [vmem:[%s5776_s3 + $0x70] sm:$0xff] %v3801_v6  ;;  %v3762_v9 = vmul.f32 %v6751_v53, %v3691_v22  ;;  %v3536_v17 = vadd.f32 1e-05, %v3472_v61 }
 0x56f   : > { %v4848_v39 = vpop.eup %4847  ;;  %v3802_v18 = vadd.f32 %v6757_v2, %v3731_v32  ;;  %v3692_v41 = vmul.f32 %v4846_v29, %v6564_v0  ;;  %v3567_v33 = vadd.f32 1e-05, %v3503_v58  ;;  %v3428_v51 = vpop.xlane.xlu1 %3427 }
 0x570   : > { %v3358_v28 = vpop.xlane.xlu0 %3357  ;;  %v3833_v63 = vadd.f32 %v6757_v2, %v3762_v9  ;;  %v3657_v23 = vmul.f32 %v4848_v39, %v6567_v20  ;;  %4857 = vrsqrt.f32 %v3536_v17  ;;  %v3504_v37 = vmul.f32 0.0078125, %v3428_v51 }
 0x571   : > { %3866 = vst [vmem:[%s5776_s3 + $0x78] sm:$0xff] %v3802_v18  ;;  %v3763_v16 = vmul.f32 %v6751_v53, %v3692_v41  ;;  %4859 = vrsqrt.f32 %v3567_v33  ;;  %v3469_v57 = vmul.f32 0.0078125, %v3358_v28 }
 0x572   : > { %v4850_v24 = vpop.eup %4849  ;;  %3897 = vst [vmem:[%s5776_s3 + $0x170] sm:$0xff] %v3833_v63  ;;  %v3728_v48 = vmul.f32 %v6751_v53, %v3657_v23  ;;  %v3568_v0 = vadd.f32 1e-05, %v3504_v37 }
 0x573   : > { %v4852_v36 = vpop.eup %4851  ;;  %v3834_v25 = vadd.f32 %v6757_v2, %v3763_v16  ;;  %v3658_v4 = vmul.f32 %v4850_v24, %v6570_v7  ;;  %v3533_v20 = vadd.f32 1e-05, %v3469_v57  ;;  %v3360_v1 = vpop.xlane.xlu1 %3359 }
 0x574   : > { %v3422_v30 = vpop.xlane.xlu0 %3421  ;;  %v3799_v12 = vadd.f32 %v6757_v2, %v3728_v48  ;;  %v3689_v40 = vmul.f32 %v4852_v36, %v6577_v43  ;;  %4861 = vrsqrt.f32 %v3568_v0  ;;  %v3470_v52 = vmul.f32 0.0078125, %v3360_v1 }
 0x575   : > { %3898 = vst [vmem:[%s5776_s3 + $0x178] sm:$0xff] %v3834_v25  ;;  %v3729_v31 = vmul.f32 %v6751_v53, %v3658_v4  ;;  %4863 = vrsqrt.f32 %v3533_v20  ;;  %v3501_v59 = vmul.f32 0.0078125, %v3422_v30 }
 0x576   : > { %v4854_v60 = vpop.eup %4853  ;;  %3863 = vst [vmem:[%s5776_s3 + $0x60] sm:$0xff] %v3799_v12  ;;  %v3760_v34 = vmul.f32 %v6751_v53, %v3689_v40  ;;  %v3534_v7 = vadd.f32 1e-05, %v3470_v52 }
 0x577   : > { %v4856_v6 = vpop.eup %4855  ;;  %v3800_v22 = vadd.f32 %v6757_v2, %v3729_v31  ;;  %v3690_v61 = vmul.f32 %v4854_v60, %v6582_v55  ;;  %v3565_v43 = vadd.f32 1e-05, %v3501_v59  ;;  %v3424_v32 = vpop.xlane.xlu1 %3423 }
 0x578   : > { %v3370_v58 = vpop.xlane.xlu0 %3369  ;;  %v3831_v29 = vadd.f32 %v6757_v2, %v3760_v34  ;;  %v3663_v9 = vmul.f32 %v4856_v6, %v6587_v15  ;;  %4865 = vrsqrt.f32 %v3534_v7  ;;  %v3502_v17 = vmul.f32 0.0078125, %v3424_v32 }
 0x579   : > { %3864 = vst [vmem:[%s5776_s3 + $0x68] sm:$0xff] %v3800_v22  ;;  %v3761_v39 = vmul.f32 %v6751_v53, %v3690_v61  ;;  %4867 = vrsqrt.f32 %v3565_v43  ;;  %v3475_v18 = vmul.f32 0.0078125, %v3370_v58 }
 0x57a   : > { %v4858_v41 = vpop.eup %4857  ;;  %3895 = vst [vmem:[%s5776_s3 + $0x160] sm:$0xff] %v3831_v29  ;;  %v3734_v33 = vmul.f32 %v6751_v53, %v3663_v9  ;;  %v3566_v55 = vadd.f32 1e-05, %v3502_v17 }
 0x57b   : > { %v4860_v51 = vpop.eup %4859  ;;  %v3832_v28 = vadd.f32 %v6757_v2, %v3761_v39  ;;  %v3664_v63 = vmul.f32 %v4858_v41, %v6590_v19  ;;  %v3539_v15 = vadd.f32 1e-05, %v3475_v18  ;;  %v3372_v23 = vpop.xlane.xlu1 %3371 }
 0x57c   : > { %v3434_v37 = vpop.xlane.xlu0 %3433  ;;  %v3805_v16 = vadd.f32 %v6757_v2, %v3734_v33  ;;  %v3695_v57 = vmul.f32 %v4860_v51, %v6597_v42  ;;  %4869 = vrsqrt.f32 %v3566_v55  ;;  %v3476_v24 = vmul.f32 0.0078125, %v3372_v23 }
 0x57d   : > { %3896 = vst [vmem:[%s5776_s3 + $0x168] sm:$0xff] %v3832_v28  ;;  %v3735_v48 = vmul.f32 %v6751_v53, %v3664_v63  ;;  %4871 = vrsqrt.f32 %v3539_v15  ;;  %v3507_v0 = vmul.f32 0.0078125, %v3434_v37 }
 0x57e   : > { %v4862_v36 = vpop.eup %4861  ;;  %3869 = vst [vmem:[%s5776_s3 + $0x90] sm:$0xff] %v3805_v16  ;;  %v3766_v25 = vmul.f32 %v6751_v53, %v3695_v57  ;;  %v3540_v19 = vadd.f32 1e-05, %v3476_v24 }
 0x57f   : > { %v4864_v4 = vpop.eup %4863  ;;  %v3806_v20 = vadd.f32 %v6757_v2, %v3735_v48  ;;  %v3696_v1 = vmul.f32 %v4862_v36, %v6602_v8  ;;  %v3571_v42 = vadd.f32 1e-05, %v3507_v0  ;;  %v3436_v30 = vpop.xlane.xlu1 %3435 }
 0x580   : > { %v3366_v12 = vpop.xlane.xlu0 %3365  ;;  %v3837_v40 = vadd.f32 %v6757_v2, %v3766_v25  ;;  %v3661_v52 = vmul.f32 %v4864_v4, %v6607_v47  ;;  %4873 = vrsqrt.f32 %v3540_v19  ;;  %v3508_v31 = vmul.f32 0.0078125, %v3436_v30 }
 0x581   : > { %3870 = vst [vmem:[%s5776_s3 + $0x98] sm:$0xff] %v3806_v20  ;;  %v3767_v59 = vmul.f32 %v6751_v53, %v3696_v1  ;;  %4875 = vrsqrt.f32 %v3571_v42  ;;  %v3473_v60 = vmul.f32 0.0078125, %v3366_v12 }
 0x582   : > { %v4866_v34 = vpop.eup %4865  ;;  %3901 = vst [vmem:[%s5776_s3 + $0x190] sm:$0xff] %v3837_v40  ;;  %v3732_v7 = vmul.f32 %v6751_v53, %v3661_v52  ;;  %v3572_v8 = vadd.f32 1e-05, %v3508_v31 }
 0x583   : > { %v4868_v6 = vpop.eup %4867  ;;  %v3838_v22 = vadd.f32 %v6757_v2, %v3767_v59  ;;  %v3662_v61 = vmul.f32 %v4866_v34, %v6610_v11  ;;  %v3537_v47 = vadd.f32 1e-05, %v3473_v60  ;;  %v3368_v43 = vpop.xlane.xlu1 %3367 }
 0x584   : > { %v3430_v32 = vpop.xlane.xlu0 %3429  ;;  %v3803_v58 = vadd.f32 %v6757_v2, %v3732_v7  ;;  %v3693_v29 = vmul.f32 %v4868_v6, %v6617_v13  ;;  %4877 = vrsqrt.f32 %v3572_v8  ;;  %v3474_v9 = vmul.f32 0.0078125, %v3368_v43 }
 0x585   : > { %3902 = vst [vmem:[%s5776_s3 + $0x198] sm:$0xff] %v3838_v22  ;;  %v3733_v17 = vmul.f32 %v6751_v53, %v3662_v61  ;;  %4879 = vrsqrt.f32 %v3537_v47  ;;  %v3505_v39 = vmul.f32 0.0078125, %v3430_v32 }
 0x586   : > { %v4870_v18 = vpop.eup %4869  ;;  %3867 = vst [vmem:[%s5776_s3 + $0x80] sm:$0xff] %v3803_v58  ;;  %v3764_v41 = vmul.f32 %v6751_v53, %v3693_v29  ;;  %v3538_v11 = vadd.f32 1e-05, %v3474_v9 }
 0x587   : > { %v4872_v33 = vpop.eup %4871  ;;  %v3804_v55 = vadd.f32 %v6757_v2, %v3733_v17  ;;  %v3694_v51 = vmul.f32 %v4870_v18, %v6622_v10  ;;  %v3569_v13 = vadd.f32 1e-05, %v3505_v39  ;;  %v3432_v28 = vpop.xlane.xlu1 %3431 }
 0x588   : > { %v3378_v63 = vpop.xlane.xlu0 %3377  ;;  %v3835_v15 = vadd.f32 %v6757_v2, %v3764_v41  ;;  %v3667_v23 = vmul.f32 %v4872_v33, %v6627_v44  ;;  %4881 = vrsqrt.f32 %v3538_v11  ;;  %v3506_v37 = vmul.f32 0.0078125, %v3432_v28 }
 0x589   : > { %3868 = vst [vmem:[%s5776_s3 + $0x88] sm:$0xff] %v3804_v55  ;;  %v3765_v16 = vmul.f32 %v6751_v53, %v3694_v51  ;;  %4883 = vrsqrt.f32 %v3569_v13  ;;  %v3479_v57 = vmul.f32 0.0078125, %v3378_v63 }
 0x58a   : > { %v4874_v24 = vpop.eup %4873  ;;  %3899 = vst [vmem:[%s5776_s3 + $0x180] sm:$0xff] %v3835_v15  ;;  %v3738_v48 = vmul.f32 %v6751_v53, %v3667_v23  ;;  %v3570_v10 = vadd.f32 1e-05, %v3506_v37 }
 0x58b   : > { %v4876_v0 = vpop.eup %4875  ;;  %v3836_v36 = vadd.f32 %v6757_v2, %v3765_v16  ;;  %v3668_v25 = vmul.f32 %v4874_v24, %v6630_v49  ;;  %v3543_v44 = vadd.f32 1e-05, %v3479_v57  ;;  %v3380_v19 = vpop.xlane.xlu1 %3379 }
 0x58c   : > { %v3442_v4 = vpop.xlane.xlu0 %3441  ;;  %v3809_v20 = vadd.f32 %v6757_v2, %v3738_v48  ;;  %v3699_v1 = vmul.f32 %v4876_v0, %v6637_v5  ;;  %4885 = vrsqrt.f32 %v3570_v10  ;;  %v3480_v42 = vmul.f32 0.0078125, %v3380_v19 }
 0x58d   : > { %3900 = vst [vmem:[%s5776_s3 + $0x188] sm:$0xff] %v3836_v36  ;;  %v3739_v30 = vmul.f32 %v6751_v53, %v3668_v25  ;;  %4887 = vrsqrt.f32 %v3543_v44  ;;  %v3511_v12 = vmul.f32 0.0078125, %v3442_v4 }
 0x58e   : > { %v4878_v40 = vpop.eup %4877  ;;  %3873 = vst [vmem:[%s5776_s3 + $0xb0] sm:$0xff] %v3809_v20  ;;  %v3770_v52 = vmul.f32 %v6751_v53, %v3699_v1  ;;  %v3544_v49 = vadd.f32 1e-05, %v3480_v42 }
 0x58f   : > { %v4880_v31 = vpop.eup %4879  ;;  %v3810_v59 = vadd.f32 %v6757_v2, %v3739_v30  ;;  %v3700_v60 = vmul.f32 %v4878_v40, %v6642_v38  ;;  %v3575_v5 = vadd.f32 1e-05, %v3511_v12  ;;  %v3444_v34 = vpop.xlane.xlu1 %3443 }
 0x590   : > { %v3374_v7 = vpop.xlane.xlu0 %3373  ;;  %v3841_v8 = vadd.f32 %v6757_v2, %v3770_v52  ;;  %v3665_v6 = vmul.f32 %v4880_v31, %v6647_v21  ;;  %4889 = vrsqrt.f32 %v3544_v49  ;;  %v3512_v22 = vmul.f32 0.0078125, %v3444_v34 }
 0x591   : > { %3874 = vst [vmem:[%s5776_s3 + $0xb8] sm:$0xff] %v3810_v59  ;;  %v3771_v61 = vmul.f32 %v6751_v53, %v3700_v60  ;;  %4891 = vrsqrt.f32 %v3575_v5  ;;  %v3477_v47 = vmul.f32 0.0078125, %v3374_v7 }
 0x592   : > { %v4882_v43 = vpop.eup %4881  ;;  %3905 = vst [vmem:[%s5776_s3 + $0x1b0] sm:$0xff] %v3841_v8  ;;  %v3736_v32 = vmul.f32 %v6751_v53, %v3665_v6  ;;  %v3576_v38 = vadd.f32 1e-05, %v3512_v22 }
 0x593   : > { %v4884_v58 = vpop.eup %4883  ;;  %v3842_v29 = vadd.f32 %v6757_v2, %v3771_v61  ;;  %v3666_v9 = vmul.f32 %v4882_v43, %v6650_v54  ;;  %v3541_v21 = vadd.f32 1e-05, %v3477_v47  ;;  %v3376_v17 = vpop.xlane.xlu1 %3375 }
 0x594   : > { %v3438_v39 = vpop.xlane.xlu0 %3437  ;;  %v3807_v18 = vadd.f32 %v6757_v2, %v3736_v32  ;;  %v3697_v41 = vmul.f32 %v4884_v58, %v6657_v14  ;;  %4893 = vrsqrt.f32 %v3576_v38  ;;  %v3478_v11 = vmul.f32 0.0078125, %v3376_v17 }
 0x595   : > { %3906 = vst [vmem:[%s5776_s3 + $0x1b8] sm:$0xff] %v3842_v29  ;;  %v3737_v33 = vmul.f32 %v6751_v53, %v3666_v9  ;;  %4895 = vrsqrt.f32 %v3541_v21  ;;  %v3509_v55 = vmul.f32 0.0078125, %v3438_v39 }
 0x596   : > { %v4886_v51 = vpop.eup %4885  ;;  %3871 = vst [vmem:[%s5776_s3 + $0xa0] sm:$0xff] %v3807_v18  ;;  %v3768_v13 = vmul.f32 %v6751_v53, %v3697_v41  ;;  %v3542_v54 = vadd.f32 1e-05, %v3478_v11 }
 0x597   : > { %v4888_v28 = vpop.eup %4887  ;;  %v3808_v63 = vadd.f32 %v6757_v2, %v3737_v33  ;;  %v3698_v15 = vmul.f32 %v4886_v51, %v6662_v46  ;;  %v3573_v14 = vadd.f32 1e-05, %v3509_v55  ;;  %v3440_v23 = vpop.xlane.xlu1 %3439 }
 0x598   : > { %v3386_v37 = vpop.xlane.xlu0 %3385  ;;  %v3839_v16 = vadd.f32 %v6757_v2, %v3768_v13  ;;  %v3671_v57 = vmul.f32 %v4888_v28, %v6667_v26  ;;  %4897 = vrsqrt.f32 %v3542_v54  ;;  %v3510_v24 = vmul.f32 0.0078125, %v3440_v23  ;;  %v7250_v54 = vld [vmem:[#allocation35_spill] sm:$0xff] }
 0x599   : > { %3872 = vst [vmem:[%s5776_s3 + $0xa8] sm:$0xff] %v3808_v63  ;;  %v3769_v48 = vmul.f32 %v6751_v53, %v3698_v15  ;;  %4899 = vrsqrt.f32 %v3573_v14  ;;  %v3483_v10 = vmul.f32 0.0078125, %v3386_v37 }
 0x59a   : > { %v4890_v0 = vpop.eup %4889  ;;  %3903 = vst [vmem:[%s5776_s3 + $0x1a0] sm:$0xff] %v3839_v16  ;;  %v3742_v46 = vmul.f32 %v6751_v53, %v3671_v57  ;;  %v3574_v36 = vadd.f32 1e-05, %v3510_v24  ;;  %v7251_v57 = vld [vmem:[#allocation34_spill] sm:$0xff] }
 0x59b   : > { %v4892_v25 = vpop.eup %4891  ;;  %v3840_v44 = vadd.f32 %v6757_v2, %v3769_v48  ;;  %v3672_v19 = vmul.f32 %v4890_v0, %v6670_v62  ;;  %v3547_v26 = vadd.f32 1e-05, %v3483_v10  ;;  %v3388_v4 = vpop.xlane.xlu1 %3387  ;;  %v4919_v0 = vld [vmem:[%s7237_s0] ss:$0 sm:$0xff] }
 0x59c   : > { %v3813_v20 = vadd.f32 %v6757_v2, %v3742_v46  ;;  %v3703_v1 = vmul.f32 %v4892_v25, %v6677_v56  ;;  %4901 = vrsqrt.f32 %v3574_v36  ;;  %v3484_v42 = vmul.f32 0.0078125, %v3388_v4  ;;  %v4920_v25 = vld [vmem:[%s7238_s10] ss:$0 sm:$0xff] }
 0x59d   : > { %3904 = vst [vmem:[%s5776_s3 + $0x1a8] sm:$0xff] %v3840_v44  ;;  %v3743_v30 = vmul.f32 %v6751_v53, %v3672_v19  ;;  %4903 = vrsqrt.f32 %v3547_v26  ;;  %v7252_v19 = vld [vmem:[#allocation37_spill] sm:$0xff]  ;;  %v7253_v26 = vld [vmem:[#allocation36_spill] sm:$0xff] }
 0x59e   : > { %v4894_v12 = vpop.eup %4893  ;;  %3877 = vst [vmem:[%s5776_s3 + $0xd0] sm:$0xff] %v3813_v20  ;;  %v3774_v40 = vmul.f32 %v6751_v53, %v3703_v1  ;;  %v3548_v52 = vadd.f32 1e-05, %v3484_v42 }
 0x59f   : > { %v4896_v62 = vpop.eup %4895  ;;  %v3814_v49 = vadd.f32 %v6757_v2, %v3743_v30  ;;  %v3704_v31 = vmul.f32 %v4894_v12, %v6682_v27  ;;  %v3384_v59 = vpop.xlane.xlu1 %3383 }
 0x5a0   : > { %v3382_v56 = vpop.xlane.xlu0 %3381  ;;  %v3845_v60 = vadd.f32 %v6757_v2, %v3774_v40  ;;  %v3669_v5 = vmul.f32 %v4896_v62, %v6687_v50  ;;  %4905 = vrsqrt.f32 %v3548_v52  ;;  %v3482_v34 = vmul.f32 0.0078125, %v3384_v59  ;;  %v7255_v40 = vld [vmem:[#allocation46_spill] sm:$0xff] }
 0x5a1   : > { %3878 = vst [vmem:[%s5776_s3 + $0xd8] sm:$0xff] %v3814_v49  ;;  %v3775_v7 = vmul.f32 %v6751_v53, %v3704_v31  ;;  %v3481_v8 = vmul.f32 0.0078125, %v3382_v56  ;;  %v7256_v49 = vld [vmem:[#allocation40_spill] sm:$0xff] }
 0x5a2   : > { %v4898_v6 = vpop.eup %4897  ;;  %3909 = vst [vmem:[%s5776_s3 + $0x1d0] sm:$0xff] %v3845_v60  ;;  %v3740_v22 = vmul.f32 %v6751_v53, %v3669_v5  ;;  %v3546_v61 = vadd.f32 1e-05, %v3482_v34 }
 0x5a3   : > { %v4900_v27 = vpop.eup %4899  ;;  %v3846_v47 = vadd.f32 %v6757_v2, %v3775_v7  ;;  %v3670_v43 = vmul.f32 %v4898_v6, %v6690_v45  ;;  %v3545_v32 = vadd.f32 1e-05, %v3481_v8  ;;  %v3448_v50 = vpop.xlane.xlu1 %3447  ;;  %v7257_v7 = vld [vmem:[#allocation38_spill] sm:$0xff] }
 0x5a4   : > { %v3446_v38 = vpop.xlane.xlu0 %3445  ;;  %v3811_v58 = vadd.f32 %v6757_v2, %v3740_v22  ;;  %v3701_v29 = vmul.f32 %v4900_v27, %v6697_v3  ;;  %4907 = vrsqrt.f32 %v3546_v61  ;;  %v3514_v9 = vmul.f32 0.0078125, %v3448_v50  ;;  %v7258_v22 = vld [vmem:[#allocation39_spill] sm:$0xff] }
 0x5a5   : > { %3910 = vst [vmem:[%s5776_s3 + $0x1d8] sm:$0xff] %v3846_v47  ;;  %v3741_v21 = vmul.f32 %v6751_v53, %v3670_v43  ;;  %4909 = vrsqrt.f32 %v3545_v32  ;;  %v3513_v17 = vmul.f32 0.0078125, %v3446_v38 }
 0x5a6   : > { %v4902_v39 = vpop.eup %4901  ;;  %3875 = vst [vmem:[%s5776_s3 + $0xc0] sm:$0xff] %v3811_v58  ;;  %v3772_v18 = vmul.f32 %v6751_v53, %v3701_v29  ;;  %v3578_v45 = vadd.f32 1e-05, %v3514_v9 }
 0x5a7   : > { %v4904_v41 = vpop.eup %4903  ;;  %v3812_v11 = vadd.f32 %v6757_v2, %v3741_v21  ;;  %v3702_v33 = vmul.f32 %v4902_v39, %v6702_v35  ;;  %v3577_v3 = vadd.f32 1e-05, %v3513_v17  ;;  %v3452_v55 = vpop.xlane.xlu1 %3451 }
 0x5a8   : > { %v3450_v51 = vpop.xlane.xlu0 %3449  ;;  %v3843_v13 = vadd.f32 %v6757_v2, %v3772_v18  ;;  %v3675_v28 = vmul.f32 %v4904_v41, %v7250_v54  ;;  %4911 = vrsqrt.f32 %v3578_v45  ;;  %v3516_v63 = vmul.f32 0.0078125, %v3452_v55 }
 0x5a9   : > { %3876 = vst [vmem:[%s5776_s3 + $0xc8] sm:$0xff] %v3812_v11  ;;  %v3773_v15 = vmul.f32 %v6751_v53, %v3702_v33  ;;  %4913 = vrsqrt.f32 %v3577_v3  ;;  %v3515_v14 = vmul.f32 0.0078125, %v3450_v51 }
 0x5aa   : > { %v4906_v23 = vpop.eup %4905  ;;  %3907 = vst [vmem:[%s5776_s3 + $0x1c0] sm:$0xff] %v3843_v13  ;;  %v3746_v35 = vmul.f32 %v6751_v53, %v3675_v28  ;;  %v3580_v37 = vadd.f32 1e-05, %v3516_v63 }
 0x5ab   : > { %v3844_v16 = vadd.f32 %v6757_v2, %v3773_v15  ;;  %v3676_v24 = vmul.f32 %v4906_v23, %v7251_v57  ;;  %v3579_v48 = vadd.f32 1e-05, %v3515_v14 }
 0x5ac   : > { %v3817_v10 = vadd.f32 %v6757_v2, %v3746_v35  ;;  %4915 = vrsqrt.f32 %v3580_v37 }
 0x5ad   : > { %3908 = vst [vmem:[%s5776_s3 + $0x1c8] sm:$0xff] %v3844_v16  ;;  %v3747_v46 = vmul.f32 %v4919_v0, %v3676_v24  ;;  %4917 = vrsqrt.f32 %v3579_v48 }
 0x5ae   : > { %v4908_v36 = vpop.eup %4907  ;;  %3881 = vst [vmem:[%s5776_s3 + $0xf0] sm:$0xff] %v3817_v10 }
 0x5af   : > { %v4910_v53 = vpop.eup %4909  ;;  %v3818_v44 = vadd.f32 %v4920_v25, %v3747_v46  ;;  %v3674_v2 = vmul.f32 %v4908_v36, %v7252_v19 }
 0x5b0   : > { %v3673_v4 = vmul.f32 %v4910_v53, %v7253_v26 }
 0x5b1   : > { %3882 = vst [vmem:[%s5776_s3 + $0xf8] sm:$0xff] %v3818_v44  ;;  %v3745_v20 = vmul.f32 %v4919_v0, %v3674_v2 }
 0x5b2   : > { %v4912_v1 = vpop.eup %4911  ;;  %v3744_v42 = vmul.f32 %v4919_v0, %v3673_v4 }
 0x5b3   : > { %v4914_v30 = vpop.eup %4913  ;;  %v3816_v12 = vadd.f32 %v4920_v25, %v3745_v20  ;;  %v3706_v52 = vmul.f32 %v4912_v1, %v7255_v40 }
 0x5b4   : > { %v3815_v62 = vadd.f32 %v4920_v25, %v3744_v42  ;;  %v3705_v31 = vmul.f32 %v4914_v30, %v7256_v49 }
 0x5b5   : > { %3880 = vst [vmem:[%s5776_s3 + $0xe8] sm:$0xff] %v3816_v12  ;;  %v3777_v59 = vmul.f32 %v4919_v0, %v3706_v52 }
 0x5b6   : > { %v4916_v56 = vpop.eup %4915  ;;  %3879 = vst [vmem:[%s5776_s3 + $0xe0] sm:$0xff] %v3815_v62  ;;  %v3776_v60 = vmul.f32 %v4919_v0, %v3705_v31 }
 0x5b7   : > { %v4918_v5 = vpop.eup %4917  ;;  %v3848_v34 = vadd.f32 %v4920_v25, %v3777_v59  ;;  %v3708_v8 = vmul.f32 %v4916_v56, %v7257_v7 }
 0x5b8   : > { %v3847_v6 = vadd.f32 %v4920_v25, %v3776_v60  ;;  %v3707_v61 = vmul.f32 %v4918_v5, %v7258_v22 }
 0x5b9   : > { %3912 = vst [vmem:[%s5776_s3 + $0x1e8] sm:$0xff] %v3848_v34  ;;  %v3779_v27 = vmul.f32 %v4919_v0, %v3708_v8 }
 0x5ba   : > { %3911 = vst [vmem:[%s5776_s3 + $0x1e0] sm:$0xff] %v3847_v6  ;;  %v3778_v47 = vmul.f32 %v4919_v0, %v3707_v61 }
 0x5bb   : > { %v3850_v43 = vadd.f32 %v4920_v25, %v3779_v27 }
 0x5bc   : > { %v3849_v32 = vadd.f32 %v4920_v25, %v3778_v47 }
 0x5bd   : > { %3914 = vst [vmem:[%s5776_s3 + $0x1f8] sm:$0xff] %v3850_v43 }
 0x5be   : > { %3913 = vst [vmem:[%s5776_s3 + $0x1f0] sm:$0xff] %v3849_v32 }
 0x5bf   : > { %5088 = shalt.err (!%p5085_p1)
}
 0x5c0   : > { %s5089_s18 = scalar_lea.hbm %s7009_s6, 8192  ;;  %s5093_s1 = scalar_lea.hbm %s7259_s22, 16384 }
 0x5c1   : > { %p5090_p13 = scmp.ne.s32.totalorder %s7009_s6, %s5089_s18  ;;  %p5094_p9 = scmp.lt.u32.totalorder %s7009_s6, %s7259_s22 }
 0x5c2   : > { %p5095_p2 = scmp.lt.u32.totalorder %s5093_s1, %s5089_s18  ;;  %p5097_p4 = scmp.lt.u32.totalorder %s5089_s18, %s7009_s6 }
 0x5c3   : > { %p5091_p10 = pnand %p5090_p13, %p7260_p0 }
 0x5c4   : > { %p5096_p12 = por %p5095_p2, %p5094_p9 }
 0x5c5   : > { %p5092_p7 = pneg %p5091_p10 }
 0x5c6   : > { %p5098_p8 = por %p5097_p4, %p5096_p12 }
 0x5c8   : > { %p5099_p6 = pnand %p5098_p8, %p5092_p7 }
 0x5ca   : > { %5102 = shalt.err (!%p5099_p6)
}
 0x5cb   : > { %s5237_s7 = smov 128   ;;  %s5238_s20 = smov 8  }
 0x5cc   : > { %4421 = dma.vmem_to_hbm [thread:$0]  (%p7260_p0), %s7011_s4, 8192, %s7009_s6, %s7017_s28, %s5237_s7, %s5237_s7, %s5238_s20  }
 0x5cd PF: > { %s3944_s11 = sand.u32 1, %s5175_s2   ;;  %p7261_p3 = scmp.ne.s32.totalorder %s7180_s24, 0 }
 0x5ce   : > { %p7262_p11 = scmp.ge.s32.totalorder %s5219_s16, 2  ;;  %s3945_s9 = scalar_lea.sflag [#allocation9], %s3944_s11 }
 0x5d0   : > { %p4442_p5 = pnand %p7262_p11, %p7261_p3 }
 0x5d2   : > { %5170 = dma.done.wait (!%p4442_p5), %s3945_s9, 8192  }
 0x5d3   : > { %5172 = vsyncadd (!%p4442_p5), %s3945_s9, 4294959104  ;;  %s44_s16 = sadd.s32 1, %s5219_s16   ;;  %s7263_s19 = sld [smem:[#allocation27_spill]] }
 0x5d4   : > { %p41_p1 = scmp.ge.s32.totalorder %s44_s16, 4   ;;  %s7264_s2 = smov %s5179_s26 }
 0x5d5   : > { %s7265_s26 = smov %s5183_s27  ;;  %s7266_s27 = smov %s5603_s8 }
 0x5d6   : > { %s7267_s28 = smov %s5191_s29  ;;  %s7268_s29 = smov %s5195_s30 }
 0x5d7   : > { %s7269_s30 = smov %s5405_s14  ;;  %s7270_s11 = smov %s5203_s12 }
 0x5d8   : > { %s7271_s12 = smov %s5207_s13  ;;  %s7273_s14 = smov %s5215_s15 }
 0x5d9   : > { %s7272_s13 = smov %s7263_s19  ;;  %s7274_s15 = smov %s7276_s17 }
 0x5da   :  { %43 = sbr.rel (!%p41_p1) target bundleno = 50 (0x32), region = 133 }
 0x5e1   :  { %3950 = vsyncpa [#allocation8], 1 }
 0x5e2   :  { %3952 = vsyncpa [#allocation8 + $0x1], 1 }
 0x5e3   :  { %3953 = vsyncpa [#allocation11], 1 }
 0x5e4   :  { %3955 = vsyncpa [#allocation11 + $0x1], 1 }
 0x5e5   :  { %3956 = vsyncpa [#allocation14], 1 }
 0x5e6   :  { %3957 = vsyncpa [#allocation9], 1 }
 0x5e7   :  { %3959 = vsyncpa [#allocation9 + $0x1], 1 }

</bundles_post_ra>
